<compile_context>
chip_gen: v5e
topology: v5e:2x2
jax: 0.10.0
libtpu: 0.0.40
codegen_flags: <defaults>
</compile_context>

<pallas_src>
import jax
import jax.numpy as jnp
from jax.experimental import pallas as pl
from jax.experimental.pallas import tpu as pltpu

LEAKY_SLOPE = 0.01


def _leaky(v):
    return jnp.where(v > 0, v, LEAKY_SLOPE * v)


def _sigmoid(v):
    # Numerically-stable logistic: exp() only ever sees a non-positive argument.
    e = jnp.exp(-jnp.abs(v))
    r = 1.0 / (1.0 + e)
    return jnp.where(v >= 0, r, 1.0 - r)


def _tfa_kernel(x_ref, wa_ref, wb31_ref, wb33_ref, o_ref):
    # x_ref   : (n, t, cl)        cl  = pb*C lanes, part-major / channel-minor
    # wa_ref  : (3*cl, hl2)       hl2 = 2*pb*H  (both branches' first convs, tap-major)
    # wb31_ref: (hl1, cl)         hl1 = pb*H    (3x1 branch k=1 second conv)
    # wb33_ref: (3*hl1, cl)                     (3x3 branch second conv, tap-major)
    # o_ref   : (n, cl)
    x = x_ref[...]                                   # (n, t, cl) f32
    n, t, cl = x.shape
    wa = wa_ref[...]                                 # (3*cl, hl2)
    wb31 = wb31_ref[...]                             # (hl1, cl)
    wb33 = wb33_ref[...]                             # (3*hl1, cl)
    hl2 = wa.shape[-1]
    hl1 = hl2 // 2

    def shift_t(v, s, fill):
        # y[:, tau, :] = v[:, tau + s, :] when in range, else `fill`.
        nn, tt, ww = v.shape
        pad = jnp.full((nn, abs(s), ww), fill, v.dtype)
        if s > 0:
            return jnp.concatenate([v[:, s:, :], pad], axis=1)
        return jnp.concatenate([pad, v[:, :tt + s, :]], axis=1)
        # TODO(synk): pltpu.roll(v, (-s) % tt, axis=1) + iota mask would avoid the
        # sublane-unaligned concat copies entirely (XLU-only); kept safe for parity.

    # ---- shifted views of x, built once and reused (taps + avg + max pools) ----
    xm1 = shift_t(x, -1, 0.0)                        # x[t-1], zero fill
    xp1 = shift_t(x, +1, 0.0)                        # x[t+1], zero fill
    xm2 = shift_t(x, -2, 0.0)
    xp2 = shift_t(x, +2, 0.0)
    im1 = shift_t(x, -1, -jnp.inf)                   # -inf fill (max pools)
    ip1 = shift_t(x, +1, -jnp.inf)
    im2 = shift_t(x, -2, -jnp.inf)
    ip2 = shift_t(x, +2, -jnp.inf)

    # ---- fused first convs of both branches, all 3 taps: ONE MXU matmul --------
    # tap k of a k=3/pad=1 conv reads x[t + k - 1]
    xcat = jnp.concatenate([xm1, x, xp1], axis=-1).reshape(n * t, 3 * cl)
    hid = _leaky(jnp.dot(xcat, wa, preferred_element_type=jnp.float32))  # (n*t, hl2)

    # ---- second convs: two matmuls, no structurally-zero tap blocks ------------
    # 3x1 branch: k=1 conv on the first hl1 hidden lanes
    s31 = _sigmoid(jnp.dot(hid[:, :hl1], wb31,
                           preferred_element_type=jnp.float32)).reshape(n, t, cl)
    # 3x3 branch: k=3/pad=1 conv on the second hl1 hidden lanes only
    hid33 = hid[:, hl1:].reshape(n, t, hl1)
    h33m1 = shift_t(hid33, -1, 0.0)
    h33p1 = shift_t(hid33, +1, 0.0)
    hcat33 = jnp.concatenate([h33m1, hid33, h33p1], axis=-1).reshape(n * t, 3 * hl1)
    s33 = _sigmoid(jnp.dot(hcat33, wb33,
                           preferred_element_type=jnp.float32)).reshape(n, t, cl)

    # ---- pooled features (Avg: count_include_pad=True, Max: -inf pad) ----------
    avg3 = (xm1 + x + xp1) * (1.0 / 3.0)
    max3 = jnp.maximum(jnp.maximum(im1, x), ip1)
    avg5 = (xm2 + xm1 + x + xp1 + xp2) * (1.0 / 5.0)
    max5 = jnp.maximum(jnp.maximum(jnp.maximum(im2, im1), jnp.maximum(x, ip1)), ip2)

    feat = (avg3 + max3) * s31 + (avg5 + max5) * s33  # (n, t, cl)

    # ---- temporal max, single lane-dense writeback ------------------------------
    o_ref[...] = jnp.max(feat, axis=1).astype(o_ref.dtype)


def _dual_tensorcore_chip():
    """True on chips with 2 TensorCores per JAX device (v7x, v4/v5p megacore)."""
    try:
        kind = jax.devices()[0].device_kind.lower().replace(" ", "")
    except Exception:
        return False
    return ("v7" in kind) or ("v4" in kind) or ("v5p" in kind)


def _pick_num_groups(p, c):
    """g=2 gives each TensorCore of a dual-TC chip one 8-part block; single-TC
    chips (v5e/v6e) run the grid serially, so g=1 removes a full grid-step
    overhead and a second weight-DMA prologue."""
    if _dual_tensorcore_chip() and p % 2 == 0 and ((p // 2) * c) % 128 == 0:
        return 2
    # NOTE: if p*c is not a multiple of 128 this is still correct (block == full
    # array dims) but hits masked-store / unaligned-lane perf cliffs.
    return 1


def pack_tfa_weights(w31a, w31b, w33a, w33b, g):
    """Pack per-part conv weights into per-grid-step fused block-diagonal matmul
    operands.  Call ONCE (weights are static at inference) and reuse across calls.

    Args (pre-transposed Conv1d weights, no bias):
      w31a (p,3,c,h)  w31b (p,h,c)  w33a (p,3,c,h)  w33b (p,3,h,c)
    Returns:
      wa  : (g, 3*pb*c, 2*pb*h)  first convs of BOTH branches, tap-major rows
      wb31: (g,   pb*h,   pb*c)  3x1-branch k=1 second conv
      wb33: (g, 3*pb*h,   pb*c)  3x3-branch k=3 second conv, tap-major rows
    """
    p, _, c, h = w31a.shape
    pb = p // g
    eye = jnp.eye(pb, dtype=w31a.dtype)

    def bd_first(w):                      # (p,3,c,h) -> (g, 3, pb*c, pb*h) block-diag
        w = w.reshape(g, pb, 3, c, h)
        return jnp.einsum('gpkch,pq->gkpcqh', w, eye).reshape(g, 3, pb * c, pb * h)

    wa = jnp.concatenate([bd_first(w31a), bd_first(w33a)], axis=-1)
    wa = wa.reshape(g, 3 * pb * c, 2 * pb * h)

    wb31 = jnp.einsum('gphc,pq->gphqc', w31b.reshape(g, pb, h, c), eye)
    wb31 = wb31.reshape(g, pb * h, pb * c)

    wb33 = jnp.einsum('gpkhc,pq->gkphqc', w33b.reshape(g, pb, 3, h, c), eye)
    wb33 = wb33.reshape(g, 3 * pb * h, pb * c)
    return wa, wb31, wb33


def tfa_forward_packed(x, wa, wb31, wb33):
    """x: (p, n, t, c) with pre-packed weights from pack_tfa_weights.  -> (p, n, c)."""
    p, n, t, c = x.shape
    g = wa.shape[0]
    pb = p // g
    cl = pb * c

    # lane-pack parts: (p,n,t,c) -> (n,t,p*c); lane index = part*c + channel
    x_l = jnp.transpose(x, (1, 2, 0, 3)).reshape(n, t, p * c)

    # Cost reflects the MACs actually executed (dense block-diag matmuls) plus a
    # rough vector-op term for the pools / activations.
    mm_flops = 2 * n * t * g * (wa.shape[1] * wa.shape[2]
                                + wb31.shape[1] * wb31.shape[2]
                                + wb33.shape[1] * wb33.shape[2])
    cost = pl.CostEstimate(
        flops=int(mm_flops + 40 * x.size),
        transcendentals=int(2 * p * n * t * c),
        bytes_accessed=int(4 * (x.size + wa.size + wb31.size + wb33.size + p * n * c)),
    )

    out_l = pl.pallas_call(
        _tfa_kernel,
        out_shape=jax.ShapeDtypeStruct((n, p * c), x.dtype),
        grid_spec=pltpu.PrefetchScalarGridSpec(
            num_scalar_prefetch=0,
            grid=(g,),
            in_specs=[
                pl.BlockSpec((n, t, cl), lambda i: (0, 0, i)),
                pl.BlockSpec((pl.Squeezed(), wa.shape[1], wa.shape[2]),
                             lambda i: (i, 0, 0)),
                pl.BlockSpec((pl.Squeezed(), wb31.shape[1], wb31.shape[2]),
                             lambda i: (i, 0, 0)),
                pl.BlockSpec((pl.Squeezed(), wb33.shape[1], wb33.shape[2]),
                             lambda i: (i, 0, 0)),
            ],
            out_specs=pl.BlockSpec((n, cl), lambda i: (0, i)),
        ),
        # "parallel" shards the g=2 grid across the two TensorCores on dual-TC chips.
        compiler_params=pltpu.CompilerParams(dimension_semantics=("parallel",)),
        cost_estimate=cost,
    )(x_l, wa, wb31, wb33)

    # (n, p*c) -> (p, n, c)
    return jnp.transpose(out_l.reshape(n, p, c), (1, 0, 2))


def temporal_feature_aggregator(x, w31a, w31b, w33a, w33b):
    """One-shot API mirroring the PyTorch module (re-packs weights every call).
    Prefer pack_tfa_weights + tfa_forward_packed when the weights are static."""
    p, n, t, c = x.shape
    g = _pick_num_groups(p, c)
    return tfa_forward_packed(x, *pack_tfa_weights(w31a, w31b, w33a, w33b, g))


# ---------------- pure-JAX reference (for correctness check) ----------------
def _ref_one_part(x, w31a, w31b, w33a, w33b):
    n, t, c = x.shape

    def convK(xpad, w):
        K = w.shape[0]
        return sum(jnp.einsum('ntc,cd->ntd', xpad[:, k:k + t, :], w[k]) for k in range(K))

    xp1 = jnp.pad(x, ((0, 0), (1, 1), (0, 0)))
    xm1 = jnp.pad(x, ((0, 0), (1, 1), (0, 0)), constant_values=-jnp.inf)
    xp2 = jnp.pad(x, ((0, 0), (2, 2), (0, 0)))
    xm2 = jnp.pad(x, ((0, 0), (2, 2), (0, 0)), constant_values=-jnp.inf)

    hid = _leaky(convK(xp1, w31a))
    s31 = _sigmoid(jnp.einsum('nth,hc->ntc', hid, w31b))
    avg3 = (xp1[:, 0:t] + xp1[:, 1:t + 1] + xp1[:, 2:t + 2]) / 3.0
    m3 = jnp.maximum(jnp.maximum(xm1[:, 0:t], xm1[:, 1:t + 1]), xm1[:, 2:t + 2])
    f31 = (avg3 + m3) * s31

    hid2 = _leaky(convK(xp1, w33a))
    hp = jnp.pad(hid2, ((0, 0), (1, 1), (0, 0)))
    s33 = _sigmoid(convK(hp, w33b))
    avg5 = sum(xp2[:, k:t + k] for k in range(5)) / 5.0
    m5 = xm2[:, 0:t]
    for k in range(1, 5):
        m5 = jnp.maximum(m5, xm2[:, k:t + k])
    f33 = (avg5 + m5) * s33

    return jnp.max(f31 + f33, axis=1)


if __name__ == "__main__":
    # Shapes consistent with the module: in_channels=32, squeeze_ratio=4 (hidden=8),
    # num_part=16, batch n=2, seq t=8.
    P, N, T, C = 16, 2, 8, 32
    H = C // 4

    key = jax.random.PRNGKey(0)
    k_x, k1, k2, k3, k4 = jax.random.split(key, 5)
    x = jax.random.normal(k_x, (P, N, T, C), jnp.float32)

    # Deterministic synthetic weights (BasicConv1d has no bias).
    # Conv1d weight (out, in, K) stored pre-transposed as (K, in, out) for matmuls.
    w31a = 0.1 * jax.random.normal(k1, (P, 3, C, H), jnp.float32)   # 3x1 branch, first conv
    w31b = 0.1 * jax.random.normal(k2, (P, H, C), jnp.float32)      # 3x1 branch, k=1 conv
    w33a = 0.1 * jax.random.normal(k3, (P, 3, C, H), jnp.float32)   # 3x3 branch, first conv
    w33b = 0.1 * jax.random.normal(k4, (P, 3, H, C), jnp.float32)   # 3x3 branch, second conv

    # Pack the (static) weights ONCE, outside the jitted hot path.
    g = _pick_num_groups(P, C)
    wa, wb31, wb33 = pack_tfa_weights(w31a, w31b, w33a, w33b, g)

    fwd = jax.jit(tfa_forward_packed)
    out = jax.block_until_ready(fwd(x, wa, wb31, wb33))

    ref = jax.vmap(_ref_one_part)(x, w31a, w31b, w33a, w33b)
    assert out.shape == (P, N, C)
    err = float(jnp.max(jnp.abs(out - ref)))
    assert jnp.allclose(out, ref, atol=1e-4, rtol=1e-4), err

    print("KERNEL_OK")
</pallas_src>

<mosaic_0001>
module attributes {stable_mosaic.version = 11 : i64} {
  func.func @_tfa_kernel(%arg0: i32, %arg1: memref<2x8x512xf32, #tpu.memory_space<vmem>>, %arg2: memref<1x1536x256xf32, #tpu.memory_space<vmem>>, %arg3: memref<1x128x512xf32, #tpu.memory_space<vmem>>, %arg4: memref<1x384x512xf32, #tpu.memory_space<vmem>>, %arg5: memref<2x512xf32, #tpu.memory_space<vmem>>) attributes {dimension_semantics = [#tpu.dimension_semantics<parallel>], iteration_bounds = array<i64: 1>, scalar_prefetch = 0 : i64, scratch_operands = 0 : i64, tpu.core_type = #tpu.core_type<tc>, window_params = [{transform_indices = @transform_0, window_bounds = array<i64: 2, 8, 512>}, {transform_indices = @transform_1, window_bounds = array<i64: 1, 1536, 256>}, {transform_indices = @transform_2, window_bounds = array<i64: 1, 128, 512>}, {transform_indices = @transform_3, window_bounds = array<i64: 1, 384, 512>}, {transform_indices = @transform_4, window_bounds = array<i64: 2, 512>}]} {
    %c0 = arith.constant 0 : index
    %c0_0 = arith.constant 0 : index
    %c0_1 = arith.constant 0 : index
    %0 = vector.load %arg1[%c0, %c0_0, %c0_1] : memref<2x8x512xf32, #tpu.memory_space<vmem>>, vector<2x8x512xf32>
    %c0_2 = arith.constant 0 : index
    %c0_3 = arith.constant 0 : index
    %c0_4 = arith.constant 0 : index
    %1 = vector.load %arg2[%c0_2, %c0_3, %c0_4] : memref<1x1536x256xf32, #tpu.memory_space<vmem>>, vector<1x1536x256xf32>
    %2 = vector.shape_cast %1 : vector<1x1536x256xf32> to vector<1536x256xf32>
    %c0_5 = arith.constant 0 : index
    %c0_6 = arith.constant 0 : index
    %c0_7 = arith.constant 0 : index
    %3 = vector.load %arg3[%c0_5, %c0_6, %c0_7] : memref<1x128x512xf32, #tpu.memory_space<vmem>>, vector<1x128x512xf32>
    %4 = vector.shape_cast %3 : vector<1x128x512xf32> to vector<128x512xf32>
    %c0_8 = arith.constant 0 : index
    %c0_9 = arith.constant 0 : index
    %c0_10 = arith.constant 0 : index
    %5 = vector.load %arg4[%c0_8, %c0_9, %c0_10] : memref<1x384x512xf32, #tpu.memory_space<vmem>>, vector<1x384x512xf32>
    %6 = vector.shape_cast %5 : vector<1x384x512xf32> to vector<384x512xf32>
    %cst = arith.constant 0.000000e+00 : f32
    %7 = vector.broadcast %cst : f32 to vector<2x1x512xf32>
    %8 = vector.extract_strided_slice %0 {offsets = [0, 0, 0], sizes = [2, 7, 512], strides = [1, 1, 1]} : vector<2x8x512xf32> to vector<2x7x512xf32>
    %9 = tpu.concatenate %7, %8 in 1 : vector<2x1x512xf32>, vector<2x7x512xf32> -> vector<2x8x512xf32>
    %cst_11 = arith.constant 0.000000e+00 : f32
    %10 = vector.broadcast %cst_11 : f32 to vector<2x1x512xf32>
    %11 = vector.extract_strided_slice %0 {offsets = [0, 1, 0], sizes = [2, 7, 512], strides = [1, 1, 1]} : vector<2x8x512xf32> to vector<2x7x512xf32>
    %12 = tpu.concatenate %11, %10 in 1 : vector<2x7x512xf32>, vector<2x1x512xf32> -> vector<2x8x512xf32>
    %cst_12 = arith.constant 0.000000e+00 : f32
    %13 = vector.broadcast %cst_12 : f32 to vector<2x2x512xf32>
    %14 = vector.extract_strided_slice %0 {offsets = [0, 0, 0], sizes = [2, 6, 512], strides = [1, 1, 1]} : vector<2x8x512xf32> to vector<2x6x512xf32>
    %15 = tpu.concatenate %13, %14 in 1 : vector<2x2x512xf32>, vector<2x6x512xf32> -> vector<2x8x512xf32>
    %cst_13 = arith.constant 0.000000e+00 : f32
    %16 = vector.broadcast %cst_13 : f32 to vector<2x2x512xf32>
    %17 = vector.extract_strided_slice %0 {offsets = [0, 2, 0], sizes = [2, 6, 512], strides = [1, 1, 1]} : vector<2x8x512xf32> to vector<2x6x512xf32>
    %18 = tpu.concatenate %17, %16 in 1 : vector<2x6x512xf32>, vector<2x2x512xf32> -> vector<2x8x512xf32>
    %cst_14 = arith.constant 0xFF800000 : f32
    %19 = vector.broadcast %cst_14 : f32 to vector<2x1x512xf32>
    %20 = vector.extract_strided_slice %0 {offsets = [0, 0, 0], sizes = [2, 7, 512], strides = [1, 1, 1]} : vector<2x8x512xf32> to vector<2x7x512xf32>
    %21 = tpu.concatenate %19, %20 in 1 : vector<2x1x512xf32>, vector<2x7x512xf32> -> vector<2x8x512xf32>
    %cst_15 = arith.constant 0xFF800000 : f32
    %22 = vector.broadcast %cst_15 : f32 to vector<2x1x512xf32>
    %23 = vector.extract_strided_slice %0 {offsets = [0, 1, 0], sizes = [2, 7, 512], strides = [1, 1, 1]} : vector<2x8x512xf32> to vector<2x7x512xf32>
    %24 = tpu.concatenate %23, %22 in 1 : vector<2x7x512xf32>, vector<2x1x512xf32> -> vector<2x8x512xf32>
    %cst_16 = arith.constant 0xFF800000 : f32
    %25 = vector.broadcast %cst_16 : f32 to vector<2x2x512xf32>
    %26 = vector.extract_strided_slice %0 {offsets = [0, 0, 0], sizes = [2, 6, 512], strides = [1, 1, 1]} : vector<2x8x512xf32> to vector<2x6x512xf32>
    %27 = tpu.concatenate %25, %26 in 1 : vector<2x2x512xf32>, vector<2x6x512xf32> -> vector<2x8x512xf32>
    %cst_17 = arith.constant 0xFF800000 : f32
    %28 = vector.broadcast %cst_17 : f32 to vector<2x2x512xf32>
    %29 = vector.extract_strided_slice %0 {offsets = [0, 2, 0], sizes = [2, 6, 512], strides = [1, 1, 1]} : vector<2x8x512xf32> to vector<2x6x512xf32>
    %30 = tpu.concatenate %29, %28 in 1 : vector<2x6x512xf32>, vector<2x2x512xf32> -> vector<2x8x512xf32>
    %31 = tpu.concatenate %9, %0, %12 in 2 : vector<2x8x512xf32>, vector<2x8x512xf32>, vector<2x8x512xf32> -> vector<2x8x1536xf32>
    %32 = vector.shape_cast %31 : vector<2x8x1536xf32> to vector<16x1536xf32>
    %cst_18 = arith.constant dense<0.000000e+00> : vector<16x256xf32>
    %33 = tpu.matmul %32, %2, %cst_18 {dimension_numbers = #tpu.dot_dimension_numbers<[1], [0], [0], [1], [0, 0, 1, 1], [], []>} : vector<16x1536xf32>, vector<1536x256xf32>, vector<16x256xf32> -> vector<16x256xf32>
    %cst_19 = arith.constant 0.000000e+00 : f32
    %34 = vector.broadcast %cst_19 : f32 to vector<16x256xf32>
    %35 = arith.cmpf ogt, %33, %34 : vector<16x256xf32>
    %cst_20 = arith.constant 0.00999999977 : f32
    %36 = vector.broadcast %cst_20 : f32 to vector<16x256xf32>
    %37 = arith.mulf %36, %33 : vector<16x256xf32>
    %38 = arith.select %35, %33, %37 : vector<16x256xi1>, vector<16x256xf32>
    %39 = vector.extract_strided_slice %38 {offsets = [0, 0], sizes = [16, 128], strides = [1, 1]} : vector<16x256xf32> to vector<16x128xf32>
    %cst_21 = arith.constant dense<0.000000e+00> : vector<16x512xf32>
    %40 = tpu.matmul %39, %4, %cst_21 {dimension_numbers = #tpu.dot_dimension_numbers<[1], [0], [0], [1], [0, 0, 1, 1], [], []>} : vector<16x128xf32>, vector<128x512xf32>, vector<16x512xf32> -> vector<16x512xf32>
    %41 = math.absf %40 : vector<16x512xf32>
    %cst_22 = arith.constant 0.000000e+00 : f32
    %42 = vector.broadcast %cst_22 : f32 to vector<16x512xf32>
    %43 = arith.subf %42, %41 : vector<16x512xf32>
    %44 = math.exp %43 : vector<16x512xf32>
    %cst_23 = arith.constant 1.000000e+00 : f32
    %45 = vector.broadcast %cst_23 : f32 to vector<16x512xf32>
    %46 = arith.addf %45, %44 : vector<16x512xf32>
    %cst_24 = arith.constant 1.000000e+00 : f32
    %47 = vector.broadcast %cst_24 : f32 to vector<16x512xf32>
    %48 = arith.divf %47, %46 : vector<16x512xf32>
    %cst_25 = arith.constant 0.000000e+00 : f32
    %49 = vector.broadcast %cst_25 : f32 to vector<16x512xf32>
    %50 = arith.cmpf oge, %40, %49 : vector<16x512xf32>
    %cst_26 = arith.constant 1.000000e+00 : f32
    %51 = vector.broadcast %cst_26 : f32 to vector<16x512xf32>
    %52 = arith.subf %51, %48 : vector<16x512xf32>
    %53 = arith.select %50, %48, %52 : vector<16x512xi1>, vector<16x512xf32>
    %54 = vector.shape_cast %53 : vector<16x512xf32> to vector<2x8x512xf32>
    %55 = vector.extract_strided_slice %38 {offsets = [0, 128], sizes = [16, 128], strides = [1, 1]} : vector<16x256xf32> to vector<16x128xf32>
    %56 = vector.shape_cast %55 : vector<16x128xf32> to vector<2x8x128xf32>
    %cst_27 = arith.constant 0.000000e+00 : f32
    %57 = vector.broadcast %cst_27 : f32 to vector<2x1x128xf32>
    %58 = vector.extract_strided_slice %56 {offsets = [0, 0, 0], sizes = [2, 7, 128], strides = [1, 1, 1]} : vector<2x8x128xf32> to vector<2x7x128xf32>
    %59 = tpu.concatenate %57, %58 in 1 : vector<2x1x128xf32>, vector<2x7x128xf32> -> vector<2x8x128xf32>
    %cst_28 = arith.constant 0.000000e+00 : f32
    %60 = vector.broadcast %cst_28 : f32 to vector<2x1x128xf32>
    %61 = vector.extract_strided_slice %56 {offsets = [0, 1, 0], sizes = [2, 7, 128], strides = [1, 1, 1]} : vector<2x8x128xf32> to vector<2x7x128xf32>
    %62 = tpu.concatenate %61, %60 in 1 : vector<2x7x128xf32>, vector<2x1x128xf32> -> vector<2x8x128xf32>
    %63 = tpu.concatenate %59, %56, %62 in 2 : vector<2x8x128xf32>, vector<2x8x128xf32>, vector<2x8x128xf32> -> vector<2x8x384xf32>
    %64 = vector.shape_cast %63 : vector<2x8x384xf32> to vector<16x384xf32>
    %cst_29 = arith.constant dense<0.000000e+00> : vector<16x512xf32>
    %65 = tpu.matmul %64, %6, %cst_29 {dimension_numbers = #tpu.dot_dimension_numbers<[1], [0], [0], [1], [0, 0, 1, 1], [], []>} : vector<16x384xf32>, vector<384x512xf32>, vector<16x512xf32> -> vector<16x512xf32>
    %66 = math.absf %65 : vector<16x512xf32>
    %cst_30 = arith.constant 0.000000e+00 : f32
    %67 = vector.broadcast %cst_30 : f32 to vector<16x512xf32>
    %68 = arith.subf %67, %66 : vector<16x512xf32>
    %69 = math.exp %68 : vector<16x512xf32>
    %cst_31 = arith.constant 1.000000e+00 : f32
    %70 = vector.broadcast %cst_31 : f32 to vector<16x512xf32>
    %71 = arith.addf %70, %69 : vector<16x512xf32>
    %cst_32 = arith.constant 1.000000e+00 : f32
    %72 = vector.broadcast %cst_32 : f32 to vector<16x512xf32>
    %73 = arith.divf %72, %71 : vector<16x512xf32>
    %cst_33 = arith.constant 0.000000e+00 : f32
    %74 = vector.broadcast %cst_33 : f32 to vector<16x512xf32>
    %75 = arith.cmpf oge, %65, %74 : vector<16x512xf32>
    %cst_34 = arith.constant 1.000000e+00 : f32
    %76 = vector.broadcast %cst_34 : f32 to vector<16x512xf32>
    %77 = arith.subf %76, %73 : vector<16x512xf32>
    %78 = arith.select %75, %73, %77 : vector<16x512xi1>, vector<16x512xf32>
    %79 = vector.shape_cast %78 : vector<16x512xf32> to vector<2x8x512xf32>
    %80 = arith.addf %9, %0 : vector<2x8x512xf32>
    %81 = arith.addf %80, %12 : vector<2x8x512xf32>
    %cst_35 = arith.constant 0.333333343 : f32
    %82 = vector.broadcast %cst_35 : f32 to vector<2x8x512xf32>
    %83 = arith.mulf %81, %82 : vector<2x8x512xf32>
    %84 = arith.maximumf %21, %0 : vector<2x8x512xf32>
    %85 = arith.maximumf %84, %24 : vector<2x8x512xf32>
    %86 = arith.addf %15, %9 : vector<2x8x512xf32>
    %87 = arith.addf %86, %0 : vector<2x8x512xf32>
    %88 = arith.addf %87, %12 : vector<2x8x512xf32>
    %89 = arith.addf %88, %18 : vector<2x8x512xf32>
    %cst_36 = arith.constant 2.000000e-01 : f32
    %90 = vector.broadcast %cst_36 : f32 to vector<2x8x512xf32>
    %91 = arith.mulf %89, %90 : vector<2x8x512xf32>
    %92 = arith.maximumf %27, %21 : vector<2x8x512xf32>
    %93 = arith.maximumf %0, %24 : vector<2x8x512xf32>
    %94 = arith.maximumf %92, %93 : vector<2x8x512xf32>
    %95 = arith.maximumf %94, %30 : vector<2x8x512xf32>
    %96 = arith.addf %83, %85 : vector<2x8x512xf32>
    %97 = arith.mulf %96, %54 : vector<2x8x512xf32>
    %98 = arith.addf %91, %95 : vector<2x8x512xf32>
    %99 = arith.mulf %98, %79 : vector<2x8x512xf32>
    %100 = arith.addf %97, %99 : vector<2x8x512xf32>
    %cst_37 = arith.constant dense<0xFF800000> : vector<2x512xf32>
    %101 = vector.multi_reduction <maximumf>, %100, %cst_37 [1] : vector<2x8x512xf32> to vector<2x512xf32>
    %c0_38 = arith.constant 0 : index
    %c0_39 = arith.constant 0 : index
    %102 = vector.load %arg5[%c0_38, %c0_39] : memref<2x512xf32, #tpu.memory_space<vmem>>, vector<2x512xf32>
    tpu.vector_store %arg5[%c0_38, %c0_39], %101 {strides = array<i32>} : memref<2x512xf32, #tpu.memory_space<vmem>>, vector<2x512xf32>,
    return
  }
  func.func @transform_0(%arg0: i32) -> (i32, i32, i32) {
    %c0_i32 = arith.constant 0 : i32
    %c0_i32_0 = arith.constant 0 : i32
    %c0_i32_1 = arith.constant 0 : i32
    return %c0_i32, %c0_i32_0, %arg0 : i32, i32, i32
  }
  func.func @transform_1(%arg0: i32) -> (i32, i32, i32) {
    %c0_i32 = arith.constant 0 : i32
    %c0_i32_0 = arith.constant 0 : i32
    %c0_i32_1 = arith.constant 0 : i32
    return %arg0, %c0_i32, %c0_i32_0 : i32, i32, i32
  }
  func.func @transform_2(%arg0: i32) -> (i32, i32, i32) {
    %c0_i32 = arith.constant 0 : i32
    %c0_i32_0 = arith.constant 0 : i32
    %c0_i32_1 = arith.constant 0 : i32
    return %arg0, %c0_i32, %c0_i32_0 : i32, i32, i32
  }
  func.func @transform_3(%arg0: i32) -> (i32, i32, i32) {
    %c0_i32 = arith.constant 0 : i32
    %c0_i32_0 = arith.constant 0 : i32
    %c0_i32_1 = arith.constant 0 : i32
    return %arg0, %c0_i32, %c0_i32_0 : i32, i32, i32
  }
  func.func @transform_4(%arg0: i32) -> (i32, i32) {
    %c0_i32 = arith.constant 0 : i32
    %c0_i32_0 = arith.constant 0 : i32
    return %c0_i32, %arg0 : i32, i32
  }
}

</mosaic_0001>

<bundles_post_ra>
// kernel: tfa_forward_packed.1
= control target key start
LH: loop header
LB: loop body
LE: loop exit
PB: predicated region body
PF: predicated region fallthrough
CT: control target
= control target key end

     0   :  { %9 = vsyncpa [#allocation3], 0  ;;  %s3809_s0 = inlined_call_operand.vmem [shape: f32[2,8,512], index: 0, kind: input, shape index: {}]   ;;  %s3810_s1 = inlined_call_operand.hbm [shape: f32[1,1536,256], index: 1, kind: input, shape index: {}]   ;;  %s3811_s2 = inlined_call_operand.hbm [shape: f32[1,128,512], index: 2, kind: input, shape index: {}]   ;;  %s3812_s3 = inlined_call_operand.hbm [shape: f32[1,384,512], index: 3, kind: input, shape index: {}]   ;;  %s3813_s4 = inlined_call_operand.vmem [shape: f32[2,512], index: 4, kind: output, shape index: {}]  }
   0x1   :  { %10 = vsyncpa [#allocation5], 0  ;;  %s30_s17 = sshll.u32 %s3811_s2, 4  ;;  %s2644_s18 = smov [#allocation4]   ;;  %s31_s17 = int_to_ptr.hbm [resolvable:$true] %s30_s17 }
   0x2   :  { %s32_s19 = sshll.u32 %s2644_s18, 4  ;;  %s17_s22 = sshll.u32 %s3810_s1, 4  ;;  %s33_s19 = int_to_ptr.vmem [resolvable:$true] %s32_s19  ;;  %s18_s22 = int_to_ptr.hbm [resolvable:$true] %s17_s22 }
   0x3   :  { %s2645_s23 = smov 512   ;;  %s2646_s24 = smov 32  }
   0x4   :  { %38 = dma.hbm_to_vmem [thread:$0]  %s31_s17, 8192, %s33_s19, [#allocation5], %s2645_s23, %s2645_s23, %s2646_s24  }
   0x5   :  { %s2647_s25 = smov [#allocation2]   ;;  %s2648_s27 = smov 256  }
   0x6   :  { %s19_s26 = sshll.u32 %s2647_s25, 4  ;;  %s2649_s28 = smov 16   ;;  %s20_s26 = int_to_ptr.vmem [resolvable:$true] %s19_s26 }
   0x7   :  { %25 = dma.hbm_to_vmem [thread:$0]  %s18_s22, 49152, %s20_s26, [#allocation3], %s2648_s27, %s2648_s27, %s2649_s28  }
   0x8   :  { %s43_s30 = sshll.u32 %s3812_s3, 4  ;;  %s2650_s5 = smov [#allocation6]   ;;  %s44_s30 = int_to_ptr.hbm [resolvable:$true] %s43_s30 }
   0x9   :  { %s45_s6 = sshll.u32 %s2650_s5, 4  ;;  %s46_s6 = int_to_ptr.vmem [resolvable:$true] %s45_s6 }
   0xa   :  { %51 = dma.hbm_to_vmem [thread:$0]  %s44_s30, 24576, %s46_s6, [#allocation5], %s2645_s23, %s2645_s23, %s2646_s24  }
   0xb   :  { %2640 = dma.done.wait [#allocation3], 49152  }
   0xc   :  { %2641 = vsyncadd [#allocation3], 4294918144 }
   0xd   :  { %2642 = dma.done.wait [#allocation5], 32768  }
   0xe   :  { %2643 = vsyncadd [#allocation5], 4294934528  ;;  %v102_v0 = vld [vmem:[#allocation2 + $0xf0] sm:$0xff]  ;;  %v100_v2 = vld [vmem:[#allocation2 + $0xe0] sm:$0xff]  ;;  %vm736_vm0 = vcmask 1040384   ;;  %vm761_vm2 = vcmask 1046528  }
   0xf   :  { %v166_v1 = vld [vmem:[#allocation2 + $0x2f0] sm:$0xff]  ;;  %852 = vmatpush.msra.mxu0 %v102_v0  ;;  %v164_v4 = vld [vmem:[#allocation2 + $0x2e0] sm:$0xff]  ;;  %vm2704_vm1 = vmneg %vm736_vm0  ;;  %vm786_vm7 = vcmask 1041408  }
  0x10   :  { %898 = vmatpush.msra.mxu2 %v166_v1  ;;  %v134_v3 = vld [vmem:[#allocation2 + $0x1f0] sm:$0xff]  ;;  %v132_v7 = vld [vmem:[#allocation2 + $0x1e0] sm:$0xff] }
  0x11   :  { %v198_v5 = vld [vmem:[#allocation2 + $0x3f0] sm:$0xff]  ;;  %875 = vmatpush.msra.mxu1 %v134_v3  ;;  %853 = vmatpush.msra.mxu0 %v100_v2  ;;  %v196_v9 = vld [vmem:[#allocation2 + $0x3e0] sm:$0xff] }
  0x12   :  { %921 = vmatpush.msra.mxu3 %v198_v5  ;;  %v98_v6 = vld [vmem:[#allocation2 + $0xd0] sm:$0xff]  ;;  %899 = vmatpush.msra.mxu2 %v164_v4  ;;  %v96_v11 = vld [vmem:[#allocation2 + $0xc0] sm:$0xff] }
  0x13   :  { %v162_v8 = vld [vmem:[#allocation2 + $0x2d0] sm:$0xff]  ;;  %876 = vmatpush.msra.mxu1 %v132_v7  ;;  %v160_v12 = vld [vmem:[#allocation2 + $0x2c0] sm:$0xff]  ;;  %854 = vmatpush.msra.mxu0 %v98_v6 }
  0x14   :  { %v130_v10 = vld [vmem:[#allocation2 + $0x1d0] sm:$0xff]  ;;  %922 = vmatpush.msra.mxu3 %v196_v9  ;;  %900 = vmatpush.msra.mxu2 %v162_v8  ;;  %v128_v14 = vld [vmem:[#allocation2 + $0x1c0] sm:$0xff] }
  0x15   :  { %v194_v13 = vld [vmem:[#allocation2 + $0x3d0] sm:$0xff]  ;;  %v192_v15 = vld [vmem:[#allocation2 + $0x3c0] sm:$0xff]  ;;  %877 = vmatpush.msra.mxu1 %v130_v10  ;;  %855 = vmatpush.msra.mxu0 %v96_v11 }
  0x16   :  { %923 = vmatpush.msra.mxu3 %v194_v13  ;;  %v94_v16 = vld [vmem:[#allocation2 + $0xb0] sm:$0xff]  ;;  %901 = vmatpush.msra.mxu2 %v160_v12  ;;  %v92_v20 = vld [vmem:[#allocation2 + $0xa0] sm:$0xff] }
  0x17   :  { %v158_v17 = vld [vmem:[#allocation2 + $0x2b0] sm:$0xff]  ;;  %878 = vmatpush.msra.mxu1 %v128_v14  ;;  %v156_v21 = vld [vmem:[#allocation2 + $0x2a0] sm:$0xff]  ;;  %856 = vmatpush.msra.mxu0 %v94_v16 }
  0x18   :  { %v126_v18 = vld [vmem:[#allocation2 + $0x1b0] sm:$0xff]  ;;  %924 = vmatpush.msra.mxu3 %v192_v15  ;;  %902 = vmatpush.msra.mxu2 %v158_v17  ;;  %v124_v22 = vld [vmem:[#allocation2 + $0x1a0] sm:$0xff] }
  0x19   :  { %v190_v19 = vld [vmem:[#allocation2 + $0x3b0] sm:$0xff]  ;;  %v188_v23 = vld [vmem:[#allocation2 + $0x3a0] sm:$0xff]  ;;  %879 = vmatpush.msra.mxu1 %v126_v18  ;;  %857 = vmatpush.msra.mxu0 %v92_v20 }
  0x1a   :  { %925 = vmatpush.msra.mxu3 %v190_v19  ;;  %v90_v24 = vld [vmem:[#allocation2 + $0x90] sm:$0xff]  ;;  %903 = vmatpush.msra.mxu2 %v156_v21  ;;  %v88_v28 = vld [vmem:[#allocation2 + $0x80] sm:$0xff] }
  0x1b   :  { %v154_v25 = vld [vmem:[#allocation2 + $0x290] sm:$0xff]  ;;  %880 = vmatpush.msra.mxu1 %v124_v22  ;;  %v152_v29 = vld [vmem:[#allocation2 + $0x280] sm:$0xff]  ;;  %858 = vmatpush.msra.mxu0 %v90_v24 }
  0x1c   :  { %v122_v26 = vld [vmem:[#allocation2 + $0x190] sm:$0xff]  ;;  %926 = vmatpush.msra.mxu3 %v188_v23  ;;  %904 = vmatpush.msra.mxu2 %v154_v25  ;;  %v120_v30 = vld [vmem:[#allocation2 + $0x180] sm:$0xff] }
  0x1d   :  { %v186_v27 = vld [vmem:[#allocation2 + $0x390] sm:$0xff]  ;;  %v184_v31 = vld [vmem:[#allocation2 + $0x380] sm:$0xff]  ;;  %881 = vmatpush.msra.mxu1 %v122_v26  ;;  %859 = vmatpush.msra.mxu0 %v88_v28 }
  0x1e   :  { %927 = vmatpush.msra.mxu3 %v186_v27  ;;  %v86_v32 = vld [vmem:[#allocation2 + $0x70] sm:$0xff]  ;;  %905 = vmatpush.msra.mxu2 %v152_v29  ;;  %v84_v36 = vld [vmem:[#allocation2 + $0x60] sm:$0xff] }
  0x1f   :  { %v150_v33 = vld [vmem:[#allocation2 + $0x270] sm:$0xff]  ;;  %882 = vmatpush.msra.mxu1 %v120_v30  ;;  %v148_v37 = vld [vmem:[#allocation2 + $0x260] sm:$0xff]  ;;  %860 = vmatpush.msra.mxu0 %v86_v32 }
  0x20   :  { %v118_v34 = vld [vmem:[#allocation2 + $0x170] sm:$0xff]  ;;  %928 = vmatpush.msra.mxu3 %v184_v31  ;;  %906 = vmatpush.msra.mxu2 %v150_v33  ;;  %v116_v38 = vld [vmem:[#allocation2 + $0x160] sm:$0xff] }
  0x21   :  { %v182_v35 = vld [vmem:[#allocation2 + $0x370] sm:$0xff]  ;;  %v180_v39 = vld [vmem:[#allocation2 + $0x360] sm:$0xff]  ;;  %883 = vmatpush.msra.mxu1 %v118_v34  ;;  %861 = vmatpush.msra.mxu0 %v84_v36 }
  0x22   :  { %929 = vmatpush.msra.mxu3 %v182_v35  ;;  %v82_v40 = vld [vmem:[#allocation2 + $0x50] sm:$0xff]  ;;  %907 = vmatpush.msra.mxu2 %v148_v37  ;;  %v80_v44 = vld [vmem:[#allocation2 + $0x40] sm:$0xff] }
  0x23   :  { %v146_v41 = vld [vmem:[#allocation2 + $0x250] sm:$0xff]  ;;  %884 = vmatpush.msra.mxu1 %v116_v38  ;;  %v144_v45 = vld [vmem:[#allocation2 + $0x240] sm:$0xff]  ;;  %862 = vmatpush.msra.mxu0 %v82_v40 }
  0x24   :  { %v114_v42 = vld [vmem:[#allocation2 + $0x150] sm:$0xff]  ;;  %930 = vmatpush.msra.mxu3 %v180_v39  ;;  %908 = vmatpush.msra.mxu2 %v146_v41  ;;  %v112_v46 = vld [vmem:[#allocation2 + $0x140] sm:$0xff] }
  0x25   :  { %v178_v43 = vld [vmem:[#allocation2 + $0x350] sm:$0xff]  ;;  %v176_v47 = vld [vmem:[#allocation2 + $0x340] sm:$0xff]  ;;  %885 = vmatpush.msra.mxu1 %v114_v42  ;;  %863 = vmatpush.msra.mxu0 %v80_v44 }
  0x26   :  { %931 = vmatpush.msra.mxu3 %v178_v43  ;;  %v78_v48 = vld [vmem:[#allocation2 + $0x30] sm:$0xff]  ;;  %909 = vmatpush.msra.mxu2 %v144_v45  ;;  %v76_v52 = vld [vmem:[#allocation2 + $0x20] sm:$0xff]  ;;  %v2701_v45 = vld [vmem:[%s3809_s0 + $0x18] sm:$0xff] }
  0x27   :  { %v142_v49 = vld [vmem:[#allocation2 + $0x230] sm:$0xff]  ;;  %886 = vmatpush.msra.mxu1 %v112_v46  ;;  %v140_v53 = vld [vmem:[#allocation2 + $0x220] sm:$0xff]  ;;  %864 = vmatpush.msra.mxu0 %v78_v48 }
  0x28   :  { %v110_v50 = vld [vmem:[#allocation2 + $0x130] sm:$0xff]  ;;  %932 = vmatpush.msra.mxu3 %v176_v47  ;;  %910 = vmatpush.msra.mxu2 %v142_v49  ;;  %v108_v54 = vld [vmem:[#allocation2 + $0x120] sm:$0xff] }
  0x29   :  { %v174_v51 = vld [vmem:[#allocation2 + $0x330] sm:$0xff]  ;;  %v172_v55 = vld [vmem:[#allocation2 + $0x320] sm:$0xff]  ;;  %887 = vmatpush.msra.mxu1 %v110_v50  ;;  %865 = vmatpush.msra.mxu0 %v76_v52 }
  0x2a   :  { %933 = vmatpush.msra.mxu3 %v174_v51  ;;  %v74_v56 = vld [vmem:[#allocation2 + $0x10] sm:$0xff]  ;;  %911 = vmatpush.msra.mxu2 %v140_v53  ;;  %v72_v60 = vld [vmem:[#allocation2] sm:$0xff]  ;;  %v2714_v51 = vld [vmem:[%s3809_s0 + $0x8] sm:$0xff]  ;;  %v2717_v53 = vrot.slane %v2701_v45, 7 }
  0x2b   :  { %v138_v57 = vld [vmem:[#allocation2 + $0x210] sm:$0xff]  ;;  %888 = vmatpush.msra.mxu1 %v108_v54  ;;  %v136_v61 = vld [vmem:[#allocation2 + $0x200] sm:$0xff]  ;;  %866 = vmatpush.msra.mxu0 %v74_v56 }
  0x2c   :  { %v106_v58 = vld [vmem:[#allocation2 + $0x110] sm:$0xff]  ;;  %934 = vmatpush.msra.mxu3 %v172_v55  ;;  %912 = vmatpush.msra.mxu2 %v138_v57  ;;  %v104_v0 = vld [vmem:[#allocation2 + $0x100] sm:$0xff]  ;;  %v2723_v57 = vrot.slane %v2714_v51, 7 }
  0x2d   :  { %v170_v59 = vld [vmem:[#allocation2 + $0x310] sm:$0xff]  ;;  %889 = vmatpush.msra.mxu1 %v106_v58  ;;  %v168_v1 = vld [vmem:[#allocation2 + $0x300] sm:$0xff]  ;;  %867 = vmatpush.msra.mxu0 %v72_v60 }
  0x2e   :  { %v230_v62 = vld [vmem:[#allocation2 + $0x4f0] sm:$0xff]  ;;  %935 = vmatpush.msra.mxu3 %v170_v59  ;;  %913 = vmatpush.msra.mxu2 %v136_v61  ;;  %v228_v2 = vld [vmem:[#allocation2 + $0x4e0] sm:$0xff] }
  0x2f   :  { %v294_v63 = vld [vmem:[#allocation2 + $0x6f0] sm:$0xff]  ;;  %944 = vmatpush.msrb.mxu0 %v230_v62  ;;  %v292_v4 = vld [vmem:[#allocation2 + $0x6e0] sm:$0xff]  ;;  %890 = vmatpush.msra.mxu1 %v104_v0 }
  0x30   :  { %v262_v3 = vld [vmem:[#allocation2 + $0x5f0] sm:$0xff]  ;;  %990 = vmatpush.msrb.mxu2 %v294_v63  ;;  %936 = vmatpush.msra.mxu3 %v168_v1  ;;  %v260_v7 = vld [vmem:[#allocation2 + $0x5e0] sm:$0xff] }
  0x31   :  { %v326_v5 = vld [vmem:[#allocation2 + $0x7f0] sm:$0xff]  ;;  %945 = vmatpush.msrb.mxu0 %v228_v2  ;;  %967 = vmatpush.msrb.mxu1 %v262_v3  ;;  %v324_v9 = vld [vmem:[#allocation2 + $0x7e0] sm:$0xff] }
  0x32   :  { %v226_v6 = vld [vmem:[#allocation2 + $0x4d0] sm:$0xff]  ;;  %991 = vmatpush.msrb.mxu2 %v292_v4  ;;  %1013 = vmatpush.msrb.mxu3 %v326_v5  ;;  %v224_v10 = vld [vmem:[#allocation2 + $0x4c0] sm:$0xff] }
  0x33   :  { %v290_v8 = vld [vmem:[#allocation2 + $0x6d0] sm:$0xff]  ;;  %946 = vmatpush.msrb.mxu0 %v226_v6  ;;  %968 = vmatpush.msrb.mxu1 %v260_v7  ;;  %v288_v12 = vld [vmem:[#allocation2 + $0x6c0] sm:$0xff]  ;;  %v2750_v6 = vld [vmem:[%s3809_s0 + $0x38] sm:$0xff] }
  0x34   :  { %v258_v11 = vld [vmem:[#allocation2 + $0x5d0] sm:$0xff]  ;;  %992 = vmatpush.msrb.mxu2 %v290_v8  ;;  %1014 = vmatpush.msrb.mxu3 %v324_v9  ;;  %v256_v15 = vld [vmem:[#allocation2 + $0x5c0] sm:$0xff] }
  0x35   :  { %v322_v13 = vld [vmem:[#allocation2 + $0x7d0] sm:$0xff]  ;;  %947 = vmatpush.msrb.mxu0 %v224_v10  ;;  %969 = vmatpush.msrb.mxu1 %v258_v11  ;;  %v320_v17 = vld [vmem:[#allocation2 + $0x7c0] sm:$0xff]  ;;  %v2758_v11 = vld [vmem:[%s3809_s0 + $0x28] sm:$0xff] }
  0x36   :  { %v222_v14 = vld [vmem:[#allocation2 + $0x4b0] sm:$0xff]  ;;  %993 = vmatpush.msrb.mxu2 %v288_v12  ;;  %1015 = vmatpush.msrb.mxu3 %v322_v13  ;;  %v220_v18 = vld [vmem:[#allocation2 + $0x4a0] sm:$0xff]  ;;  %v2761_v13 = vrot.slane %v2750_v6, 7 }
  0x37   :  { %v286_v16 = vld [vmem:[#allocation2 + $0x6b0] sm:$0xff]  ;;  %948 = vmatpush.msrb.mxu0 %v222_v14  ;;  %970 = vmatpush.msrb.mxu1 %v256_v15  ;;  %v284_v20 = vld [vmem:[#allocation2 + $0x6a0] sm:$0xff] }
  0x38   :  { %v254_v19 = vld [vmem:[#allocation2 + $0x5b0] sm:$0xff]  ;;  %994 = vmatpush.msrb.mxu2 %v286_v16  ;;  %1016 = vmatpush.msrb.mxu3 %v320_v17  ;;  %v252_v23 = vld [vmem:[#allocation2 + $0x5a0] sm:$0xff]  ;;  %v2767_v17 = vrot.slane %v2758_v11, 7 }
  0x39   :  { %v318_v21 = vld [vmem:[#allocation2 + $0x7b0] sm:$0xff]  ;;  %949 = vmatpush.msrb.mxu0 %v220_v18  ;;  %971 = vmatpush.msrb.mxu1 %v254_v19  ;;  %v316_v25 = vld [vmem:[#allocation2 + $0x7a0] sm:$0xff] }
  0x3a   :  { %v218_v22 = vld [vmem:[#allocation2 + $0x490] sm:$0xff]  ;;  %995 = vmatpush.msrb.mxu2 %v284_v20  ;;  %1017 = vmatpush.msrb.mxu3 %v318_v21  ;;  %v216_v26 = vld [vmem:[#allocation2 + $0x480] sm:$0xff] }
  0x3b   :  { %v282_v24 = vld [vmem:[#allocation2 + $0x690] sm:$0xff]  ;;  %950 = vmatpush.msrb.mxu0 %v218_v22  ;;  %972 = vmatpush.msrb.mxu1 %v252_v23  ;;  %v280_v28 = vld [vmem:[#allocation2 + $0x680] sm:$0xff] }
  0x3c   :  { %v250_v27 = vld [vmem:[#allocation2 + $0x590] sm:$0xff]  ;;  %996 = vmatpush.msrb.mxu2 %v282_v24  ;;  %1018 = vmatpush.msrb.mxu3 %v316_v25  ;;  %v248_v31 = vld [vmem:[#allocation2 + $0x580] sm:$0xff] }
  0x3d   :  { %v314_v29 = vld [vmem:[#allocation2 + $0x790] sm:$0xff]  ;;  %951 = vmatpush.msrb.mxu0 %v216_v26  ;;  %973 = vmatpush.msrb.mxu1 %v250_v27  ;;  %v312_v33 = vld [vmem:[#allocation2 + $0x780] sm:$0xff] }
  0x3e   :  { %v214_v30 = vld [vmem:[#allocation2 + $0x470] sm:$0xff]  ;;  %997 = vmatpush.msrb.mxu2 %v280_v28  ;;  %1019 = vmatpush.msrb.mxu3 %v314_v29  ;;  %v212_v34 = vld [vmem:[#allocation2 + $0x460] sm:$0xff] }
  0x3f   :  { %v278_v32 = vld [vmem:[#allocation2 + $0x670] sm:$0xff]  ;;  %952 = vmatpush.msrb.mxu0 %v214_v30  ;;  %974 = vmatpush.msrb.mxu1 %v248_v31  ;;  %v276_v37 = vld [vmem:[#allocation2 + $0x660] sm:$0xff] }
  0x40   :  { %v246_v35 = vld [vmem:[#allocation2 + $0x570] sm:$0xff]  ;;  %998 = vmatpush.msrb.mxu2 %v278_v32  ;;  %1020 = vmatpush.msrb.mxu3 %v312_v33  ;;  %v244_v40 = vld [vmem:[#allocation2 + $0x560] sm:$0xff] }
  0x41   :  { %v2688_v36 = vld [vmem:[%s3809_s0 + $0x10] sm:$0xff]  ;;  %v2693_v41 = vld [vmem:[%s3809_s0] sm:$0xff]  ;;  %953 = vmatpush.msrb.mxu0 %v212_v34  ;;  %975 = vmatpush.msrb.mxu1 %v246_v35 }
  0x42   :  { %v310_v38 = vld [vmem:[#allocation2 + $0x770] sm:$0xff]  ;;  %v308_v43 = vld [vmem:[#allocation2 + $0x760] sm:$0xff]  ;;  %v2696_v44 = vrot.slane %v2688_v36, 7  ;;  %999 = vmatpush.msrb.mxu2 %v276_v37  ;;  %v2709_v50 = vrot.slane %v2693_v41, 7  ;;  %2422 = vmatmul.msk.f32.vlgmr.msra.gmra.mxu3 %vm2704_vm1, %v2717_v53 }
  0x43   :  { %v210_v39 = vld [vmem:[#allocation2 + $0x450] sm:$0xff]  ;;  %1021 = vmatpush.msrb.mxu3 %v310_v38  ;;  %v208_v47 = vld [vmem:[#allocation2 + $0x440] sm:$0xff]  ;;  %976 = vmatpush.msrb.mxu1 %v244_v40 }
  0x44   :  { %v274_v42 = vld [vmem:[#allocation2 + $0x650] sm:$0xff]  ;;  %954 = vmatpush.msrb.mxu0 %v210_v39  ;;  %v272_v49 = vld [vmem:[#allocation2 + $0x640] sm:$0xff]  ;;  %2418 = vmatmul.msk.f32.vlgmr.msra.gmra.mxu2 %vm2704_vm1, %v2696_v44 }
  0x45   :  { %v242_v48 = vld [vmem:[#allocation2 + $0x550] sm:$0xff]  ;;  %1000 = vmatpush.msrb.mxu2 %v274_v42  ;;  %1022 = vmatpush.msrb.mxu3 %v308_v43  ;;  %v240_v55 = vld [vmem:[#allocation2 + $0x540] sm:$0xff] }
  0x46   :  { %v306_v52 = vld [vmem:[#allocation2 + $0x750] sm:$0xff]  ;;  %955 = vmatpush.msrb.mxu0 %v208_v47  ;;  %977 = vmatpush.msrb.mxu1 %v242_v48  ;;  %v304_v58 = vld [vmem:[#allocation2 + $0x740] sm:$0xff] }
  0x47   :  { %v206_v54 = vld [vmem:[#allocation2 + $0x430] sm:$0xff]  ;;  %1001 = vmatpush.msrb.mxu2 %v272_v49  ;;  %1023 = vmatpush.msrb.mxu3 %v306_v52  ;;  %v204_v59 = vld [vmem:[#allocation2 + $0x420] sm:$0xff] }
  0x48   :  { %v270_v56 = vld [vmem:[#allocation2 + $0x630] sm:$0xff]  ;;  %2410 = vmatmul.msk.f32.vlgmr.msra.gmra.mxu0 %vm2704_vm1, %v2709_v50  ;;  %978 = vmatpush.msrb.mxu1 %v240_v55  ;;  %v268_v62 = vld [vmem:[#allocation2 + $0x620] sm:$0xff] }
  0x49   :  { %956 = vmatpush.msrb.mxu0 %v206_v54  ;;  %v238_v60 = vld [vmem:[#allocation2 + $0x530] sm:$0xff]  ;;  %1002 = vmatpush.msrb.mxu2 %v270_v56  ;;  %v236_v1 = vld [vmem:[#allocation2 + $0x520] sm:$0xff] }
  0x4a   :  { %v2734_v61 = vld [vmem:[%s3809_s0 + $0x30] sm:$0xff]  ;;  %1024 = vmatpush.msrb.mxu3 %v304_v58  ;;  %2414 = vmatmul.msk.f32.vlgmr.msra.gmra.mxu1 %vm2704_vm1, %v2723_v57  ;;  %v2742_v2 = vld [vmem:[%s3809_s0 + $0x20] sm:$0xff] }
  0x4b   :  { %v302_v63 = vld [vmem:[#allocation2 + $0x730] sm:$0xff]  ;;  %957 = vmatpush.msrb.mxu0 %v204_v59  ;;  %979 = vmatpush.msrb.mxu1 %v238_v60  ;;  %v300_v4 = vld [vmem:[#allocation2 + $0x720] sm:$0xff]  ;;  %v2745_v5 = vrot.slane %v2734_v61, 7  ;;  %v2753_v10 = vrot.slane %v2742_v2, 7 }
  0x4c   :  { %v202_v0 = vld [vmem:[#allocation2 + $0x410] sm:$0xff]  ;;  %1003 = vmatpush.msrb.mxu2 %v268_v62  ;;  %1025 = vmatpush.msrb.mxu3 %v302_v63  ;;  %v200_v7 = vld [vmem:[#allocation2 + $0x400] sm:$0xff] }
  0x4d   :  { %v266_v3 = vld [vmem:[#allocation2 + $0x610] sm:$0xff]  ;;  %958 = vmatpush.msrb.mxu0 %v202_v0  ;;  %980 = vmatpush.msrb.mxu1 %v236_v1  ;;  %v264_v9 = vld [vmem:[#allocation2 + $0x600] sm:$0xff] }
  0x4e   :  { %v234_v8 = vld [vmem:[#allocation2 + $0x510] sm:$0xff]  ;;  %1004 = vmatpush.msrb.mxu2 %v266_v3  ;;  %1026 = vmatpush.msrb.mxu3 %v300_v4  ;;  %v232_v16 = vld [vmem:[#allocation2 + $0x500] sm:$0xff] }
  0x4f   :  { %v298_v12 = vld [vmem:[#allocation2 + $0x710] sm:$0xff]  ;;  %2420 = vmatmul.msk.f32.gmra.mxu2 %vm2704_vm1, %v2745_v5  ;;  %959 = vmatpush.msrb.mxu0 %v200_v7  ;;  %v296_v18 = vld [vmem:[#allocation2 + $0x700] sm:$0xff] }
  0x50   :  { %v358_v14 = vld [vmem:[#allocation2 + $0x8f0] sm:$0xff]  ;;  %981 = vmatpush.msrb.mxu1 %v234_v8  ;;  %1005 = vmatpush.msrb.mxu2 %v264_v9  ;;  %v356_v19 = vld [vmem:[#allocation2 + $0x8e0] sm:$0xff] }
  0x51   :  { %v422_v15 = vld [vmem:[#allocation2 + $0xaf0] sm:$0xff]  ;;  %1027 = vmatpush.msrb.mxu3 %v298_v12  ;;  %2412 = vmatmul.msk.f32.gmra.mxu0 %vm2704_vm1, %v2753_v10  ;;  %v420_v21 = vld [vmem:[#allocation2 + $0xae0] sm:$0xff] }
  0x52   :  { %2424 = vmatmul.msk.f32.gmra.mxu3 %vm2704_vm1, %v2761_v13  ;;  %1036 = vmatpush.msra.mxu0 %v358_v14  ;;  %v390_v20 = vld [vmem:[#allocation2 + $0x9f0] sm:$0xff]  ;;  %v388_v24 = vld [vmem:[#allocation2 + $0x9e0] sm:$0xff] }
  0x53   :  { %1082 = vmatpush.msra.mxu2 %v422_v15  ;;  %982 = vmatpush.msrb.mxu1 %v232_v16  ;;  %v454_v22 = vld [vmem:[#allocation2 + $0xbf0] sm:$0xff]  ;;  %v452_v26 = vld [vmem:[#allocation2 + $0xbe0] sm:$0xff] }
  0x54   :  { %1028 = vmatpush.msrb.mxu3 %v296_v18  ;;  %2416 = vmatmul.msk.f32.gmra.mxu1 %vm2704_vm1, %v2767_v17  ;;  %v354_v23 = vld [vmem:[#allocation2 + $0x8d0] sm:$0xff]  ;;  %v352_v27 = vld [vmem:[#allocation2 + $0x8c0] sm:$0xff] }
  0x55   :  { %1037 = vmatpush.msra.mxu0 %v356_v19  ;;  %1059 = vmatpush.msra.mxu1 %v390_v20  ;;  %v418_v25 = vld [vmem:[#allocation2 + $0xad0] sm:$0xff]  ;;  %v416_v29 = vld [vmem:[#allocation2 + $0xac0] sm:$0xff] }
  0x56   :  { %1083 = vmatpush.msra.mxu2 %v420_v21  ;;  %1105 = vmatpush.msra.mxu3 %v454_v22  ;;  %v386_v28 = vld [vmem:[#allocation2 + $0x9d0] sm:$0xff]  ;;  %v384_v32 = vld [vmem:[#allocation2 + $0x9c0] sm:$0xff] }
  0x57   :  { %1038 = vmatpush.msra.mxu0 %v354_v23  ;;  %1060 = vmatpush.msra.mxu1 %v388_v24  ;;  %v450_v30 = vld [vmem:[#allocation2 + $0xbd0] sm:$0xff]  ;;  %v448_v34 = vld [vmem:[#allocation2 + $0xbc0] sm:$0xff] }
  0x58   :  { %1084 = vmatpush.msra.mxu2 %v418_v25  ;;  %1106 = vmatpush.msra.mxu3 %v452_v26  ;;  %v350_v31 = vld [vmem:[#allocation2 + $0x8b0] sm:$0xff]  ;;  %v348_v35 = vld [vmem:[#allocation2 + $0x8a0] sm:$0xff] }
  0x59   :  { %1006 = vmatmul.f32.vlgmr.msrb.gmra.mxu2 %v2688_v36  ;;  %1039 = vmatpush.msra.mxu0 %v352_v27  ;;  %v414_v33 = vld [vmem:[#allocation2 + $0xab0] sm:$0xff]  ;;  %v412_v38 = vld [vmem:[#allocation2 + $0xaa0] sm:$0xff] }
  0x5a   :  { %1061 = vmatpush.msra.mxu1 %v386_v28  ;;  %1085 = vmatpush.msra.mxu2 %v416_v29  ;;  %v382_v37 = vld [vmem:[#allocation2 + $0x9b0] sm:$0xff]  ;;  %v380_v42 = vld [vmem:[#allocation2 + $0x9a0] sm:$0xff] }
  0x5b   :  { %1107 = vmatpush.msra.mxu3 %v450_v30  ;;  %960 = vmatmul.f32.vlgmr.msrb.gmra.mxu0 %v2693_v41  ;;  %v446_v39 = vld [vmem:[#allocation2 + $0xbb0] sm:$0xff]  ;;  %v444_v47 = vld [vmem:[#allocation2 + $0xba0] sm:$0xff] }
  0x5c   :  { %1029 = vmatmul.f32.vlgmr.msrb.gmra.mxu3 %v2701_v45  ;;  %1040 = vmatpush.msra.mxu0 %v350_v31  ;;  %v346_v40 = vld [vmem:[#allocation2 + $0x890] sm:$0xff]  ;;  %v344_v48 = vld [vmem:[#allocation2 + $0x880] sm:$0xff] }
  0x5d   :  { %1062 = vmatpush.msra.mxu1 %v384_v32  ;;  %1086 = vmatpush.msra.mxu2 %v414_v33  ;;  %v410_v43 = vld [vmem:[#allocation2 + $0xa90] sm:$0xff]  ;;  %v408_v52 = vld [vmem:[#allocation2 + $0xa80] sm:$0xff]  ;;  %v2787_v32 = vrot.slane %v2693_v41, 1  ;;  %v2790_v33 = vrot.slane %v2688_v36, 1  ;;  %v2796_v41 = vrot.slane %v2701_v45, 1  ;;  %v101_v36 = vld [vmem:[#allocation2 + $0xe8] sm:$0xff] }
  0x5e   :  { %1108 = vmatpush.msra.mxu3 %v448_v34  ;;  %983 = vmatmul.f32.vlgmr.msrb.gmra.mxu1 %v2714_v51  ;;  %v378_v49 = vld [vmem:[#allocation2 + $0x990] sm:$0xff]  ;;  %v376_v56 = vld [vmem:[#allocation2 + $0x980] sm:$0xff]  ;;  %v103_v34 = vld [vmem:[#allocation2 + $0xf8] sm:$0xff] }
  0x5f   :  { %1041 = vmatpush.msra.mxu0 %v348_v35  ;;  %1063 = vmatpush.msra.mxu1 %v382_v37  ;;  %v442_v54 = vld [vmem:[#allocation2 + $0xb90] sm:$0xff]  ;;  %v440_v59 = vld [vmem:[#allocation2 + $0xb80] sm:$0xff]  ;;  %v167_v35 = vld [vmem:[#allocation2 + $0x2f8] sm:$0xff] }
  0x60   :  { %1087 = vmatpush.msra.mxu2 %v412_v38  ;;  %1109 = vmatpush.msra.mxu3 %v446_v39  ;;  %v342_v55 = vld [vmem:[#allocation2 + $0x870] sm:$0xff]  ;;  %v340_v60 = vld [vmem:[#allocation2 + $0x860] sm:$0xff]  ;;  %v2793_v39 = vrot.slane %v2714_v51, 1  ;;  %v99_v45 = vld [vmem:[#allocation2 + $0xd8] sm:$0xff] }
  0x61   :  { %1042 = vmatpush.msra.mxu0 %v346_v40  ;;  %1064 = vmatpush.msra.mxu1 %v380_v42  ;;  %v406_v58 = vld [vmem:[#allocation2 + $0xa70] sm:$0xff]  ;;  %v404_v63 = vld [vmem:[#allocation2 + $0xa60] sm:$0xff]  ;;  %v135_v40 = vld [vmem:[#allocation2 + $0x1f8] sm:$0xff] }
  0x62   :  { %1088 = vmatpush.msra.mxu2 %v410_v43  ;;  %1110 = vmatpush.msra.mxu3 %v444_v47  ;;  %v374_v62 = vld [vmem:[#allocation2 + $0x970] sm:$0xff]  ;;  %v372_v3 = vld [vmem:[#allocation2 + $0x960] sm:$0xff]  ;;  %v165_v42 = vld [vmem:[#allocation2 + $0x2e8] sm:$0xff] }
  0x63   :  { %1043 = vmatpush.msra.mxu0 %v344_v48  ;;  %1065 = vmatpush.msra.mxu1 %v378_v49  ;;  %v438_v0 = vld [vmem:[#allocation2 + $0xb70] sm:$0xff]  ;;  %v436_v7 = vld [vmem:[#allocation2 + $0xb60] sm:$0xff]  ;;  %v199_v43 = vld [vmem:[#allocation2 + $0x3f8] sm:$0xff] }
  0x64   :  { %1089 = vmatpush.msra.mxu2 %v408_v52  ;;  %1111 = vmatpush.msra.mxu3 %v442_v54  ;;  %v338_v1 = vld [vmem:[#allocation2 + $0x850] sm:$0xff]  ;;  %v336_v8 = vld [vmem:[#allocation2 + $0x840] sm:$0xff]  ;;  %v133_v51 = vld [vmem:[#allocation2 + $0x1e8] sm:$0xff] }
  0x65   :  { %1044 = vmatpush.msra.mxu0 %v342_v55  ;;  %1066 = vmatpush.msra.mxu1 %v376_v56  ;;  %v402_v4 = vld [vmem:[#allocation2 + $0xa50] sm:$0xff]  ;;  %v400_v12 = vld [vmem:[#allocation2 + $0xa40] sm:$0xff]  ;;  %v163_v47 = vld [vmem:[#allocation2 + $0x2d8] sm:$0xff]  ;;  %v2807_v56 = vrot.slane %v2742_v2, 1 }
  0x66   :  { %1090 = vmatpush.msra.mxu2 %v406_v58  ;;  %1112 = vmatpush.msra.mxu3 %v440_v59  ;;  %v370_v9 = vld [vmem:[#allocation2 + $0x950] sm:$0xff]  ;;  %v368_v16 = vld [vmem:[#allocation2 + $0x940] sm:$0xff]  ;;  %v197_v48 = vld [vmem:[#allocation2 + $0x3e8] sm:$0xff]  ;;  %v2810_v58 = vrot.slane %v2734_v61, 1 }
  0x67   :  { %1045 = vmatpush.msra.mxu0 %v340_v60  ;;  %1067 = vmatpush.msra.mxu1 %v374_v62  ;;  %v434_v14 = vld [vmem:[#allocation2 + $0xb50] sm:$0xff]  ;;  %v432_v19 = vld [vmem:[#allocation2 + $0xb40] sm:$0xff]  ;;  %v97_v49 = vld [vmem:[#allocation2 + $0xc8] sm:$0xff] }
  0x68   :  { %1091 = vmatpush.msra.mxu2 %v404_v63  ;;  %1113 = vmatpush.msra.mxu3 %v438_v0  ;;  %v334_v15 = vld [vmem:[#allocation2 + $0x830] sm:$0xff]  ;;  %v332_v20 = vld [vmem:[#allocation2 + $0x820] sm:$0xff]  ;;  %v131_v52 = vld [vmem:[#allocation2 + $0x1d8] sm:$0xff]  ;;  %v2813_v0 = vrot.slane %v2758_v11, 1 }
  0x69   :  { %1046 = vmatpush.msra.mxu0 %v338_v1  ;;  %1068 = vmatpush.msra.mxu1 %v372_v3  ;;  %v398_v18 = vld [vmem:[#allocation2 + $0xa30] sm:$0xff]  ;;  %v396_v22 = vld [vmem:[#allocation2 + $0xa20] sm:$0xff]  ;;  %v161_v54 = vld [vmem:[#allocation2 + $0x2c8] sm:$0xff]  ;;  %v2816_v1 = vrot.slane %v2750_v6, 1 }
  0x6a   :  { %1092 = vmatpush.msra.mxu2 %v402_v4  ;;  %1114 = vmatpush.msra.mxu3 %v436_v7  ;;  %v366_v21 = vld [vmem:[#allocation2 + $0x930] sm:$0xff]  ;;  %v364_v25 = vld [vmem:[#allocation2 + $0x920] sm:$0xff]  ;;  %v195_v55 = vld [vmem:[#allocation2 + $0x3d8] sm:$0xff] }
  0x6b   :  { %1047 = vmatpush.msra.mxu0 %v336_v8  ;;  %1069 = vmatpush.msra.mxu1 %v370_v9  ;;  %v430_v23 = vld [vmem:[#allocation2 + $0xb30] sm:$0xff]  ;;  %v428_v27 = vld [vmem:[#allocation2 + $0xb20] sm:$0xff]  ;;  %v95_v59 = vld [vmem:[#allocation2 + $0xb8] sm:$0xff] }
  0x6c   :  { %1093 = vmatpush.msra.mxu2 %v400_v12  ;;  %1115 = vmatpush.msra.mxu3 %v434_v14  ;;  %v330_v24 = vld [vmem:[#allocation2 + $0x810] sm:$0xff]  ;;  %v328_v28 = vld [vmem:[#allocation2 + $0x800] sm:$0xff]  ;;  %v129_v60 = vld [vmem:[#allocation2 + $0x1c8] sm:$0xff] }
  0x6d   :  { %963 = vmatmul.f32.gmra.mxu0 %v2742_v2  ;;  %1009 = vmatmul.f32.gmra.mxu2 %v2734_v61  ;;  %v394_v26 = vld [vmem:[#allocation2 + $0xa10] sm:$0xff]  ;;  %v392_v30 = vld [vmem:[#allocation2 + $0xa00] sm:$0xff]  ;;  %v159_v62 = vld [vmem:[#allocation2 + $0x2b8] sm:$0xff] }
  0x6e   :  { %1048 = vmatpush.msra.mxu0 %v334_v15  ;;  %1070 = vmatpush.msra.mxu1 %v368_v16  ;;  %v362_v29 = vld [vmem:[#allocation2 + $0x910] sm:$0xff]  ;;  %v360_v37 = vld [vmem:[#allocation2 + $0x900] sm:$0xff]  ;;  %v193_v63 = vld [vmem:[#allocation2 + $0x3c8] sm:$0xff] }
  0x6f   :  { %1094 = vmatpush.msra.mxu2 %v398_v18  ;;  %1116 = vmatpush.msra.mxu3 %v432_v19  ;;  %v426_v31 = vld [vmem:[#allocation2 + $0xb10] sm:$0xff]  ;;  %v424_v38 = vld [vmem:[#allocation2 + $0xb00] sm:$0xff]  ;;  %v93_v61 = vld [vmem:[#allocation2 + $0xa8] sm:$0xff] }
  0x70   :  { %986 = vmatmul.f32.gmra.mxu1 %v2758_v11  ;;  %1032 = vmatmul.f32.gmra.mxu3 %v2750_v6  ;;  %v127_v2 = vld [vmem:[#allocation2 + $0x1b8] sm:$0xff]  ;;  %v157_v3 = vld [vmem:[#allocation2 + $0x2a8] sm:$0xff] }
  0x71   :  { %1049 = vmatpush.msra.mxu0 %v332_v20  ;;  %1071 = vmatpush.msra.mxu1 %v366_v21  ;;  %v191_v4 = vld [vmem:[#allocation2 + $0x3b8] sm:$0xff]  ;;  %v125_v11 = vld [vmem:[#allocation2 + $0x1a8] sm:$0xff] }
  0x72   :  { %1095 = vmatpush.msra.mxu2 %v396_v22  ;;  %1117 = vmatpush.msra.mxu3 %v430_v23  ;;  %v91_v6 = vld [vmem:[#allocation2 + $0x98] sm:$0xff]  ;;  %v189_v8 = vld [vmem:[#allocation2 + $0x3a8] sm:$0xff] }
  0x73   :  { %1050 = vmatpush.msra.mxu0 %v330_v24  ;;  %1072 = vmatpush.msra.mxu1 %v364_v25  ;;  %v155_v7 = vld [vmem:[#allocation2 + $0x298] sm:$0xff]  ;;  %v89_v9 = vld [vmem:[#allocation2 + $0x88] sm:$0xff] }
  0x74   :  { %1096 = vmatpush.msra.mxu2 %v394_v26  ;;  %1118 = vmatpush.msra.mxu3 %v428_v27  ;;  %v123_v12 = vld [vmem:[#allocation2 + $0x198] sm:$0xff]  ;;  %v153_v14 = vld [vmem:[#allocation2 + $0x288] sm:$0xff] }
  0x75   :  { %1051 = vmatpush.msra.mxu0 %v328_v28  ;;  %1073 = vmatpush.msra.mxu1 %v362_v29  ;;  %v187_v15 = vld [vmem:[#allocation2 + $0x398] sm:$0xff]  ;;  %v121_v18 = vld [vmem:[#allocation2 + $0x188] sm:$0xff] }
  0x76   :  { %1097 = vmatpush.msra.mxu2 %v392_v30  ;;  %1119 = vmatpush.msra.mxu3 %v426_v31  ;;  %v87_v16 = vld [vmem:[#allocation2 + $0x78] sm:$0xff]  ;;  %v185_v20 = vld [vmem:[#allocation2 + $0x388] sm:$0xff] }
  0x77   :  { %2425 = vmatmul.msk.f32.vlgmr.msra.gmra.mxu0 %vm761_vm2, %v2787_v32  ;;  %2429 = vmatmul.msk.f32.vlgmr.msra.gmra.mxu2 %vm761_vm2, %v2790_v33  ;;  %v151_v19 = vld [vmem:[#allocation2 + $0x278] sm:$0xff]  ;;  %v85_v21 = vld [vmem:[#allocation2 + $0x68] sm:$0xff] }
  0x78   :  { %1128 = vmatpush.msrb.mxu0 %v103_v34  ;;  %1174 = vmatpush.msrb.mxu2 %v167_v35  ;;  %v119_v22 = vld [vmem:[#allocation2 + $0x178] sm:$0xff]  ;;  %v149_v23 = vld [vmem:[#allocation2 + $0x268] sm:$0xff] }
  0x79   :  { %1074 = vmatpush.msra.mxu1 %v360_v37  ;;  %1120 = vmatpush.msra.mxu3 %v424_v38  ;;  %v183_v24 = vld [vmem:[#allocation2 + $0x378] sm:$0xff]  ;;  %v117_v26 = vld [vmem:[#allocation2 + $0x168] sm:$0xff] }
  0x7a   :  { %2427 = vmatmul.msk.f32.vlgmr.msra.gmra.mxu1 %vm761_vm2, %v2793_v39  ;;  %2431 = vmatmul.msk.f32.vlgmr.msra.gmra.mxu3 %vm761_vm2, %v2796_v41  ;;  %v83_v25 = vld [vmem:[#allocation2 + $0x58] sm:$0xff]  ;;  %v181_v28 = vld [vmem:[#allocation2 + $0x368] sm:$0xff] }
  0x7b   :  { %1129 = vmatpush.msrb.mxu0 %v101_v36  ;;  %1151 = vmatpush.msrb.mxu1 %v135_v40  ;;  %v147_v27 = vld [vmem:[#allocation2 + $0x258] sm:$0xff]  ;;  %v81_v29 = vld [vmem:[#allocation2 + $0x48] sm:$0xff] }
  0x7c   :  { %1175 = vmatpush.msrb.mxu2 %v165_v42  ;;  %1197 = vmatpush.msrb.mxu3 %v199_v43  ;;  %v115_v30 = vld [vmem:[#allocation2 + $0x158] sm:$0xff]  ;;  %v145_v31 = vld [vmem:[#allocation2 + $0x248] sm:$0xff] }
  0x7d   :  { %1130 = vmatpush.msrb.mxu0 %v99_v45  ;;  %1152 = vmatpush.msrb.mxu1 %v133_v51  ;;  %v179_v34 = vld [vmem:[#allocation2 + $0x358] sm:$0xff]  ;;  %v113_v37 = vld [vmem:[#allocation2 + $0x148] sm:$0xff] }
  0x7e   :  { %1176 = vmatpush.msrb.mxu2 %v163_v47  ;;  %1198 = vmatpush.msrb.mxu3 %v197_v48  ;;  %v79_v35 = vld [vmem:[#allocation2 + $0x38] sm:$0xff]  ;;  %v177_v36 = vld [vmem:[#allocation2 + $0x348] sm:$0xff] }
  0x7f   :  { %1131 = vmatpush.msrb.mxu0 %v97_v49  ;;  %1153 = vmatpush.msrb.mxu1 %v131_v52  ;;  %v143_v38 = vld [vmem:[#allocation2 + $0x238] sm:$0xff]  ;;  %v77_v40 = vld [vmem:[#allocation2 + $0x28] sm:$0xff] }
  0x80   :  { %1177 = vmatpush.msrb.mxu2 %v161_v54  ;;  %1199 = vmatpush.msrb.mxu3 %v195_v55  ;;  %v111_v42 = vld [vmem:[#allocation2 + $0x138] sm:$0xff]  ;;  %v141_v43 = vld [vmem:[#allocation2 + $0x228] sm:$0xff] }
  0x81   :  { %2426 = vmatmul.msk.f32.gmra.mxu0 %vm761_vm2, %v2807_v56  ;;  %2430 = vmatmul.msk.f32.gmra.mxu2 %vm761_vm2, %v2810_v58  ;;  %v175_v45 = vld [vmem:[#allocation2 + $0x338] sm:$0xff]  ;;  %v109_v47 = vld [vmem:[#allocation2 + $0x128] sm:$0xff] }
  0x82   :  { %1132 = vmatpush.msrb.mxu0 %v95_v59  ;;  %1154 = vmatpush.msrb.mxu1 %v129_v60  ;;  %v75_v51 = vld [vmem:[#allocation2 + $0x18] sm:$0xff]  ;;  %v173_v49 = vld [vmem:[#allocation2 + $0x328] sm:$0xff] }
  0x83   :  { %1178 = vmatpush.msrb.mxu2 %v159_v62  ;;  %1200 = vmatpush.msrb.mxu3 %v193_v63  ;;  %v139_v48 = vld [vmem:[#allocation2 + $0x218] sm:$0xff]  ;;  %v73_v52 = vld [vmem:[#allocation2 + $0x8] sm:$0xff] }
  0x84   :  { %2428 = vmatmul.msk.f32.gmra.mxu1 %vm761_vm2, %v2813_v0  ;;  %2432 = vmatmul.msk.f32.gmra.mxu3 %vm761_vm2, %v2816_v1  ;;  %v107_v54 = vld [vmem:[#allocation2 + $0x118] sm:$0xff]  ;;  %v137_v55 = vld [vmem:[#allocation2 + $0x208] sm:$0xff] }
  0x85   :  { %1133 = vmatpush.msrb.mxu0 %v93_v61  ;;  %1155 = vmatpush.msrb.mxu1 %v127_v2  ;;  %v171_v59 = vld [vmem:[#allocation2 + $0x318] sm:$0xff]  ;;  %v105_v63 = vld [vmem:[#allocation2 + $0x108] sm:$0xff] }
  0x86   :  { %1179 = vmatpush.msrb.mxu2 %v157_v3  ;;  %1201 = vmatpush.msrb.mxu3 %v191_v4  ;;  %v231_v60 = vld [vmem:[#allocation2 + $0x4f8] sm:$0xff]  ;;  %v169_v61 = vld [vmem:[#allocation2 + $0x308] sm:$0xff] }
  0x87   :  { %1134 = vmatpush.msrb.mxu0 %v91_v6  ;;  %1156 = vmatpush.msrb.mxu1 %v125_v11  ;;  %v295_v62 = vld [vmem:[#allocation2 + $0x6f8] sm:$0xff]  ;;  %v229_v2 = vld [vmem:[#allocation2 + $0x4e8] sm:$0xff] }
  0x88   :  { %1180 = vmatpush.msrb.mxu2 %v155_v7  ;;  %1202 = vmatpush.msrb.mxu3 %v189_v8  ;;  %v263_v3 = vld [vmem:[#allocation2 + $0x5f8] sm:$0xff]  ;;  %v293_v4 = vld [vmem:[#allocation2 + $0x6e8] sm:$0xff] }
  0x89   :  { %1135 = vmatpush.msrb.mxu0 %v89_v9  ;;  %1157 = vmatpush.msrb.mxu1 %v123_v12  ;;  %v327_v6 = vld [vmem:[#allocation2 + $0x7f8] sm:$0xff]  ;;  %v261_v7 = vld [vmem:[#allocation2 + $0x5e8] sm:$0xff] }
  0x8a   :  { %1181 = vmatpush.msrb.mxu2 %v153_v14  ;;  %1203 = vmatpush.msrb.mxu3 %v187_v15  ;;  %v227_v11 = vld [vmem:[#allocation2 + $0x4d8] sm:$0xff]  ;;  %v325_v9 = vld [vmem:[#allocation2 + $0x7e8] sm:$0xff] }
  0x8b   :  { %1136 = vmatpush.msrb.mxu0 %v87_v16  ;;  %1158 = vmatpush.msrb.mxu1 %v121_v18  ;;  %v291_v8 = vld [vmem:[#allocation2 + $0x6d8] sm:$0xff]  ;;  %v225_v12 = vld [vmem:[#allocation2 + $0x4c8] sm:$0xff] }
  0x8c   :  { %1182 = vmatpush.msrb.mxu2 %v151_v19  ;;  %1204 = vmatpush.msrb.mxu3 %v185_v20  ;;  %v259_v14 = vld [vmem:[#allocation2 + $0x5d8] sm:$0xff]  ;;  %v289_v15 = vld [vmem:[#allocation2 + $0x6c8] sm:$0xff] }
  0x8d   :  { %1137 = vmatpush.msrb.mxu0 %v85_v21  ;;  %1159 = vmatpush.msrb.mxu1 %v119_v22  ;;  %v323_v16 = vld [vmem:[#allocation2 + $0x7d8] sm:$0xff]  ;;  %v257_v19 = vld [vmem:[#allocation2 + $0x5c8] sm:$0xff] }
  0x8e   :  { %1183 = vmatpush.msrb.mxu2 %v149_v23  ;;  %1205 = vmatpush.msrb.mxu3 %v183_v24  ;;  %v223_v18 = vld [vmem:[#allocation2 + $0x4b8] sm:$0xff]  ;;  %v321_v21 = vld [vmem:[#allocation2 + $0x7c8] sm:$0xff] }
  0x8f   :  { %1138 = vmatpush.msrb.mxu0 %v83_v25  ;;  %1160 = vmatpush.msrb.mxu1 %v117_v26  ;;  %v287_v20 = vld [vmem:[#allocation2 + $0x6b8] sm:$0xff]  ;;  %v221_v22 = vld [vmem:[#allocation2 + $0x4a8] sm:$0xff] }
  0x90   :  { %1184 = vmatpush.msrb.mxu2 %v147_v27  ;;  %1206 = vmatpush.msrb.mxu3 %v181_v28  ;;  %v255_v23 = vld [vmem:[#allocation2 + $0x5b8] sm:$0xff]  ;;  %v285_v24 = vld [vmem:[#allocation2 + $0x6a8] sm:$0xff] }
  0x91   :  { %1139 = vmatpush.msrb.mxu0 %v81_v29  ;;  %1161 = vmatpush.msrb.mxu1 %v115_v30  ;;  %v319_v25 = vld [vmem:[#allocation2 + $0x7b8] sm:$0xff]  ;;  %v253_v27 = vld [vmem:[#allocation2 + $0x5a8] sm:$0xff] }
  0x92   :  { %1185 = vmatpush.msrb.mxu2 %v145_v31  ;;  %1207 = vmatpush.msrb.mxu3 %v179_v34  ;;  %v219_v26 = vld [vmem:[#allocation2 + $0x498] sm:$0xff]  ;;  %v317_v29 = vld [vmem:[#allocation2 + $0x7a8] sm:$0xff] }
  0x93   :  { %1140 = vmatpush.msrb.mxu0 %v79_v35  ;;  %1162 = vmatpush.msrb.mxu1 %v113_v37  ;;  %v283_v28 = vld [vmem:[#allocation2 + $0x698] sm:$0xff]  ;;  %v217_v30 = vld [vmem:[#allocation2 + $0x488] sm:$0xff] }
  0x94   :  { %1186 = vmatpush.msrb.mxu2 %v143_v38  ;;  %1208 = vmatpush.msrb.mxu3 %v177_v36  ;;  %v251_v31 = vld [vmem:[#allocation2 + $0x598] sm:$0xff]  ;;  %v281_v34 = vld [vmem:[#allocation2 + $0x688] sm:$0xff] }
  0x95   :  { %1141 = vmatpush.msrb.mxu0 %v77_v40  ;;  %1163 = vmatpush.msrb.mxu1 %v111_v42  ;;  %v315_v35 = vld [vmem:[#allocation2 + $0x798] sm:$0xff]  ;;  %v249_v38 = vld [vmem:[#allocation2 + $0x588] sm:$0xff] }
  0x96   :  { %1187 = vmatpush.msrb.mxu2 %v141_v43  ;;  %1209 = vmatpush.msrb.mxu3 %v175_v45  ;;  %v215_v37 = vld [vmem:[#allocation2 + $0x478] sm:$0xff]  ;;  %v313_v40 = vld [vmem:[#allocation2 + $0x788] sm:$0xff] }
  0x97   :  { %1142 = vmatpush.msrb.mxu0 %v75_v51  ;;  %1164 = vmatpush.msrb.mxu1 %v109_v47  ;;  %v279_v36 = vld [vmem:[#allocation2 + $0x678] sm:$0xff]  ;;  %v213_v42 = vld [vmem:[#allocation2 + $0x468] sm:$0xff] }
  0x98   :  { %1188 = vmatpush.msrb.mxu2 %v139_v48  ;;  %1210 = vmatpush.msrb.mxu3 %v173_v49  ;;  %v247_v43 = vld [vmem:[#allocation2 + $0x578] sm:$0xff]  ;;  %v277_v45 = vld [vmem:[#allocation2 + $0x668] sm:$0xff] }
  0x99   :  { %1143 = vmatpush.msrb.mxu0 %v73_v52  ;;  %1165 = vmatpush.msrb.mxu1 %v107_v54  ;;  %v311_v51 = vld [vmem:[#allocation2 + $0x778] sm:$0xff]  ;;  %v245_v48 = vld [vmem:[#allocation2 + $0x568] sm:$0xff] }
  0x9a   :  { %1189 = vmatpush.msrb.mxu2 %v137_v55  ;;  %1211 = vmatpush.msrb.mxu3 %v171_v59  ;;  %v211_v47 = vld [vmem:[#allocation2 + $0x458] sm:$0xff]  ;;  %v309_v52 = vld [vmem:[#allocation2 + $0x768] sm:$0xff] }
  0x9b   :  { %1220 = vmatpush.msra.mxu0 %v231_v60  ;;  %1166 = vmatpush.msrb.mxu1 %v105_v63  ;;  %v275_v49 = vld [vmem:[#allocation2 + $0x658] sm:$0xff]  ;;  %v209_v54 = vld [vmem:[#allocation2 + $0x448] sm:$0xff] }
  0x9c   :  { %1266 = vmatpush.msra.mxu2 %v295_v62  ;;  %1212 = vmatpush.msrb.mxu3 %v169_v61  ;;  %v243_v55 = vld [vmem:[#allocation2 + $0x558] sm:$0xff]  ;;  %v273_v59 = vld [vmem:[#allocation2 + $0x648] sm:$0xff] }
  0x9d   :  { %1221 = vmatpush.msra.mxu0 %v229_v2  ;;  %1243 = vmatpush.msra.mxu1 %v263_v3  ;;  %v307_v60 = vld [vmem:[#allocation2 + $0x758] sm:$0xff]  ;;  %v241_v63 = vld [vmem:[#allocation2 + $0x548] sm:$0xff] }
  0x9e   :  { %1267 = vmatpush.msra.mxu2 %v293_v4  ;;  %1289 = vmatpush.msra.mxu3 %v327_v6  ;;  %v207_v62 = vld [vmem:[#allocation2 + $0x438] sm:$0xff]  ;;  %v305_v2 = vld [vmem:[#allocation2 + $0x748] sm:$0xff] }
  0x9f   :  { %1222 = vmatpush.msra.mxu0 %v227_v11  ;;  %1244 = vmatpush.msra.mxu1 %v261_v7  ;;  %v271_v61 = vld [vmem:[#allocation2 + $0x638] sm:$0xff]  ;;  %v205_v3 = vld [vmem:[#allocation2 + $0x428] sm:$0xff] }
  0xa0   :  { %1268 = vmatpush.msra.mxu2 %v291_v8  ;;  %1290 = vmatpush.msra.mxu3 %v325_v9  ;;  %v239_v4 = vld [vmem:[#allocation2 + $0x538] sm:$0xff]  ;;  %v269_v6 = vld [vmem:[#allocation2 + $0x628] sm:$0xff] }
  0xa1   :  { %1223 = vmatpush.msra.mxu0 %v225_v12  ;;  %1245 = vmatpush.msra.mxu1 %v259_v14  ;;  %v303_v11 = vld [vmem:[#allocation2 + $0x738] sm:$0xff]  ;;  %v237_v8 = vld [vmem:[#allocation2 + $0x528] sm:$0xff] }
  0xa2   :  { %1269 = vmatpush.msra.mxu2 %v289_v15  ;;  %1291 = vmatpush.msra.mxu3 %v323_v16  ;;  %v203_v7 = vld [vmem:[#allocation2 + $0x418] sm:$0xff]  ;;  %v301_v12 = vld [vmem:[#allocation2 + $0x728] sm:$0xff] }
  0xa3   :  { %1224 = vmatpush.msra.mxu0 %v223_v18  ;;  %1246 = vmatpush.msra.mxu1 %v257_v19  ;;  %v267_v9 = vld [vmem:[#allocation2 + $0x618] sm:$0xff]  ;;  %v201_v14 = vld [vmem:[#allocation2 + $0x408] sm:$0xff] }
  0xa4   :  { %1270 = vmatpush.msra.mxu2 %v287_v20  ;;  %1292 = vmatpush.msra.mxu3 %v321_v21  ;;  %v235_v15 = vld [vmem:[#allocation2 + $0x518] sm:$0xff]  ;;  %v265_v16 = vld [vmem:[#allocation2 + $0x608] sm:$0xff] }
  0xa5   :  { %1225 = vmatpush.msra.mxu0 %v221_v22  ;;  %1247 = vmatpush.msra.mxu1 %v255_v23  ;;  %v299_v18 = vld [vmem:[#allocation2 + $0x718] sm:$0xff]  ;;  %v233_v21 = vld [vmem:[#allocation2 + $0x508] sm:$0xff] }
  0xa6   :  { %1271 = vmatpush.msra.mxu2 %v285_v24  ;;  %1293 = vmatpush.msra.mxu3 %v319_v25  ;;  %v359_v19 = vld [vmem:[#allocation2 + $0x8f8] sm:$0xff]  ;;  %v297_v22 = vld [vmem:[#allocation2 + $0x708] sm:$0xff] }
  0xa7   :  { %1226 = vmatpush.msra.mxu0 %v219_v26  ;;  %1248 = vmatpush.msra.mxu1 %v253_v27  ;;  %v423_v20 = vld [vmem:[#allocation2 + $0xaf8] sm:$0xff]  ;;  %v357_v23 = vld [vmem:[#allocation2 + $0x8e8] sm:$0xff] }
  0xa8   :  { %1272 = vmatpush.msra.mxu2 %v283_v28  ;;  %1294 = vmatpush.msra.mxu3 %v317_v29  ;;  %v391_v24 = vld [vmem:[#allocation2 + $0x9f8] sm:$0xff]  ;;  %v421_v25 = vld [vmem:[#allocation2 + $0xae8] sm:$0xff] }
  0xa9   :  { %1227 = vmatpush.msra.mxu0 %v217_v30  ;;  %1249 = vmatpush.msra.mxu1 %v251_v31  ;;  %v455_v26 = vld [vmem:[#allocation2 + $0xbf8] sm:$0xff]  ;;  %v389_v28 = vld [vmem:[#allocation2 + $0x9e8] sm:$0xff] }
  0xaa   :  { %1273 = vmatpush.msra.mxu2 %v281_v34  ;;  %1295 = vmatpush.msra.mxu3 %v315_v35  ;;  %v355_v27 = vld [vmem:[#allocation2 + $0x8d8] sm:$0xff]  ;;  %v453_v30 = vld [vmem:[#allocation2 + $0xbe8] sm:$0xff] }
  0xab   :  { %1228 = vmatpush.msra.mxu0 %v215_v37  ;;  %1250 = vmatpush.msra.mxu1 %v249_v38  ;;  %v419_v29 = vld [vmem:[#allocation2 + $0xad8] sm:$0xff]  ;;  %v353_v31 = vld [vmem:[#allocation2 + $0x8c8] sm:$0xff]  ;;  %v2552_v38 = vld [vmem:[%s3809_s0 + $0x10] sm:$0xff] }
  0xac   :  { %1274 = vmatpush.msra.mxu2 %v279_v36  ;;  %1296 = vmatpush.msra.mxu3 %v313_v40  ;;  %v387_v34 = vld [vmem:[#allocation2 + $0x9d8] sm:$0xff]  ;;  %v417_v35 = vld [vmem:[#allocation2 + $0xac8] sm:$0xff] }
  0xad   :  { %1229 = vmatpush.msra.mxu0 %v213_v42  ;;  %1251 = vmatpush.msra.mxu1 %v247_v43  ;;  %v451_v37 = vld [vmem:[#allocation2 + $0xbd8] sm:$0xff]  ;;  %v385_v40 = vld [vmem:[#allocation2 + $0x9c8] sm:$0xff]  ;;  %v2553_v43 = vld [vmem:[%s3809_s0] sm:$0xff] }
  0xae   :  { %1275 = vmatpush.msra.mxu2 %v277_v45  ;;  %1297 = vmatpush.msra.mxu3 %v311_v51  ;;  %v351_v36 = vld [vmem:[#allocation2 + $0x8b8] sm:$0xff]  ;;  %v449_v45 = vld [vmem:[#allocation2 + $0xbc8] sm:$0xff] }
  0xaf   :  { %2442 = vmatmul.msk.f32.vlgmr.msrb.gmra.mxu2 %vm2704_vm1, %v2696_v44  ;;  %1230 = vmatpush.msra.mxu0 %v211_v47  ;;  %v415_v42 = vld [vmem:[#allocation2 + $0xab8] sm:$0xff]  ;;  %v349_v47 = vld [vmem:[#allocation2 + $0x8a8] sm:$0xff] }
  0xb0   :  { %1252 = vmatpush.msra.mxu1 %v245_v48  ;;  %1276 = vmatpush.msra.mxu2 %v275_v49  ;;  %v2554_v51 = vld [vmem:[%s3809_s0 + $0x18] sm:$0xff]  ;;  %v413_v49 = vld [vmem:[#allocation2 + $0xaa8] sm:$0xff] }
  0xb1   :  { %1298 = vmatpush.msra.mxu3 %v309_v52  ;;  %2434 = vmatmul.msk.f32.vlgmr.msrb.gmra.mxu0 %vm2704_vm1, %v2709_v50  ;;  %v383_v48 = vld [vmem:[#allocation2 + $0x9b8] sm:$0xff] }
  0xb2   :  { %2446 = vmatmul.msk.f32.vlgmr.msrb.gmra.mxu3 %vm2704_vm1, %v2717_v53  ;;  %1231 = vmatpush.msra.mxu0 %v209_v54  ;;  %v447_v52 = vld [vmem:[#allocation2 + $0xbb8] sm:$0xff]  ;;  %v2555_v54 = vld [vmem:[%s3809_s0 + $0x8] sm:$0xff] }
  0xb3   :  { %1253 = vmatpush.msra.mxu1 %v243_v55  ;;  %1277 = vmatpush.msra.mxu2 %v273_v59  ;;  %v347_v55 = vld [vmem:[#allocation2 + $0x898] sm:$0xff]  ;;  %v381_v59 = vld [vmem:[#allocation2 + $0x9a8] sm:$0xff] }
  0xb4   :  { %1299 = vmatpush.msra.mxu3 %v307_v60  ;;  %2438 = vmatmul.msk.f32.vlgmr.msrb.gmra.mxu1 %vm2704_vm1, %v2723_v57  ;;  %v411_v60 = vld [vmem:[#allocation2 + $0xa98] sm:$0xff] }
  0xb5   :  { %1232 = vmatpush.msra.mxu0 %v207_v62  ;;  %1254 = vmatpush.msra.mxu1 %v241_v63  ;;  %v445_v62 = vld [vmem:[#allocation2 + $0xba8] sm:$0xff] }
  0xb6   :  { %1278 = vmatpush.msra.mxu2 %v271_v61  ;;  %1300 = vmatpush.msra.mxu3 %v305_v2  ;;  %v345_v63 = vld [vmem:[#allocation2 + $0x888] sm:$0xff]  ;;  %v379_v61 = vld [vmem:[#allocation2 + $0x998] sm:$0xff] }
  0xb7   :  { %1233 = vmatpush.msra.mxu0 %v205_v3  ;;  %1255 = vmatpush.msra.mxu1 %v239_v4  ;;  %v409_v2 = vld [vmem:[#allocation2 + $0xa88] sm:$0xff]  ;;  %v443_v3 = vld [vmem:[#allocation2 + $0xb98] sm:$0xff] }
  0xb8   :  { %1279 = vmatpush.msra.mxu2 %v269_v6  ;;  %1301 = vmatpush.msra.mxu3 %v303_v11  ;;  %v2556_v6 = vld [vmem:[%s3809_s0 + $0x30] sm:$0xff]  ;;  %v343_v11 = vld [vmem:[#allocation2 + $0x878] sm:$0xff] }
  0xb9   :  { %2444 = vmatmul.msk.f32.gmra.mxu2 %vm2704_vm1, %v2745_v5  ;;  %1234 = vmatpush.msra.mxu0 %v203_v7  ;;  %v377_v7 = vld [vmem:[#allocation2 + $0x988] sm:$0xff] }
  0xba   :  { %1256 = vmatpush.msra.mxu1 %v237_v8  ;;  %1280 = vmatpush.msra.mxu2 %v267_v9  ;;  %v407_v8 = vld [vmem:[#allocation2 + $0xa78] sm:$0xff]  ;;  %v2557_v9 = vld [vmem:[%s3809_s0 + $0x20] sm:$0xff] }
  0xbb   :  { %1302 = vmatpush.msra.mxu3 %v301_v12  ;;  %2436 = vmatmul.msk.f32.gmra.mxu0 %vm2704_vm1, %v2753_v10  ;;  %v441_v12 = vld [vmem:[#allocation2 + $0xb88] sm:$0xff] }
  0xbc   :  { %2448 = vmatmul.msk.f32.gmra.mxu3 %vm2704_vm1, %v2761_v13  ;;  %1235 = vmatpush.msra.mxu0 %v201_v14 }
  0xbd   :  { %1257 = vmatpush.msra.mxu1 %v235_v15  ;;  %1281 = vmatpush.msra.mxu2 %v265_v16  ;;  %v2558_v15 = vld [vmem:[%s3809_s0 + $0x38] sm:$0xff]  ;;  %v341_v16 = vld [vmem:[#allocation2 + $0x868] sm:$0xff] }
  0xbe   :  { %1303 = vmatpush.msra.mxu3 %v299_v18  ;;  %1312 = vmatpush.msrb.mxu0 %v359_v19  ;;  %v375_v18 = vld [vmem:[#allocation2 + $0x978] sm:$0xff]  ;;  %v405_v19 = vld [vmem:[#allocation2 + $0xa68] sm:$0xff] }
  0xbf   :  { %1358 = vmatpush.msrb.mxu2 %v423_v20  ;;  %2440 = vmatmul.msk.f32.gmra.mxu1 %vm2704_vm1, %v2767_v17  ;;  %v439_v20 = vld [vmem:[#allocation2 + $0xb78] sm:$0xff] }
  0xc0   :  { %1258 = vmatpush.msra.mxu1 %v233_v21  ;;  %1304 = vmatpush.msra.mxu3 %v297_v22  ;;  %v2559_v21 = vld [vmem:[%s3809_s0 + $0x28] sm:$0xff]  ;;  %v339_v22 = vld [vmem:[#allocation2 + $0x858] sm:$0xff] }
  0xc1   :  { %1313 = vmatpush.msrb.mxu0 %v357_v23  ;;  %1359 = vmatpush.msrb.mxu2 %v421_v25  ;;  %v373_v23 = vld [vmem:[#allocation2 + $0x968] sm:$0xff]  ;;  %v403_v25 = vld [vmem:[#allocation2 + $0xa58] sm:$0xff] }
  0xc2   :  { %1335 = vmatpush.msrb.mxu1 %v391_v24  ;;  %1381 = vmatpush.msrb.mxu3 %v455_v26  ;;  %v437_v26 = vld [vmem:[#allocation2 + $0xb68] sm:$0xff] }
  0xc3   :  { %1314 = vmatpush.msrb.mxu0 %v355_v27  ;;  %1360 = vmatpush.msrb.mxu2 %v419_v29  ;;  %v337_v27 = vld [vmem:[#allocation2 + $0x848] sm:$0xff] }
  0xc4   :  { %1336 = vmatpush.msrb.mxu1 %v389_v28  ;;  %1382 = vmatpush.msrb.mxu3 %v453_v30  ;;  %v371_v28 = vld [vmem:[#allocation2 + $0x958] sm:$0xff]  ;;  %v401_v29 = vld [vmem:[#allocation2 + $0xa48] sm:$0xff] }
  0xc5   :  { %1282 = vmatmul.f32.vlgmr.msra.gmra.mxu2 %v2552_v38  ;;  %1315 = vmatpush.msrb.mxu0 %v353_v31  ;;  %v869_v4 = vpop.f32.mrf.mxu0  ;;  %v435_v30 = vld [vmem:[#allocation2 + $0xb58] sm:$0xff]  ;;  %v938_v31 = vpop.f32.mrf.mxu3 }
  0xc6   :  { %1337 = vmatpush.msrb.mxu1 %v387_v34  ;;  %1361 = vmatpush.msrb.mxu2 %v417_v35  ;;  %v335_v34 = vld [vmem:[#allocation2 + $0x838] sm:$0xff]  ;;  %v369_v35 = vld [vmem:[#allocation2 + $0x948] sm:$0xff] }
  0xc7   :  { %1383 = vmatpush.msrb.mxu3 %v451_v37  ;;  %1236 = vmatmul.f32.vlgmr.msra.gmra.mxu0 %v2553_v43  ;;  %v892_v14 = vpop.f32.mrf.mxu1  ;;  %v915_v24 = vpop.f32.mrf.mxu2  ;;  %v399_v38 = vld [vmem:[#allocation2 + $0xa38] sm:$0xff] }
  0xc8   :  { %1305 = vmatmul.f32.vlgmr.msra.gmra.mxu3 %v2554_v51  ;;  %1316 = vmatpush.msrb.mxu0 %v351_v36  ;;  %v433_v36 = vld [vmem:[#allocation2 + $0xb48] sm:$0xff]  ;;  %v893_v43 = vadd.f32 %v892_v14, %v869_v4  ;;  %v431_v51 = vld [vmem:[#allocation2 + $0xb38] sm:$0xff] }
  0xc9   :  { %1338 = vmatpush.msrb.mxu1 %v385_v40  ;;  %1362 = vmatpush.msrb.mxu2 %v415_v42  ;;  %v333_v40 = vld [vmem:[#allocation2 + $0x828] sm:$0xff]  ;;  %v367_v42 = vld [vmem:[#allocation2 + $0x938] sm:$0xff] }
  0xca   :  { %1384 = vmatpush.msrb.mxu3 %v449_v45  ;;  %1259 = vmatmul.f32.vlgmr.msra.gmra.mxu1 %v2555_v54  ;;  %v397_v45 = vld [vmem:[#allocation2 + $0xa28] sm:$0xff]  ;;  %v519_v14 = vld [vmem:[#allocation4 + $0x1f8] sm:$0xff] }
  0xcb   :  { %1317 = vmatpush.msrb.mxu0 %v349_v47  ;;  %1339 = vmatpush.msrb.mxu1 %v383_v48  ;;  %v331_v48 = vld [vmem:[#allocation2 + $0x818] sm:$0xff]  ;;  %v429_v54 = vld [vmem:[#allocation2 + $0xb28] sm:$0xff] }
  0xcc   :  { %1363 = vmatpush.msrb.mxu2 %v413_v49  ;;  %1385 = vmatpush.msrb.mxu3 %v447_v52  ;;  %v365_v49 = vld [vmem:[#allocation2 + $0x928] sm:$0xff]  ;;  %v395_v52 = vld [vmem:[#allocation2 + $0xa18] sm:$0xff] }
  0xcd   :  { %1318 = vmatpush.msrb.mxu0 %v347_v55  ;;  %1340 = vmatpush.msrb.mxu1 %v381_v59  ;;  %v329_v55 = vld [vmem:[#allocation2 + $0x808] sm:$0xff]  ;;  %v363_v59 = vld [vmem:[#allocation2 + $0x918] sm:$0xff] }
  0xce   :  { %1364 = vmatpush.msrb.mxu2 %v411_v60  ;;  %1386 = vmatpush.msrb.mxu3 %v445_v62  ;;  %v872_v37 = vpop.f32.mrf.mxu0  ;;  %v916_v62 = vadd.f32 %v915_v24, %v893_v43  ;;  %v509_v24 = vld [vmem:[#allocation4 + $0x1a8] sm:$0xff]  ;;  %v502_v43 = vld [vmem:[#allocation4 + $0x170] sm:$0xff] }
  0xcf   :  { %1285 = vmatmul.f32.gmra.mxu2 %v2556_v6  ;;  %1319 = vmatpush.msrb.mxu0 %v345_v63  ;;  %v393_v63 = vld [vmem:[#allocation2 + $0xa08] sm:$0xff] }
  0xd0   :  { %1341 = vmatpush.msrb.mxu1 %v379_v61  ;;  %1365 = vmatpush.msrb.mxu2 %v409_v2  ;;  %v427_v61 = vld [vmem:[#allocation2 + $0xb18] sm:$0xff]  ;;  %v361_v2 = vld [vmem:[#allocation2 + $0x908] sm:$0xff] }
  0xd1   :  { %1387 = vmatpush.msrb.mxu3 %v443_v3  ;;  %1239 = vmatmul.f32.gmra.mxu0 %v2557_v9  ;;  %v895_v47 = vpop.f32.mrf.mxu1  ;;  %v425_v3 = vld [vmem:[#allocation2 + $0xb08] sm:$0xff] }
  0xd2   :  { %1308 = vmatmul.f32.gmra.mxu3 %v2558_v15  ;;  %1320 = vmatpush.msrb.mxu0 %v343_v11  ;;  %v918_v60 = vpop.f32.mrf.mxu2  ;;  %v939_v11 = vadd.f32 %v938_v31, %v916_v62  ;;  %v517_v9 = vld [vmem:[#allocation4 + $0x1e8] sm:$0xff]  ;;  %v494_v62 = vld [vmem:[#allocation4 + $0x130] sm:$0xff] }
  0xd3   :  { %1342 = vmatpush.msrb.mxu1 %v377_v7  ;;  %1366 = vmatpush.msrb.mxu2 %v407_v8  ;;  %v896_v7 = vadd.f32 %v895_v47, %v872_v37  ;;  %v516_v8 = vld [vmem:[#allocation4 + $0x1e0] sm:$0xff]  ;;  %v506_v37 = vld [vmem:[#allocation4 + $0x190] sm:$0xff] }
  0xd4   :  { %1388 = vmatpush.msrb.mxu3 %v441_v12  ;;  %1262 = vmatmul.f32.gmra.mxu1 %v2559_v21  ;;  %v518_v12 = vld [vmem:[#allocation4 + $0x1f0] sm:$0xff] }
  0xd5   :  { %1321 = vmatpush.msrb.mxu0 %v341_v16  ;;  %1343 = vmatpush.msrb.mxu1 %v375_v18  ;;  %v941_v4 = vpop.f32.mrf.mxu3  ;;  %v512_v16 = vld [vmem:[#allocation4 + $0x1c0] sm:$0xff]  ;;  %v513_v18 = vld [vmem:[#allocation4 + $0x1c8] sm:$0xff]  ;;  %v919_v21 = vadd.f32 %v918_v60, %v896_v7  ;;  %v491_v7 = vld [vmem:[#allocation4 + $0x118] sm:$0xff] }
  0xd6   :  { %1367 = vmatpush.msrb.mxu2 %v405_v19  ;;  %1389 = vmatpush.msrb.mxu3 %v439_v20  ;;  %v514_v19 = vld [vmem:[#allocation4 + $0x1d0] sm:$0xff]  ;;  %v515_v20 = vld [vmem:[#allocation4 + $0x1d8] sm:$0xff]  ;;  %v493_v60 = vld [vmem:[#allocation4 + $0x128] sm:$0xff] }
  0xd7   :  { %1322 = vmatpush.msrb.mxu0 %v339_v22  ;;  %1344 = vmatpush.msrb.mxu1 %v373_v23  ;;  %v508_v23 = vld [vmem:[#allocation4 + $0x1a0] sm:$0xff] }
  0xd8   :  { %1368 = vmatpush.msrb.mxu2 %v403_v25  ;;  %1390 = vmatpush.msrb.mxu3 %v437_v26  ;;  %v961_v6 = vpop.f32.mrf.mxu0  ;;  %v510_v26 = vld [vmem:[#allocation4 + $0x1b0] sm:$0xff] }
  0xd9   :  { %1323 = vmatpush.msrb.mxu0 %v337_v27  ;;  %1345 = vmatpush.msrb.mxu1 %v371_v28  ;;  %v962_v22 = vadd.f32 %v961_v6, %v939_v11  ;;  %v511_v27 = vld [vmem:[#allocation4 + $0x1b8] sm:$0xff]  ;;  %v490_v11 = vld [vmem:[#allocation4 + $0x110] sm:$0xff] }
  0xda   :  { %1369 = vmatpush.msrb.mxu2 %v401_v29  ;;  %1391 = vmatpush.msrb.mxu3 %v435_v30  ;;  %v942_v29 = vadd.f32 %v941_v4, %v919_v21  ;;  %v489_v4 = vld [vmem:[#allocation4 + $0x108] sm:$0xff] }
  0xdb   :  { %1324 = vmatpush.msrb.mxu0 %v335_v34  ;;  %1346 = vmatpush.msrb.mxu1 %v369_v35  ;;  %v984_v15 = vpop.f32.mrf.mxu1  ;;  %v504_v34 = vld [vmem:[#allocation4 + $0x180] sm:$0xff]  ;;  %v505_v35 = vld [vmem:[#allocation4 + $0x188] sm:$0xff] }
  0xdc   :  { %1370 = vmatpush.msrb.mxu2 %v399_v38  ;;  %1392 = vmatpush.msrb.mxu3 %v433_v36  ;;  %v1007_v25 = vpop.f32.mrf.mxu2  ;;  %v985_v30 = vadd.f32 %v984_v15, %v962_v22  ;;  %v507_v38 = vld [vmem:[#allocation4 + $0x198] sm:$0xff]  ;;  %v500_v36 = vld [vmem:[#allocation4 + $0x160] sm:$0xff]  ;;  %v486_v15 = vld [vmem:[#allocation4 + $0xf0] sm:$0xff] }
  0xdd   :  { %1325 = vmatpush.msrb.mxu0 %v333_v40  ;;  %1347 = vmatpush.msrb.mxu1 %v367_v42  ;;  %v501_v40 = vld [vmem:[#allocation4 + $0x168] sm:$0xff]  ;;  %v482_v22 = vld [vmem:[#allocation4 + $0xd0] sm:$0xff] }
  0xde   :  { %1371 = vmatpush.msrb.mxu2 %v397_v45  ;;  %1393 = vmatpush.msrb.mxu3 %v431_v51  ;;  %v503_v45 = vld [vmem:[#allocation4 + $0x178] sm:$0xff]  ;;  %v1008_v51 = vadd.f32 %v1007_v25, %v985_v30  ;;  %v476_v25 = vld [vmem:[#allocation4 + $0xa0] sm:$0xff] }
  0xdf   :  { %1326 = vmatpush.msrb.mxu0 %v331_v48  ;;  %1348 = vmatpush.msrb.mxu1 %v365_v49  ;;  %v1030_v31 = vpop.f32.mrf.mxu3  ;;  %v496_v48 = vld [vmem:[#allocation4 + $0x140] sm:$0xff]  ;;  %v497_v49 = vld [vmem:[#allocation4 + $0x148] sm:$0xff] }
  0xe0   :  { %1372 = vmatpush.msrb.mxu2 %v395_v52  ;;  %1394 = vmatpush.msrb.mxu3 %v429_v54  ;;  %v498_v52 = vld [vmem:[#allocation4 + $0x150] sm:$0xff]  ;;  %v499_v54 = vld [vmem:[#allocation4 + $0x158] sm:$0xff] }
  0xe1   :  { %1327 = vmatpush.msrb.mxu0 %v329_v55  ;;  %1349 = vmatpush.msrb.mxu1 %v363_v59  ;;  %v492_v59 = vld [vmem:[#allocation4 + $0x120] sm:$0xff] }
  0xe2   :  { %1373 = vmatpush.msrb.mxu2 %v393_v63  ;;  %1395 = vmatpush.msrb.mxu3 %v427_v61  ;;  %v495_v63 = vld [vmem:[#allocation4 + $0x138] sm:$0xff]  ;;  %v1031_v61 = vadd.f32 %v1030_v31, %v1008_v51  ;;  %v472_v31 = vld [vmem:[#allocation4 + $0x80] sm:$0xff] }
  0xe3   :  { %2449 = vmatmul.msk.f32.vlgmr.msrb.gmra.mxu0 %vm761_vm2, %v2787_v32  ;;  %2453 = vmatmul.msk.f32.vlgmr.msrb.gmra.mxu2 %vm761_vm2, %v2790_v33 }
  0xe4   :  { %1350 = vmatpush.msrb.mxu1 %v361_v2  ;;  %1396 = vmatpush.msrb.mxu3 %v425_v3  ;;  %v488_v3 = vld [vmem:[#allocation4 + $0x100] sm:$0xff] }
  0xe5   :  { %2451 = vmatmul.msk.f32.vlgmr.msrb.gmra.mxu1 %vm761_vm2, %v2793_v39  ;;  %2455 = vmatmul.msk.f32.vlgmr.msrb.gmra.mxu3 %vm761_vm2, %v2796_v41 }
  0xe6   :  { %1416 = vmatpush.msra.mxu0 %v516_v8  ;;  %1439 = vmatpush.msra.mxu1 %v517_v9  ;;  %v484_v9 = vld [vmem:[#allocation4 + $0xe0] sm:$0xff] }
  0xe7   :  { %1462 = vmatpush.msra.mxu2 %v518_v12  ;;  %1485 = vmatpush.msra.mxu3 %v519_v14  ;;  %v485_v12 = vld [vmem:[#allocation4 + $0xe8] sm:$0xff] }
  0xe8   :  { %1417 = vmatpush.msra.mxu0 %v512_v16  ;;  %1440 = vmatpush.msra.mxu1 %v513_v18  ;;  %v487_v16 = vld [vmem:[#allocation4 + $0xf8] sm:$0xff] }
  0xe9   :  { %1463 = vmatpush.msra.mxu2 %v514_v19  ;;  %1486 = vmatpush.msra.mxu3 %v515_v20  ;;  %v480_v19 = vld [vmem:[#allocation4 + $0xc0] sm:$0xff]  ;;  %v481_v20 = vld [vmem:[#allocation4 + $0xc8] sm:$0xff] }
  0xea   :  { %1418 = vmatpush.msra.mxu0 %v508_v23  ;;  %1441 = vmatpush.msra.mxu1 %v509_v24  ;;  %v964_v28 = vpop.f32.mrf.mxu0  ;;  %v483_v23 = vld [vmem:[#allocation4 + $0xd8] sm:$0xff] }
  0xeb   :  { %2450 = vmatmul.msk.f32.gmra.mxu0 %vm761_vm2, %v2807_v56  ;;  %2454 = vmatmul.msk.f32.gmra.mxu2 %vm761_vm2, %v2810_v58  ;;  %v965_v47 = vadd.f32 %v964_v28, %v942_v29  ;;  %v479_v28 = vld [vmem:[#allocation4 + $0xb8] sm:$0xff] }
  0xec   :  { %1464 = vmatpush.msra.mxu2 %v510_v26  ;;  %1487 = vmatpush.msra.mxu3 %v511_v27  ;;  %v477_v26 = vld [vmem:[#allocation4 + $0xa8] sm:$0xff]  ;;  %v478_v27 = vld [vmem:[#allocation4 + $0xb0] sm:$0xff] }
  0xed   :  { %2452 = vmatmul.msk.f32.gmra.mxu1 %vm761_vm2, %v2813_v0  ;;  %2456 = vmatmul.msk.f32.gmra.mxu3 %vm761_vm2, %v2816_v1  ;;  %v987_v42 = vpop.f32.mrf.mxu1 }
  0xee   :  { %1419 = vmatpush.msra.mxu0 %v504_v34  ;;  %1442 = vmatpush.msra.mxu1 %v505_v35  ;;  %v988_v2 = vadd.f32 %v987_v42, %v965_v47  ;;  %v473_v34 = vld [vmem:[#allocation4 + $0x88] sm:$0xff] }
  0xef   :  { %1465 = vmatpush.msra.mxu2 %v506_v37  ;;  %1488 = vmatpush.msra.mxu3 %v507_v38  ;;  %v474_v37 = vld [vmem:[#allocation4 + $0x90] sm:$0xff]  ;;  %v475_v38 = vld [vmem:[#allocation4 + $0x98] sm:$0xff] }
  0xf0   :  { %1420 = vmatpush.msra.mxu0 %v500_v36  ;;  %1443 = vmatpush.msra.mxu1 %v501_v40  ;;  %v1010_v55 = vpop.f32.mrf.mxu2  ;;  %v468_v36 = vld [vmem:[#allocation4 + $0x60] sm:$0xff]  ;;  %v469_v40 = vld [vmem:[#allocation4 + $0x68] sm:$0xff] }
  0xf1   :  { %1466 = vmatpush.msra.mxu2 %v502_v43  ;;  %1489 = vmatpush.msra.mxu3 %v503_v45  ;;  %v1011_v18 = vadd.f32 %v1010_v55, %v988_v2  ;;  %v470_v43 = vld [vmem:[#allocation4 + $0x70] sm:$0xff]  ;;  %v471_v45 = vld [vmem:[#allocation4 + $0x78] sm:$0xff] }
  0xf2   :  { %1421 = vmatpush.msra.mxu0 %v496_v48  ;;  %1444 = vmatpush.msra.mxu1 %v497_v49  ;;  %v464_v49 = vld [vmem:[#allocation4 + $0x40] sm:$0xff]  ;;  %v467_v55 = vld [vmem:[#allocation4 + $0x58] sm:$0xff] }
  0xf3   :  { %1467 = vmatpush.msra.mxu2 %v498_v52  ;;  %1490 = vmatpush.msra.mxu3 %v499_v54  ;;  %v1033_v6 = vpop.f32.mrf.mxu3  ;;  %v465_v52 = vld [vmem:[#allocation4 + $0x48] sm:$0xff]  ;;  %v466_v54 = vld [vmem:[#allocation4 + $0x50] sm:$0xff]  ;;  %v463_v2 = vld [vmem:[#allocation4 + $0x38] sm:$0xff] }
  0xf4   :  { %1422 = vmatpush.msra.mxu0 %v492_v59  ;;  %1445 = vmatpush.msra.mxu1 %v493_v60  ;;  %v1053_v8 = vpop.f32.mrf.mxu0  ;;  %v1034_v30 = vadd.f32 %v1033_v6, %v1011_v18  ;;  %v457_v6 = vld [vmem:[#allocation4 + $0x8] sm:$0xff] }
  0xf5   :  { %1468 = vmatpush.msra.mxu2 %v494_v62  ;;  %1491 = vmatpush.msra.mxu3 %v495_v63  ;;  %v1054_v14 = vadd.f32 %v1053_v8, %v1031_v61  ;;  %v460_v62 = vld [vmem:[#allocation4 + $0x20] sm:$0xff]  ;;  %v461_v63 = vld [vmem:[#allocation4 + $0x28] sm:$0xff]  ;;  %v462_v61 = vld [vmem:[#allocation4 + $0x30] sm:$0xff] }
  0xf6   :  { %1423 = vmatpush.msra.mxu0 %v488_v3  ;;  %1446 = vmatpush.msra.mxu1 %v489_v4  ;;  %v456_v4 = vld [vmem:[#allocation4] sm:$0xff] }
  0xf7   :  { %1469 = vmatpush.msra.mxu2 %v490_v11  ;;  %1492 = vmatpush.msra.mxu3 %v491_v7  ;;  %v1076_v21 = vpop.f32.mrf.mxu1  ;;  %v458_v11 = vld [vmem:[#allocation4 + $0x10] sm:$0xff]  ;;  %v459_v7 = vld [vmem:[#allocation4 + $0x18] sm:$0xff] }
  0xf8   :  { %1424 = vmatpush.msra.mxu0 %v484_v9  ;;  %1447 = vmatpush.msra.mxu1 %v485_v12  ;;  %v1077_v24 = vadd.f32 %v1076_v21, %v1054_v14  ;;  %v640_v21 = vld [vmem:[#allocation6 + $0x3c0] sm:$0xff] }
  0xf9   :  { %1470 = vmatpush.msra.mxu2 %v486_v15  ;;  %1493 = vmatpush.msra.mxu3 %v487_v16  ;;  %v644_v15 = vld [vmem:[#allocation6 + $0x3e0] sm:$0xff] }
  0xfa   :  { %1425 = vmatpush.msra.mxu0 %v480_v19  ;;  %1448 = vmatpush.msra.mxu1 %v481_v20  ;;  %v1099_v29 = vpop.f32.mrf.mxu2  ;;  %v580_v16 = vld [vmem:[#allocation6 + $0x1e0] sm:$0xff]  ;;  %v581_v20 = vld [vmem:[#allocation6 + $0x1e8] sm:$0xff] }
  0xfb   :  { %1471 = vmatpush.msra.mxu2 %v482_v22  ;;  %1494 = vmatpush.msra.mxu3 %v483_v23  ;;  %v1100_v35 = vadd.f32 %v1099_v29, %v1077_v24  ;;  %v708_v19 = vld [vmem:[#allocation6 + $0x5e0] sm:$0xff]  ;;  %v573_v29 = vld [vmem:[#allocation6 + $0x1a8] sm:$0xff] }
  0xfc   :  { %1426 = vmatpush.msra.mxu0 %v476_v25  ;;  %1449 = vmatpush.msra.mxu1 %v477_v26  ;;  %v576_v22 = vld [vmem:[#allocation6 + $0x1c0] sm:$0xff]  ;;  %v577_v25 = vld [vmem:[#allocation6 + $0x1c8] sm:$0xff] }
  0xfd   :  { %1472 = vmatpush.msra.mxu2 %v478_v27  ;;  %1495 = vmatpush.msra.mxu3 %v479_v28  ;;  %v1122_v42 = vpop.f32.mrf.mxu3  ;;  %v704_v24 = vld [vmem:[#allocation6 + $0x5c0] sm:$0xff] }
  0xfe   :  { %1427 = vmatpush.msra.mxu0 %v472_v31  ;;  %1450 = vmatpush.msra.mxu1 %v473_v34  ;;  %v1056_v51 = vpop.f32.mrf.mxu0  ;;  %v1123_v47 = vadd.f32 %v1122_v42, %v1100_v35  ;;  %v636_v26 = vld [vmem:[#allocation6 + $0x3a0] sm:$0xff] }
  0xff   :  { %1473 = vmatpush.msra.mxu2 %v474_v37  ;;  %1496 = vmatpush.msra.mxu3 %v475_v38  ;;  %v1057_v48 = vadd.f32 %v1056_v51, %v1034_v30  ;;  %v572_v27 = vld [vmem:[#allocation6 + $0x1a0] sm:$0xff]  ;;  %v569_v37 = vld [vmem:[#allocation6 + $0x188] sm:$0xff] }
 0x100   :  { %1428 = vmatpush.msra.mxu0 %v468_v36  ;;  %1451 = vmatpush.msra.mxu1 %v469_v40  ;;  %v1408_v59 = vmul.f32 0.01, %v1123_v47  ;;  %vm1404_vm3 = vcmp.gt.f32.partialorder %v1123_v47, 0.0  ;;  %v700_v28 = vld [vmem:[#allocation6 + $0x5a0] sm:$0xff] }
 0x101   :  { %1474 = vmatpush.msra.mxu2 %v470_v43  ;;  %1497 = vmatpush.msra.mxu3 %v471_v45  ;;  %v1079_v60 = vpop.f32.mrf.mxu1  ;;  %v632_v31 = vld [vmem:[#allocation6 + $0x380] sm:$0xff]  ;;  %v565_v43 = vld [vmem:[#allocation6 + $0x168] sm:$0xff] }
 0x102   :  { %1429 = vmatpush.msra.mxu0 %v464_v49  ;;  %1452 = vmatpush.msra.mxu1 %v465_v52  ;;  %v1080_v3 = vadd.f32 %v1079_v60, %v1057_v48  ;;  %v1412_v12 = vsel %vm1404_vm3, %v1123_v47, %v1408_v59  ;;  %v568_v34 = vld [vmem:[#allocation6 + $0x180] sm:$0xff]  ;;  %v561_v48 = vld [vmem:[#allocation6 + $0x148] sm:$0xff] }
 0x103   :  { %1475 = vmatpush.msra.mxu2 %v466_v54  ;;  %1498 = vmatpush.msra.mxu3 %v467_v55  ;;  %v696_v35 = vld [vmem:[#allocation6 + $0x580] sm:$0xff]  ;;  %v557_v55 = vld [vmem:[#allocation6 + $0x128] sm:$0xff] }
 0x104   :  { %1430 = vmatpush.msra.mxu0 %v460_v62  ;;  %1453 = vmatpush.msra.mxu1 %v461_v63  ;;  %v1102_v8 = vpop.f32.mrf.mxu2  ;;  %v628_v38 = vld [vmem:[#allocation6 + $0x360] sm:$0xff]  ;;  %v553_v63 = vld [vmem:[#allocation6 + $0x108] sm:$0xff] }
 0x105   :  { %1476 = vmatpush.msra.mxu2 %v462_v61  ;;  %1499 = vmatpush.msra.mxu3 %v463_v2  ;;  %v1103_v9 = vadd.f32 %v1102_v8, %v1080_v3  ;;  %v564_v36 = vld [vmem:[#allocation6 + $0x160] sm:$0xff]  ;;  %v545_v8 = vld [vmem:[#allocation6 + $0xc8] sm:$0xff] }
 0x106   :  { %1431 = vmatpush.msra.mxu0 %v456_v4  ;;  %1454 = vmatpush.msra.mxu1 %v457_v6  ;;  %v692_v40 = vld [vmem:[#allocation6 + $0x560] sm:$0xff]  ;;  %v549_v4 = vld [vmem:[#allocation6 + $0xe8] sm:$0xff] }
 0x107   :  { %1477 = vmatpush.msra.mxu2 %v458_v11  ;;  %1500 = vmatpush.msra.mxu3 %v459_v7  ;;  %v1125_v14 = vpop.f32.mrf.mxu3  ;;  %v624_v42 = vld [vmem:[#allocation6 + $0x340] sm:$0xff] }
 0x108   :  { %1432 = vmatmul.f32.vlgmr.msra.gmra.mxu0 %v1412_v12  ;;  %1455 = vmatmul.f32.vlgmr.msra.gmra.mxu1 %v1412_v12  ;;  %v1126_v18 = vadd.f32 %v1125_v14, %v1103_v9  ;;  %v560_v45 = vld [vmem:[#allocation6 + $0x140] sm:$0xff] }
 0x109   :  { %1478 = vmatmul.f32.vlgmr.msra.gmra.mxu2 %v1412_v12  ;;  %1501 = vmatmul.f32.vlgmr.msra.gmra.mxu3 %v1412_v12  ;;  %v688_v51 = vld [vmem:[#allocation6 + $0x540] sm:$0xff] }
 0x10a   :  { %vm1406_vm4 = vcmp.gt.f32.partialorder %v1126_v18, 0.0  ;;  %v1410_v23 = vmul.f32 0.01, %v1126_v18  ;;  %1729 = vmatpush.msrb.mxu1 %v644_v15  ;;  %1706 = vmatpush.msrb.mxu0 %v580_v16  ;;  %v620_v47 = vld [vmem:[#allocation6 + $0x320] sm:$0xff]  ;;  %v541_v15 = vld [vmem:[#allocation6 + $0xa8] sm:$0xff] }
 0x10b   :  { %1752 = vmatpush.msrb.mxu2 %v708_v19  ;;  %1775 = vmatpush.msrb.mxu3 %v581_v20  ;;  %v556_v49 = vld [vmem:[#allocation6 + $0x120] sm:$0xff]  ;;  %v537_v20 = vld [vmem:[#allocation6 + $0x88] sm:$0xff] }
 0x10c   :  { %1730 = vmatpush.msrb.mxu1 %v640_v21  ;;  %1707 = vmatpush.msrb.mxu0 %v576_v22  ;;  %v1414_v30 = vsel %vm1406_vm4, %v1126_v18, %v1410_v23  ;;  %v684_v52 = vld [vmem:[#allocation6 + $0x520] sm:$0xff] }
 0x10d   :  { %1753 = vmatpush.msrb.mxu2 %v704_v24  ;;  %1776 = vmatpush.msrb.mxu3 %v577_v25  ;;  %v616_v54 = vld [vmem:[#allocation6 + $0x300] sm:$0xff]  ;;  %v533_v24 = vld [vmem:[#allocation6 + $0x68] sm:$0xff] }
 0x10e   :  { %1731 = vmatpush.msrb.mxu1 %v636_v26  ;;  %1708 = vmatpush.msrb.mxu0 %v572_v27  ;;  %v552_v59 = vld [vmem:[#allocation6 + $0x100] sm:$0xff] }
 0x10f   :  { %1754 = vmatpush.msrb.mxu2 %v700_v28  ;;  %1777 = vmatpush.msrb.mxu3 %v573_v29  ;;  %v680_v60 = vld [vmem:[#allocation6 + $0x500] sm:$0xff]  ;;  %v529_v28 = vld [vmem:[#allocation6 + $0x48] sm:$0xff] }
 0x110   :  { %1435 = vmatmul.f32.gmra.mxu0 %v1414_v30  ;;  %1458 = vmatmul.f32.gmra.mxu1 %v1414_v30  ;;  %v612_v62 = vld [vmem:[#allocation6 + $0x2e0] sm:$0xff] }
 0x111   :  { %1481 = vmatmul.f32.gmra.mxu2 %v1414_v30  ;;  %1504 = vmatmul.f32.gmra.mxu3 %v1414_v30  ;;  %v548_v61 = vld [vmem:[#allocation6 + $0xe0] sm:$0xff] }
 0x112   :  { %1732 = vmatpush.msrb.mxu1 %v632_v31  ;;  %1709 = vmatpush.msrb.mxu0 %v568_v34  ;;  %v608_v2 = vld [vmem:[#allocation6 + $0x2c0] sm:$0xff]  ;;  %v525_v34 = vld [vmem:[#allocation6 + $0x28] sm:$0xff] }
 0x113   :  { %1755 = vmatpush.msrb.mxu2 %v696_v35  ;;  %1778 = vmatpush.msrb.mxu3 %v569_v37  ;;  %v676_v3 = vld [vmem:[#allocation6 + $0x4e0] sm:$0xff]  ;;  %v709_v35 = vld [vmem:[#allocation6 + $0x5e8] sm:$0xff] }
 0x114   :  { %1733 = vmatpush.msrb.mxu1 %v628_v38  ;;  %1710 = vmatpush.msrb.mxu0 %v564_v36  ;;  %v544_v6 = vld [vmem:[#allocation6 + $0xc0] sm:$0xff]  ;;  %v521_v36 = vld [vmem:[#allocation6 + $0x8] sm:$0xff] }
 0x115   :  { %1756 = vmatpush.msrb.mxu2 %v692_v40  ;;  %1779 = vmatpush.msrb.mxu3 %v565_v43  ;;  %v604_v11 = vld [vmem:[#allocation6 + $0x2a0] sm:$0xff]  ;;  %v645_v40 = vld [vmem:[#allocation6 + $0x3e8] sm:$0xff]  ;;  %v582_v43 = vld [vmem:[#allocation6 + $0x1f0] sm:$0xff] }
 0x116   :  { %1734 = vmatpush.msrb.mxu1 %v624_v42  ;;  %1711 = vmatpush.msrb.mxu0 %v560_v45  ;;  %v672_v7 = vld [vmem:[#allocation6 + $0x4c0] sm:$0xff]  ;;  %v705_v42 = vld [vmem:[#allocation6 + $0x5c8] sm:$0xff]  ;;  %v646_v45 = vld [vmem:[#allocation6 + $0x3f0] sm:$0xff] }
 0x117   :  { %1757 = vmatpush.msrb.mxu2 %v688_v51  ;;  %1780 = vmatpush.msrb.mxu3 %v561_v48  ;;  %v540_v9 = vld [vmem:[#allocation6 + $0xa0] sm:$0xff]  ;;  %v641_v51 = vld [vmem:[#allocation6 + $0x3c8] sm:$0xff]  ;;  %v578_v48 = vld [vmem:[#allocation6 + $0x1d0] sm:$0xff] }
 0x118   :  { %1735 = vmatpush.msrb.mxu1 %v620_v47  ;;  %1712 = vmatpush.msrb.mxu0 %v556_v49  ;;  %v600_v12 = vld [vmem:[#allocation6 + $0x280] sm:$0xff]  ;;  %v701_v47 = vld [vmem:[#allocation6 + $0x5a8] sm:$0xff]  ;;  %v642_v49 = vld [vmem:[#allocation6 + $0x3d0] sm:$0xff] }
 0x119   :  { %1758 = vmatpush.msrb.mxu2 %v684_v52  ;;  %1781 = vmatpush.msrb.mxu3 %v557_v55  ;;  %v668_v14 = vld [vmem:[#allocation6 + $0x4a0] sm:$0xff]  ;;  %v637_v52 = vld [vmem:[#allocation6 + $0x3a8] sm:$0xff]  ;;  %v574_v55 = vld [vmem:[#allocation6 + $0x1b0] sm:$0xff] }
 0x11a   :  { %1736 = vmatpush.msrb.mxu1 %v616_v54  ;;  %1713 = vmatpush.msrb.mxu0 %v552_v59  ;;  %v536_v16 = vld [vmem:[#allocation6 + $0x80] sm:$0xff]  ;;  %v697_v54 = vld [vmem:[#allocation6 + $0x588] sm:$0xff]  ;;  %v638_v59 = vld [vmem:[#allocation6 + $0x3b0] sm:$0xff] }
 0x11b   :  { %1759 = vmatpush.msrb.mxu2 %v680_v60  ;;  %1782 = vmatpush.msrb.mxu3 %v553_v63  ;;  %v596_v18 = vld [vmem:[#allocation6 + $0x260] sm:$0xff]  ;;  %v633_v60 = vld [vmem:[#allocation6 + $0x388] sm:$0xff]  ;;  %v570_v63 = vld [vmem:[#allocation6 + $0x190] sm:$0xff] }
 0x11c   :  { %1737 = vmatpush.msrb.mxu1 %v612_v62  ;;  %1714 = vmatpush.msrb.mxu0 %v548_v61  ;;  %v664_v19 = vld [vmem:[#allocation6 + $0x480] sm:$0xff]  ;;  %v693_v62 = vld [vmem:[#allocation6 + $0x568] sm:$0xff]  ;;  %v634_v61 = vld [vmem:[#allocation6 + $0x390] sm:$0xff] }
 0x11d   :  { %1760 = vmatpush.msrb.mxu2 %v676_v3  ;;  %1783 = vmatpush.msrb.mxu3 %v549_v4  ;;  %v532_v21 = vld [vmem:[#allocation6 + $0x60] sm:$0xff]  ;;  %v689_v3 = vld [vmem:[#allocation6 + $0x548] sm:$0xff]  ;;  %v566_v4 = vld [vmem:[#allocation6 + $0x170] sm:$0xff] }
 0x11e   :  { %1738 = vmatpush.msrb.mxu1 %v608_v2  ;;  %1715 = vmatpush.msrb.mxu0 %v544_v6  ;;  %v592_v22 = vld [vmem:[#allocation6 + $0x240] sm:$0xff]  ;;  %v629_v2 = vld [vmem:[#allocation6 + $0x368] sm:$0xff]  ;;  %v630_v6 = vld [vmem:[#allocation6 + $0x370] sm:$0xff] }
 0x11f   :  { %1761 = vmatpush.msrb.mxu2 %v672_v7  ;;  %1784 = vmatpush.msrb.mxu3 %v545_v8  ;;  %v660_v23 = vld [vmem:[#allocation6 + $0x460] sm:$0xff]  ;;  %v685_v7 = vld [vmem:[#allocation6 + $0x528] sm:$0xff] }
 0x120   :  { %1739 = vmatpush.msrb.mxu1 %v604_v11  ;;  %1716 = vmatpush.msrb.mxu0 %v540_v9  ;;  %v528_v25 = vld [vmem:[#allocation6 + $0x40] sm:$0xff]  ;;  %v625_v11 = vld [vmem:[#allocation6 + $0x348] sm:$0xff]  ;;  %v562_v9 = vld [vmem:[#allocation6 + $0x150] sm:$0xff] }
 0x121   :  { %1762 = vmatpush.msrb.mxu2 %v668_v14  ;;  %1785 = vmatpush.msrb.mxu3 %v541_v15  ;;  %v588_v26 = vld [vmem:[#allocation6 + $0x220] sm:$0xff]  ;;  %v621_v14 = vld [vmem:[#allocation6 + $0x328] sm:$0xff] }
 0x122   :  { %1740 = vmatpush.msrb.mxu1 %v600_v12  ;;  %1717 = vmatpush.msrb.mxu0 %v536_v16  ;;  %v656_v27 = vld [vmem:[#allocation6 + $0x440] sm:$0xff]  ;;  %v626_v12 = vld [vmem:[#allocation6 + $0x350] sm:$0xff]  ;;  %v681_v15 = vld [vmem:[#allocation6 + $0x508] sm:$0xff] }
 0x123   :  { %1763 = vmatpush.msrb.mxu2 %v664_v19  ;;  %1786 = vmatpush.msrb.mxu3 %v537_v20  ;;  %v524_v29 = vld [vmem:[#allocation6 + $0x20] sm:$0xff]  ;;  %v622_v19 = vld [vmem:[#allocation6 + $0x330] sm:$0xff]  ;;  %v617_v20 = vld [vmem:[#allocation6 + $0x308] sm:$0xff] }
 0x124   :  { %1741 = vmatpush.msrb.mxu1 %v596_v18  ;;  %1718 = vmatpush.msrb.mxu0 %v532_v21  ;;  %v584_v30 = vld [vmem:[#allocation6 + $0x200] sm:$0xff]  ;;  %v558_v18 = vld [vmem:[#allocation6 + $0x130] sm:$0xff]  ;;  %v677_v21 = vld [vmem:[#allocation6 + $0x4e8] sm:$0xff] }
 0x125   :  { %1764 = vmatpush.msrb.mxu2 %v660_v23  ;;  %1787 = vmatpush.msrb.mxu3 %v533_v24  ;;  %v652_v31 = vld [vmem:[#allocation6 + $0x420] sm:$0xff]  ;;  %v618_v24 = vld [vmem:[#allocation6 + $0x310] sm:$0xff] }
 0x126   :  { %1742 = vmatpush.msrb.mxu1 %v592_v22  ;;  %1719 = vmatpush.msrb.mxu0 %v528_v25  ;;  %v520_v37 = vld [vmem:[#allocation6] sm:$0xff]  ;;  %v554_v22 = vld [vmem:[#allocation6 + $0x110] sm:$0xff]  ;;  %v613_v25 = vld [vmem:[#allocation6 + $0x2e8] sm:$0xff] }
 0x127   :  { %1765 = vmatpush.msrb.mxu2 %v656_v27  ;;  %1788 = vmatpush.msrb.mxu3 %v529_v28  ;;  %v648_v38 = vld [vmem:[#allocation6 + $0x400] sm:$0xff]  ;;  %v550_v27 = vld [vmem:[#allocation6 + $0xf0] sm:$0xff] }
 0x128   :  { %1743 = vmatpush.msrb.mxu1 %v588_v26  ;;  %1720 = vmatpush.msrb.mxu0 %v524_v29  ;;  %v673_v26 = vld [vmem:[#allocation6 + $0x4c8] sm:$0xff]  ;;  %v614_v29 = vld [vmem:[#allocation6 + $0x2f0] sm:$0xff] }
 0x129   :  { %1766 = vmatpush.msrb.mxu2 %v652_v31  ;;  %1789 = vmatpush.msrb.mxu3 %v525_v34  ;;  %v669_v31 = vld [vmem:[#allocation6 + $0x4a8] sm:$0xff]  ;;  %v546_v34 = vld [vmem:[#allocation6 + $0xd0] sm:$0xff] }
 0x12a   :  { %1744 = vmatpush.msrb.mxu1 %v584_v30  ;;  %1721 = vmatpush.msrb.mxu0 %v520_v37  ;;  %v609_v30 = vld [vmem:[#allocation6 + $0x2c8] sm:$0xff]  ;;  %v610_v37 = vld [vmem:[#allocation6 + $0x2d0] sm:$0xff] }
 0x12b   :  { %1767 = vmatpush.msrb.mxu2 %v648_v38  ;;  %1790 = vmatpush.msrb.mxu3 %v521_v36  ;;  %v605_v38 = vld [vmem:[#allocation6 + $0x2a8] sm:$0xff] }
 0x12c   :  { %1821 = vmatpush.msra.mxu1 %v709_v35  ;;  %1798 = vmatpush.msra.mxu0 %v645_v40  ;;  %v665_v36 = vld [vmem:[#allocation6 + $0x488] sm:$0xff]  ;;  %v542_v40 = vld [vmem:[#allocation6 + $0xb0] sm:$0xff] }
 0x12d   :  { %1844 = vmatpush.msra.mxu2 %v582_v43  ;;  %1867 = vmatpush.msra.mxu3 %v646_v45  ;;  %v606_v43 = vld [vmem:[#allocation6 + $0x2b0] sm:$0xff] }
 0x12e   :  { %1822 = vmatpush.msra.mxu1 %v705_v42  ;;  %1799 = vmatpush.msra.mxu0 %v641_v51  ;;  %v1145_v8 = vpop.f32.mrf.mxu0  ;;  %v601_v51 = vld [vmem:[#allocation6 + $0x288] sm:$0xff] }
 0x12f   :  { %1845 = vmatpush.msra.mxu2 %v578_v48  ;;  %1868 = vmatpush.msra.mxu3 %v642_v49  ;;  %v538_v48 = vld [vmem:[#allocation6 + $0x90] sm:$0xff] }
 0x130   :  { %1823 = vmatpush.msra.mxu1 %v701_v47  ;;  %1800 = vmatpush.msra.mxu0 %v637_v52  ;;  %v661_v47 = vld [vmem:[#allocation6 + $0x468] sm:$0xff]  ;;  %v602_v49 = vld [vmem:[#allocation6 + $0x290] sm:$0xff] }
 0x131   :  { %1846 = vmatpush.msra.mxu2 %v574_v55  ;;  %1869 = vmatpush.msra.mxu3 %v638_v59  ;;  %v1168_v16 = vpop.f32.mrf.mxu1  ;;  %v597_v52 = vld [vmem:[#allocation6 + $0x268] sm:$0xff]  ;;  %v534_v55 = vld [vmem:[#allocation6 + $0x70] sm:$0xff] }
 0x132   :  { %1824 = vmatpush.msra.mxu1 %v697_v54  ;;  %1801 = vmatpush.msra.mxu0 %v633_v60  ;;  %v1191_v23 = vpop.f32.mrf.mxu2  ;;  %v1169_v45 = vadd.f32 %v1168_v16, %v1145_v8  ;;  %v657_v54 = vld [vmem:[#allocation6 + $0x448] sm:$0xff]  ;;  %v598_v60 = vld [vmem:[#allocation6 + $0x270] sm:$0xff] }
 0x133   :  { %1847 = vmatpush.msra.mxu2 %v570_v63  ;;  %1870 = vmatpush.msra.mxu3 %v634_v61  ;;  %v593_v63 = vld [vmem:[#allocation6 + $0x248] sm:$0xff] }
 0x134   :  { %1825 = vmatpush.msra.mxu1 %v693_v62  ;;  %1802 = vmatpush.msra.mxu0 %v629_v2  ;;  %v1192_v62 = vadd.f32 %v1191_v23, %v1169_v45  ;;  %v653_v61 = vld [vmem:[#allocation6 + $0x428] sm:$0xff]  ;;  %v530_v2 = vld [vmem:[#allocation6 + $0x50] sm:$0xff] }
 0x135   :  { %1848 = vmatpush.msra.mxu2 %v566_v4  ;;  %1871 = vmatpush.msra.mxu3 %v630_v6  ;;  %v1214_v28 = vpop.f32.mrf.mxu3  ;;  %v594_v4 = vld [vmem:[#allocation6 + $0x250] sm:$0xff]  ;;  %v589_v6 = vld [vmem:[#allocation6 + $0x228] sm:$0xff] }
 0x136   :  { %1826 = vmatpush.msra.mxu1 %v689_v3  ;;  %1803 = vmatpush.msra.mxu0 %v625_v11  ;;  %v649_v11 = vld [vmem:[#allocation6 + $0x408] sm:$0xff] }
 0x137   :  { %1849 = vmatpush.msra.mxu2 %v562_v9  ;;  %1872 = vmatpush.msra.mxu3 %v626_v12  ;;  %v590_v9 = vld [vmem:[#allocation6 + $0x230] sm:$0xff]  ;;  %v1215_v12 = vadd.f32 %v1214_v28, %v1192_v62  ;;  %v585_v16 = vld [vmem:[#allocation6 + $0x208] sm:$0xff] }
 0x138   :  { %1827 = vmatpush.msra.mxu1 %v685_v7  ;;  %1804 = vmatpush.msra.mxu0 %v621_v14  ;;  %v1148_v35 = vpop.f32.mrf.mxu0  ;;  %v526_v7 = vld [vmem:[#allocation6 + $0x30] sm:$0xff] }
 0x139   :  { %1850 = vmatpush.msra.mxu2 %v558_v18  ;;  %1873 = vmatpush.msra.mxu3 %v622_v19  ;;  %v522_v18 = vld [vmem:[#allocation6 + $0x10] sm:$0xff] }
 0x13a   :  { %1828 = vmatpush.msra.mxu1 %v681_v15  ;;  %1805 = vmatpush.msra.mxu0 %v617_v20  ;;  %v586_v19 = vld [vmem:[#allocation6 + $0x210] sm:$0xff] }
 0x13b   :  { %1851 = vmatpush.msra.mxu2 %v554_v22  ;;  %1874 = vmatpush.msra.mxu3 %v618_v24 }
 0x13c   :  { %1829 = vmatpush.msra.mxu1 %v677_v21  ;;  %1806 = vmatpush.msra.mxu0 %v613_v25  ;;  %v1171_v42 = vpop.f32.mrf.mxu1  ;;  %v1194_v59 = vpop.f32.mrf.mxu2 }
 0x13d   :  { %1852 = vmatpush.msra.mxu2 %v550_v27  ;;  %1875 = vmatpush.msra.mxu3 %v614_v29  ;;  %v1172_v14 = vadd.f32 %v1171_v42, %v1148_v35 }
 0x13e   :  { %1830 = vmatpush.msra.mxu1 %v673_v26  ;;  %1807 = vmatpush.msra.mxu0 %v609_v30 }
 0x13f   :  { %1853 = vmatpush.msra.mxu2 %v546_v34  ;;  %1876 = vmatpush.msra.mxu3 %v610_v37  ;;  %v1217_v3 = vpop.f32.mrf.mxu3  ;;  %v1195_v20 = vadd.f32 %v1194_v59, %v1172_v14  ;;  %v583_v59 = vld [vmem:[#allocation6 + $0x1f8] sm:$0xff] }
 0x140   :  { %1831 = vmatpush.msra.mxu1 %v669_v31  ;;  %1808 = vmatpush.msra.mxu0 %v605_v38  ;;  %v575_v14 = vld [vmem:[#allocation6 + $0x1b8] sm:$0xff] }
 0x141   :  { %1854 = vmatpush.msra.mxu2 %v542_v40  ;;  %1877 = vmatpush.msra.mxu3 %v606_v43  ;;  %v1218_v24 = vadd.f32 %v1217_v3, %v1195_v20  ;;  %v710_v3 = vld [vmem:[#allocation6 + $0x5f0] sm:$0xff]  ;;  %v571_v20 = vld [vmem:[#allocation6 + $0x198] sm:$0xff] }
 0x142   :  { %1832 = vmatpush.msra.mxu1 %v665_v36  ;;  %1809 = vmatpush.msra.mxu0 %v601_v51 }
 0x143   :  { %1855 = vmatpush.msra.mxu2 %v538_v48  ;;  %1878 = vmatpush.msra.mxu3 %v602_v49 }
 0x144   :  { %1833 = vmatpush.msra.mxu1 %v661_v47  ;;  %1810 = vmatpush.msra.mxu0 %v597_v52  ;;  %v1237_v8 = vpop.f32.mrf.mxu0 }
 0x145   :  { %1856 = vmatpush.msra.mxu2 %v534_v55  ;;  %1879 = vmatpush.msra.mxu3 %v598_v60  ;;  %v1238_v21 = vadd.f32 %v1237_v8, %v1215_v12  ;;  %v711_v8 = vld [vmem:[#allocation6 + $0x5f8] sm:$0xff] }
 0x146   :  { %1834 = vmatpush.msra.mxu1 %v657_v54  ;;  %1811 = vmatpush.msra.mxu0 %v593_v63 }
 0x147   :  { %1857 = vmatpush.msra.mxu2 %v530_v2  ;;  %1880 = vmatpush.msra.mxu3 %v594_v4  ;;  %v1260_v15 = vpop.f32.mrf.mxu1 }
 0x148   :  { %1835 = vmatpush.msra.mxu1 %v653_v61  ;;  %1812 = vmatpush.msra.mxu0 %v589_v6  ;;  %v1283_v22 = vpop.f32.mrf.mxu2  ;;  %v1261_v25 = vadd.f32 %v1260_v15, %v1238_v21  ;;  %v579_v6 = vld [vmem:[#allocation6 + $0x1d8] sm:$0xff] }
 0x149   :  { %1858 = vmatpush.msra.mxu2 %v526_v7  ;;  %1881 = vmatpush.msra.mxu3 %v590_v9  ;;  %v706_v9 = vld [vmem:[#allocation6 + $0x5d0] sm:$0xff]  ;;  %v643_v15 = vld [vmem:[#allocation6 + $0x3d8] sm:$0xff] }
 0x14a   :  { %1836 = vmatpush.msra.mxu1 %v649_v11  ;;  %1813 = vmatpush.msra.mxu0 %v585_v16  ;;  %v1284_v29 = vadd.f32 %v1283_v22, %v1261_v25  ;;  %v647_v11 = vld [vmem:[#allocation6 + $0x3f8] sm:$0xff] }
 0x14b   :  { %1859 = vmatpush.msra.mxu2 %v522_v18  ;;  %1882 = vmatpush.msra.mxu3 %v586_v19  ;;  %v1306_v23 = vpop.f32.mrf.mxu3  ;;  %v707_v16 = vld [vmem:[#allocation6 + $0x5d8] sm:$0xff]  ;;  %v702_v18 = vld [vmem:[#allocation6 + $0x5b0] sm:$0xff] }
 0x14c   :  { %v1307_v31 = vadd.f32 %v1306_v23, %v1284_v29  ;;  %v639_v21 = vld [vmem:[#allocation6 + $0x3b8] sm:$0xff] }
 0x14d   :  { %v703_v22 = vld [vmem:[#allocation6 + $0x5b8] sm:$0xff] }
 0x14e   :  { %v1240_v26 = vpop.f32.mrf.mxu0  ;;  %v567_v25 = vld [vmem:[#allocation6 + $0x178] sm:$0xff] }
 0x14f   :  { %v1241_v28 = vadd.f32 %v1240_v26, %v1218_v24  ;;  %v698_v24 = vld [vmem:[#allocation6 + $0x590] sm:$0xff]  ;;  %v635_v26 = vld [vmem:[#allocation6 + $0x398] sm:$0xff] }
 0x151   :  { %v1263_v27 = vpop.f32.mrf.mxu1 }
 0x152   :  { %v1286_v30 = vpop.f32.mrf.mxu2  ;;  %v1264_v34 = vadd.f32 %v1263_v27, %v1241_v28  ;;  %v699_v27 = vld [vmem:[#allocation6 + $0x598] sm:$0xff] }
 0x154   :  { %v1287_v40 = vadd.f32 %v1286_v30, %v1264_v34  ;;  %v694_v30 = vld [vmem:[#allocation6 + $0x570] sm:$0xff]  ;;  %v631_v34 = vld [vmem:[#allocation6 + $0x378] sm:$0xff] }
 0x155   :  { %v1309_v35 = vpop.f32.mrf.mxu3 }
 0x156   :  { %v1310_v45 = vadd.f32 %v1309_v35, %v1287_v40  ;;  %v695_v35 = vld [vmem:[#allocation6 + $0x578] sm:$0xff] }
 0x157   :  { %v691_v40 = vld [vmem:[#allocation6 + $0x558] sm:$0xff] }
 0x160   :  { %v1329_v37 = vpop.f32.mrf.mxu0 }
 0x161   :  { %v1330_v38 = vadd.f32 %v1329_v37, %v1307_v31  ;;  %v563_v31 = vld [vmem:[#allocation6 + $0x158] sm:$0xff]  ;;  %v690_v37 = vld [vmem:[#allocation6 + $0x550] sm:$0xff] }
 0x162   :  { %v1352_v36 = vpop.f32.mrf.mxu1 }
 0x163   :  { %v1353_v42 = vadd.f32 %v1352_v36, %v1330_v38  ;;  %v559_v38 = vld [vmem:[#allocation6 + $0x138] sm:$0xff] }
 0x164   :  { %v627_v36 = vld [vmem:[#allocation6 + $0x358] sm:$0xff] }
 0x166   :  { %v1375_v43 = vpop.f32.mrf.mxu2 }
 0x167   :  { %v1376_v51 = vadd.f32 %v1375_v43, %v1353_v42  ;;  %v686_v42 = vld [vmem:[#allocation6 + $0x530] sm:$0xff]  ;;  %v555_v43 = vld [vmem:[#allocation6 + $0x118] sm:$0xff] }
 0x168   :  { %v1332_v47 = vpop.f32.mrf.mxu0  ;;  %v1398_v48 = vpop.f32.mrf.mxu3 }
 0x169   :  { %v1333_v49 = vadd.f32 %v1332_v47, %v1310_v45  ;;  %v1399_v52 = vadd.f32 %v1398_v48, %v1376_v51  ;;  %v623_v45 = vld [vmem:[#allocation6 + $0x338] sm:$0xff]  ;;  %v682_v47 = vld [vmem:[#allocation6 + $0x510] sm:$0xff] }
 0x16a   :  { %v1355_v54 = vpop.f32.mrf.mxu1  ;;  %v687_v51 = vld [vmem:[#allocation6 + $0x538] sm:$0xff] }
 0x16b   :  { %vm1405_vm5 = vcmp.gt.f32.partialorder %v1399_v52, 0.0  ;;  %v1409_v55 = vmul.f32 0.01, %v1399_v52  ;;  %v1356_v62 = vadd.f32 %v1355_v54, %v1333_v49  ;;  %v551_v48 = vld [vmem:[#allocation6 + $0xf8] sm:$0xff]  ;;  %v678_v54 = vld [vmem:[#allocation6 + $0x4f0] sm:$0xff] }
 0x16c   :  { %v619_v49 = vld [vmem:[#allocation6 + $0x318] sm:$0xff] }
 0x16d   :  { %v2891_v60 = vsel %vm1405_vm5, %v1399_v52, %v1409_v55  ;;  %v683_v52 = vld [vmem:[#allocation6 + $0x518] sm:$0xff] }
 0x16e   :  { %v1378_v63 = vpop.f32.mrf.mxu2  ;;  %1745 = vmatmul.f32.vlgmr.msrb.gmra.mxu1 %v2891_v60  ;;  %v2895_v61 = vrot.slane %v2891_v60, 7  ;;  %v2898_v2 = vrot.slane %v2891_v60, 1  ;;  %v547_v55 = vld [vmem:[#allocation6 + $0xd8] sm:$0xff] }
 0x16f   :  { %v1379_v4 = vadd.f32 %v1378_v63, %v1356_v62  ;;  %1913 = vmatpush.msrb.mxu1 %v583_v59  ;;  %v615_v59 = vld [vmem:[#allocation6 + $0x2f8] sm:$0xff]  ;;  %v674_v63 = vld [vmem:[#allocation6 + $0x4d0] sm:$0xff] }
 0x170   :  { %v1401_v7 = vpop.f32.mrf.mxu3  ;;  %2458 = vmatmul.msk.f32.vlgmr.msrb.gmra.mxu0 %vm2704_vm1, %v2895_v61  ;;  %2461 = vmatmul.msk.f32.vlgmr.msrb.gmra.mxu2 %vm761_vm2, %v2898_v2  ;;  %v679_v62 = vld [vmem:[#allocation6 + $0x4f8] sm:$0xff] }
 0x171   :  { %v1402_v12 = vadd.f32 %v1401_v7, %v1379_v4  ;;  %2464 = vmatmul.msk.f32.vlgmr.msrb.gmra.mxu3 %vm2704_vm1, %v2895_v61  ;;  %1890 = vmatpush.msrb.mxu0 %v710_v3  ;;  %v543_v3 = vld [vmem:[#allocation6 + $0xb8] sm:$0xff] }
 0x172   :  { %1914 = vmatpush.msrb.mxu1 %v579_v6  ;;  %1936 = vmatpush.msrb.mxu2 %v647_v11  ;;  %v611_v4 = vld [vmem:[#allocation6 + $0x2d8] sm:$0xff]  ;;  %v670_v11 = vld [vmem:[#allocation6 + $0x4b0] sm:$0xff] }
 0x173   :  { %vm1407_vm6 = vcmp.gt.f32.partialorder %v1402_v12, 0.0  ;;  %v1411_v19 = vmul.f32 0.01, %v1402_v12  ;;  %1959 = vmatpush.msrb.mxu3 %v711_v8  ;;  %1891 = vmatpush.msrb.mxu0 %v706_v9  ;;  %v675_v6 = vld [vmem:[#allocation6 + $0x4d8] sm:$0xff] }
 0x174   :  { %1915 = vmatpush.msrb.mxu1 %v575_v14  ;;  %1937 = vmatpush.msrb.mxu2 %v643_v15  ;;  %v539_v7 = vld [vmem:[#allocation6 + $0x98] sm:$0xff] }
 0x175   :  { %v2908_v23 = vsel %vm1407_vm6, %v1402_v12, %v1411_v19  ;;  %1960 = vmatpush.msrb.mxu3 %v707_v16  ;;  %1892 = vmatpush.msrb.mxu0 %v702_v18  ;;  %v607_v8 = vld [vmem:[#allocation6 + $0x2b8] sm:$0xff]  ;;  %v666_v12 = vld [vmem:[#allocation6 + $0x490] sm:$0xff] }
 0x176   :  { %1916 = vmatpush.msrb.mxu1 %v571_v20  ;;  %1938 = vmatpush.msrb.mxu2 %v639_v21  ;;  %v2911_v29 = vrot.slane %v2908_v23, 7  ;;  %v2914_v28 = vrot.slane %v2908_v23, 1  ;;  %v671_v9 = vld [vmem:[#allocation6 + $0x4b8] sm:$0xff]  ;;  %v662_v18 = vld [vmem:[#allocation6 + $0x470] sm:$0xff] }
 0x177   :  { %1961 = vmatpush.msrb.mxu3 %v703_v22  ;;  %1748 = vmatmul.f32.gmra.mxu1 %v2908_v23  ;;  %v535_v14 = vld [vmem:[#allocation6 + $0x78] sm:$0xff]  ;;  %v658_v22 = vld [vmem:[#allocation6 + $0x450] sm:$0xff] }
 0x178   :  { %1893 = vmatpush.msrb.mxu0 %v698_v24  ;;  %1917 = vmatpush.msrb.mxu1 %v567_v25  ;;  %v603_v15 = vld [vmem:[#allocation6 + $0x298] sm:$0xff] }
 0x179   :  { %1939 = vmatpush.msrb.mxu2 %v635_v26  ;;  %1962 = vmatpush.msrb.mxu3 %v699_v27  ;;  %v667_v16 = vld [vmem:[#allocation6 + $0x498] sm:$0xff]  ;;  %v654_v27 = vld [vmem:[#allocation6 + $0x430] sm:$0xff] }
 0x17a   :  { %2460 = vmatmul.msk.f32.gmra.mxu0 %vm2704_vm1, %v2911_v29  ;;  %2462 = vmatmul.msk.f32.gmra.mxu2 %vm761_vm2, %v2914_v28  ;;  %v531_v19 = vld [vmem:[#allocation6 + $0x58] sm:$0xff] }
 0x17b   :  { %2466 = vmatmul.msk.f32.gmra.mxu3 %vm2704_vm1, %v2911_v29  ;;  %1894 = vmatpush.msrb.mxu0 %v694_v30  ;;  %v599_v20 = vld [vmem:[#allocation6 + $0x278] sm:$0xff] }
 0x17c   :  { %1918 = vmatpush.msrb.mxu1 %v563_v31  ;;  %1940 = vmatpush.msrb.mxu2 %v631_v34  ;;  %v663_v21 = vld [vmem:[#allocation6 + $0x478] sm:$0xff] }
 0x17d   :  { %1963 = vmatpush.msrb.mxu3 %v695_v35  ;;  %1895 = vmatpush.msrb.mxu0 %v690_v37  ;;  %v527_v24 = vld [vmem:[#allocation6 + $0x38] sm:$0xff]  ;;  %v650_v35 = vld [vmem:[#allocation6 + $0x410] sm:$0xff] }
 0x17e   :  { %1919 = vmatpush.msrb.mxu1 %v559_v38  ;;  %1941 = vmatpush.msrb.mxu2 %v627_v36  ;;  %v595_v25 = vld [vmem:[#allocation6 + $0x258] sm:$0xff] }
 0x17f   :  { %1964 = vmatpush.msrb.mxu3 %v691_v40  ;;  %1896 = vmatpush.msrb.mxu0 %v686_v42  ;;  %v659_v26 = vld [vmem:[#allocation6 + $0x458] sm:$0xff] }
 0x180   :  { %1920 = vmatpush.msrb.mxu1 %v555_v43  ;;  %1942 = vmatpush.msrb.mxu2 %v623_v45  ;;  %v523_v30 = vld [vmem:[#allocation6 + $0x18] sm:$0xff] }
 0x181   :  { %1965 = vmatpush.msrb.mxu3 %v687_v51  ;;  %2467 = vmatmul.msk.f32.vlgmr.msra.gmra.mxu1 %vm761_vm2, %v2898_v2  ;;  %v591_v31 = vld [vmem:[#allocation6 + $0x238] sm:$0xff] }
 0x182   :  { %1897 = vmatpush.msrb.mxu0 %v682_v47  ;;  %1921 = vmatpush.msrb.mxu1 %v551_v48  ;;  %v655_v34 = vld [vmem:[#allocation6 + $0x438] sm:$0xff] }
 0x183   :  { %1943 = vmatpush.msrb.mxu2 %v619_v49  ;;  %1966 = vmatpush.msrb.mxu3 %v683_v52  ;;  %v587_v37 = vld [vmem:[#allocation6 + $0x218] sm:$0xff] }
 0x184   :  { %1814 = vmatmul.f32.vlgmr.msra.gmra.mxu0 %v2891_v60  ;;  %2470 = vmatmul.msk.f32.vlgmr.msra.gmra.mxu2 %vm2704_vm1, %v2895_v61  ;;  %v651_v38 = vld [vmem:[#allocation6 + $0x418] sm:$0xff] }
 0x185   :  { %1883 = vmatmul.f32.vlgmr.msra.gmra.mxu3 %v2891_v60  ;;  %1898 = vmatpush.msrb.mxu0 %v678_v54  ;;  %v2972_v54 = vld [vmem:[%s3809_s0] sm:$0xff] }
 0x186   :  { %1922 = vmatpush.msrb.mxu1 %v547_v55  ;;  %1944 = vmatpush.msrb.mxu2 %v615_v59  ;;  %v770_v55 = vrot.slane %v2972_v54, 6  ;;  %v737_v59 = vsel %vm736_vm0, 0.0, %v2709_v50 }
 0x187   :  { %1967 = vmatpush.msrb.mxu3 %v679_v62  ;;  %1899 = vmatpush.msrb.mxu0 %v674_v63  ;;  %v738_v63 = vsel %vm736_vm0, 0.0, %v2723_v57 }
 0x188   :  { %1923 = vmatpush.msrb.mxu1 %v543_v3  ;;  %1945 = vmatpush.msrb.mxu2 %v611_v4  ;;  %v2983_v3 = vld [vmem:[%s3809_s0 + $0x8] sm:$0xff] }
 0x189   :  { %1968 = vmatpush.msrb.mxu3 %v675_v6  ;;  %1900 = vmatpush.msrb.mxu0 %v670_v11  ;;  %v771_v4 = vrot.slane %v2983_v3, 6  ;;  %v787_v11 = vsel %vm786_vm7, 0.0, %v770_v55 }
 0x18a   :  { %1924 = vmatpush.msrb.mxu1 %v539_v7  ;;  %1946 = vmatpush.msrb.mxu2 %v607_v8  ;;  %v2166_v7 = vadd.f32 %v2972_v54, %v737_v59  ;;  %v762_v8 = vsel %vm761_vm2, %v2787_v32, 0.0 }
 0x18b   :  { %1969 = vmatpush.msrb.mxu3 %v671_v9  ;;  %2468 = vmatmul.msk.f32.gmra.mxu1 %vm761_vm2, %v2914_v28  ;;  %v2994_v9 = vsel %vm736_vm0, -inf, %v2709_v50 }
 0x18c   :  { %1901 = vmatpush.msrb.mxu0 %v666_v12  ;;  %1925 = vmatpush.msrb.mxu1 %v535_v14  ;;  %v2964_v51 = vpop.f32.mrf.mxu3  ;;  %v821_v12 = vsel %vm736_vm0, -inf, %v2723_v57  ;;  %v2167_v14 = vadd.f32 %v2983_v3, %v738_v63  ;;  %v2190_v50 = vmax.f32 %v2994_v9, %v2972_v54  ;;  %v3009_v57 = vsel %vm761_vm2, %v2787_v32, -inf }
 0x18d   :  { %1947 = vmatpush.msrb.mxu2 %v603_v15  ;;  %1970 = vmatpush.msrb.mxu3 %v667_v16  ;;  %v1511_v49 = vand.u32 2147483647, %v2964_v51 }
 0x18e   :  { %1817 = vmatmul.f32.gmra.mxu0 %v2908_v23  ;;  %2472 = vmatmul.msk.f32.gmra.mxu2 %vm2704_vm1, %v2911_v29 }
 0x18f   :  { %1886 = vmatmul.f32.gmra.mxu3 %v2908_v23  ;;  %1902 = vmatpush.msrb.mxu0 %v662_v18  ;;  %v1519_v62 = vsub.f32 0.0, %v1511_v49  ;;  %v2206_v18 = vadd.f32 %v787_v11, %v737_v59 }
 0x190   :  { %1926 = vmatpush.msrb.mxu1 %v531_v19  ;;  %1948 = vmatpush.msrb.mxu2 %v599_v20  ;;  %v763_v19 = vsel %vm761_vm2, %v2793_v39, 0.0  ;;  %v788_v20 = vsel %vm786_vm7, 0.0, %v771_v4 }
 0x191   :  { %1971 = vmatpush.msrb.mxu3 %v663_v21  ;;  %1903 = vmatpush.msrb.mxu0 %v658_v22  ;;  %v1530_v15 = vmul.f32 1.442695, %v1519_v62  ;;  %v2174_v22 = vadd.f32 %v2166_v7, %v762_v8  ;;  %v739_v62 = vsel %vm736_vm0, 0.0, %v2696_v44 }
 0x192   :  { %1927 = vmatpush.msrb.mxu1 %v527_v24  ;;  %1949 = vmatpush.msrb.mxu2 %v595_v25  ;;  %v3012_v24 = vsel %vm786_vm7, -inf, %v770_v55  ;;  %v837_v25 = vsel %vm786_vm7, -inf, %v771_v4 }
 0x193   :  { %1972 = vmatpush.msrb.mxu3 %v659_v26  ;;  %1904 = vmatpush.msrb.mxu0 %v654_v27  ;;  %v2191_v26 = vmax.f32 %v821_v12, %v2983_v3 }
 0x194   :  { %1928 = vmatpush.msrb.mxu1 %v523_v30  ;;  %1950 = vmatpush.msrb.mxu2 %v591_v31  ;;  %v2175_v30 = vadd.f32 %v2167_v14, %v763_v19  ;;  %v2207_v31 = vadd.f32 %v788_v20, %v738_v63  ;;  %v3049_v63 = vsel %vm761_vm2, %v2790_v33, 0.0 }
 0x195   :  { %1973 = vmatpush.msrb.mxu3 %v655_v34  ;;  %2476 = vmatmul.msk.f32.vlgmr.msrb.gmra.mxu1 %vm2704_vm1, %v2895_v61  ;;  %v2955_v61 = vpop.f32.mrf.mxu0  ;;  %v2214_v34 = vadd.f32 %v2972_v54, %v2206_v18 }
 0x196   :  { %1905 = vmatpush.msrb.mxu0 %v650_v35  ;;  %1951 = vmatpush.msrb.mxu2 %v587_v37  ;;  %v1508_v36 = vand.u32 2147483647, %v2955_v61  ;;  %v829_v35 = vsel %vm761_vm2, %v2793_v39, -inf  ;;  %v2182_v37 = vmul.f32 0.33333334, %v2174_v22  ;;  %vm1668_vm13 = vcmp.ge.f32.partialorder %v2955_v61, 0.0 }
 0x197   :  { %1974 = vmatpush.msrb.mxu3 %v651_v38  ;;  %2473 = vmatmul.msk.f32.vlgmr.msrb.gmra.mxu0 %vm761_vm2, %v2898_v2  ;;  %v2198_v38 = vmax.f32 %v2190_v50, %v3009_v57 }
 0x198   :  { %1952 = vmatmul.f32.vlgmr.msrb.gmra.mxu2 %v2891_v60  ;;  %2479 = vmatmul.msk.f32.vlgmr.msrb.gmra.mxu3 %vm761_vm2, %v2898_v2  ;;  %v2958_v60 = vpop.f32.mrf.mxu1  ;;  %v1516_v40 = vsub.f32 0.0, %v1508_v36 }
 0x199   :  { %v1509_v2 = vand.u32 2147483647, %v2958_v60  ;;  %v3041_v55 = vadd.f32 %v2198_v38, %v2182_v37  ;;  %vm1669_vm3 = vcmp.ge.f32.partialorder %v2958_v60, 0.0 }
 0x19a   :  { %v1524_v42 = vmul.f32 1.442695, %v1516_v40  ;;  %v3132_v40 = vsel %vm761_vm2, %v2796_v41, -inf }
 0x19b   :  { %v1517_v46 = vsub.f32 0.0, %v1509_v2  ;;  %v2247_v2 = vmax.f32 %v837_v25, %v821_v12  ;;  %3838 = vst [vmem:[#allocation11_spill] sm:$0xff] %v3132_v40 }
 0x19c   :  { %2488 = vpow2.f32 %v1524_v42  ;;  %v2255_v42 = vmax.f32 %v2983_v3, %v829_v35 }
 0x19d   :  { %2478 = vmatmul.msk.f32.gmra.mxu1 %vm2704_vm1, %v2911_v29  ;;  %v2961_v29 = vpop.f32.mrf.mxu2  ;;  %v1526_v43 = vmul.f32 1.442695, %v1517_v46  ;;  %v3059_v12 = vpop.f32.mrf.mxu0 }
 0x19e   :  { %v3053_v7 = vmax.f32 %v2247_v2, %v2255_v42  ;;  %v740_v42 = vsel %vm736_vm0, 0.0, %v2717_v53 }
 0x19f   :  { %2474 = vmatmul.msk.f32.gmra.mxu0 %vm761_vm2, %v2914_v28  ;;  %2490 = vpow2.f32 %v1526_v43  ;;  %v2183_v43 = vmul.f32 0.33333334, %v2175_v30 }
 0x1a0   :  { %1955 = vmatmul.f32.gmra.mxu2 %v2908_v23  ;;  %2480 = vmatmul.msk.f32.gmra.mxu3 %vm761_vm2, %v2914_v28  ;;  %v1510_v23 = vand.u32 2147483647, %v2961_v29  ;;  %v3061_v14 = vpop.f32.mrf.mxu1 }
 0x1a1   :  { %v1513_v30 = vand.u32 2147483647, %v3061_v14 }
 0x1a2   :  { %v2489_v45 = vpop.eup %2488  ;;  %v1518_v28 = vsub.f32 0.0, %v1510_v23  ;;  %v2199_v23 = vmax.f32 %v2191_v26, %v829_v35 }
 0x1a3   :  { %v2966_v47 = vadd.f32 1.0, %v2489_v45  ;;  %v2215_v45 = vadd.f32 %v2983_v3, %v2207_v31 }
 0x1a4   :  { %v1528_v48 = vmul.f32 1.442695, %v1518_v28  ;;  %v3030_v28 = vadd.f32 %v2214_v34, %v762_v8  ;;  %v3057_v8 = vsel %vm736_vm0, -inf, %v2696_v44  ;;  %v3066_v20 = vadd.f32 %v2199_v23, %v2183_v43  ;;  %v3077_v44 = vld [vmem:[%s3809_s0 + $0x18] sm:$0xff] }
 0x1a5   :  { %v2491_v52 = vpop.eup %2490  ;;  %2492 = vrcp.f32 %v2966_v47  ;;  %v1557_v4 = vand.u32 2147483647, %v2966_v47  ;;  %v1559_v11 = vand.u32 2147483648, %v2966_v47  ;;  %v3064_v18 = vadd.f32 %v2215_v45, %v763_v19  ;;  %3832 = vst [vmem:[#allocation9_spill] sm:$0xff] %v3077_v44  ;;  %v3153_v39 = vpop.f32.mrf.mxu2 }
 0x1a6   :  { %2494 = vpow2.f32 %v1528_v48  ;;  %v2986_v6 = vadd.f32 1.0, %v2491_v52  ;;  %v3037_v48 = vld [vmem:[%s3809_s0 + $0x10] sm:$0xff]  ;;  %v773_v25 = vrot.slane %v3077_v44, 6  ;;  %vm1553_vm8 = vweird.f32 %v2966_v47  ;;  %3842 = vst [vmem:[#allocation13_spill] sm:$0xff] %v3153_v39 }
 0x1a7   :  { %v772_v49 = vrot.slane %v3037_v48, 6  ;;  %v2168_v50 = vadd.f32 %v3037_v48, %v739_v62  ;;  %vm3090_vm9 = vcmp.eq.f32.partialorder %v1557_v4, 8.507059e+37  ;;  %v1560_v35 = vor.u32 1.1754944e-38, %v1559_v11 }
 0x1a8   :  { %2496 = vrcp.f32 %v2986_v6  ;;  %v2192_v37 = vmax.f32 %v3057_v8, %v3037_v48  ;;  %v790_v23 = vsel %vm786_vm7, 0.0, %v773_v25  ;;  %vm1568_vm11 = vweird.f32 %v2986_v6 }
 0x1a9   :  { %2498 = vpow2.f32 %v1530_v15  ;;  %v789_v22 = vsel %vm786_vm7, 0.0, %v772_v49  ;;  %v1574_v4 = vand.u32 2147483648, %v2986_v6  ;;  %v2169_v11 = vadd.f32 %v3077_v44, %v740_v42 }
 0x1aa   :  { %v2208_v2 = vadd.f32 %v789_v22, %v739_v62  ;;  %v1572_v62 = vand.u32 2147483647, %v2986_v6 }
 0x1ab   :  { %v2999_v16 = vpop.eup %2492 }
 0x1ac   :  { %v2495_v21 = vpop.eup %2494  ;;  %v1549_v27 = vmul.f32 %v2999_v16, %v2966_v47  ;;  %vm1554_vm10 = vweird.f32 %v2999_v16  ;;  %v765_v47 = vsel %vm761_vm2, %v2796_v41, 0.0  ;;  %v2216_v43 = vadd.f32 %v3037_v48, %v2208_v2 }
 0x1ad   :  { %v3021_v32 = vadd.f32 1.0, %v2495_v21  ;;  %v3070_v21 = vsel %vm761_vm2, %v2790_v33, -inf  ;;  %v1512_v33 = vand.u32 2147483647, %v3059_v12  ;;  %vm3115_vm12 = vmor %vm1553_vm8, %vm1554_vm10  ;;  %vm3145_vm15 = vcmp.eq.f32.partialorder %v1572_v62, 8.507059e+37 }
 0x1ae   :  { %v3024_v36 = vpop.eup %2496  ;;  %v1550_v46 = vsub.f32 1.0, %v1549_v27  ;;  %v3083_v27 = vsel %vm786_vm7, -inf, %v772_v49  ;;  %v2177_v41 = vadd.f32 %v2169_v11, %v765_v47  ;;  %v3210_v11 = vsel %vm761_vm2, %v2807_v56, 0.0 }
 0x1af   :  { %2500 = vrcp.f32 %v3021_v32  ;;  %v2499_v52 = vpop.eup %2498  ;;  %v1564_v59 = vmul.f32 %v3024_v36, %v2986_v6  ;;  %vm1569_vm14 = vweird.f32 %v3024_v36  ;;  %vm1583_vm4 = vweird.f32 %v3021_v32 }
 0x1b0   :  { %v1551_v15 = vmul.f32 %v2999_v16, %v1550_v46  ;;  %v3080_v26 = vadd.f32 1.0, %v2499_v52  ;;  %v2176_v46 = vadd.f32 %v2168_v50, %v3049_v63  ;;  %v3111_v52 = vsel %vm736_vm0, -inf, %v2717_v53  ;;  %vm3157_vm1 = vmor %vm1568_vm11, %vm1569_vm14 }
 0x1b1   :  { %v1565_v19 = vsub.f32 1.0, %v1564_v59  ;;  %3835 = vst [vmem:[#allocation10_spill] sm:$0xff] %v3111_v52  ;;  %v2200_v53 = vmax.f32 %v2192_v37, %v3070_v21  ;;  %v2209_v50 = vadd.f32 %v790_v23, %v740_v42  ;;  %v1575_v59 = vor.u32 1.1754944e-38, %v1574_v4 }
 0x1b2   :  { %v1552_v38 = vadd.f32 %v2999_v16, %v1551_v15  ;;  %2502 = vrcp.f32 %v3080_v26  ;;  %v1520_v15 = vsub.f32 0.0, %v1512_v33  ;;  %v2193_v33 = vmax.f32 %v3111_v52, %v3077_v44 }
 0x1b3   :  { %v1566_v45 = vmul.f32 %v3024_v36, %v1565_v19  ;;  %v2184_v19 = vmul.f32 0.33333334, %v2176_v46  ;;  %vm1670_vm10 = vcmp.ge.f32.partialorder %v2961_v29, 0.0 }
 0x1b4   :  { %v1556_v22 = vsel %vm3115_vm12, %v2999_v16, %v1552_v38  ;;  %v3139_v38 = vsel %vm786_vm7, -inf, %v773_v25  ;;  %v1532_v23 = vmul.f32 1.442695, %v1520_v15  ;;  %v2217_v25 = vadd.f32 %v3077_v44, %v2209_v50 }
 0x1b5   :  { %v3087_v31 = vpop.eup %2500  ;;  %v1567_v16 = vadd.f32 %v3024_v36, %v1566_v45  ;;  %3839 = vst [vmem:[#allocation12_spill] sm:$0xff] %v3139_v38  ;;  %v1561_v2 = vsel %vm3090_vm9, %v1560_v35, %v1556_v22  ;;  %v1587_v45 = vand.u32 2147483647, %v3021_v32  ;;  %v3162_v35 = vadd.f32 %v2216_v43, %v3049_v63 }
 0x1b6   :  { %v1579_v49 = vmul.f32 %v3087_v31, %v3021_v32  ;;  %v3164_v62 = vadd.f32 %v2200_v53, %v2184_v19  ;;  %v2201_v4 = vmax.f32 %v2193_v33, %v3132_v40  ;;  %v1676_v15 = vsub.f32 1.0, %v1561_v2 }
 0x1b7   :  { %v1571_v22 = vsel %vm3157_vm1, %v3024_v36, %v1567_v16  ;;  %v1589_v63 = vand.u32 2147483648, %v3021_v32  ;;  %v2185_v43 = vmul.f32 0.33333334, %v2177_v41  ;;  %2504 = vpow2.f32 %v1532_v23  ;;  %v3195_v23 = vld [vmem:[%s3809_s0 + $0x20] sm:$0xff] }
 0x1b8   :  { %v1580_v37 = vsub.f32 1.0, %v1579_v49  ;;  %v3141_v42 = vpop.eup %2502  ;;  %vm3180_vm5 = vcmp.eq.f32.partialorder %v1587_v45, 8.507059e+37  ;;  %v3184_v36 = vadd.f32 %v2217_v25, %v765_v47  ;;  %v1521_v33 = vsub.f32 0.0, %v1513_v30 }
 0x1b9   :  { %v1594_v50 = vmul.f32 %v3141_v42, %v3080_v26  ;;  %v741_v41 = vsel %vm736_vm0, 0.0, %v2753_v10  ;;  %v774_v45 = vrot.slane %v3195_v23, 6  ;;  %v3200_v47 = vsel %vm736_vm0, -inf, %v2753_v10 }
 0x1ba   :  { %v1581_v6 = vmul.f32 %v3087_v31, %v1580_v37  ;;  %3847 = vst [vmem:[#allocation14_spill] sm:$0xff] %v3184_v36  ;;  %v1576_v37 = vsel %vm3145_vm15, %v1575_v59, %v1571_v22  ;;  %v1684_v30 = vsel %vm1668_vm13, %v1561_v2, %v1676_v15  ;;  %vm1584_vm6 = vweird.f32 %v3087_v31 }
 0x1bb   :  { %3848 = vst [vmem:[#allocation15_spill] sm:$0xff] %v3200_v47  ;;  %v1595_v59 = vsub.f32 1.0, %v1594_v50  ;;  %v1590_v34 = vor.u32 1.1754944e-38, %v1589_v63  ;;  %v3206_v22 = vadd.f32 %v2201_v4, %v2185_v43  ;;  %v1677_v49 = vsub.f32 1.0, %v1576_v37  ;;  %vm3222_vm8 = vmor %vm1583_vm4, %vm1584_vm6 }
 0x1bc   :  { %v1582_v46 = vadd.f32 %v3087_v31, %v1581_v6  ;;  %v3214_v10 = vsel %vm761_vm2, %v2807_v56, -inf  ;;  %v2170_v61 = vadd.f32 %v3195_v23, %v741_v41  ;;  %v1534_v2 = vmul.f32 1.442695, %v1521_v33 }
 0x1bd   :  { %3849 = vst [vmem:[#allocation16_spill] sm:$0xff] %v3214_v10  ;;  %v2505_v6 = vpop.eup %2504  ;;  %v3218_v50 = vmul.f32 %v3041_v55, %v1684_v30  ;;  %v791_v63 = vsel %vm786_vm7, 0.0, %v774_v45  ;;  %v2194_v56 = vmax.f32 %v3200_v47, %v3195_v23  ;;  %v1596_v55 = vmul.f32 %v3141_v42, %v1595_v59  ;;  %v3252_v59 = vld [vmem:[%s3809_s0 + $0x28] sm:$0xff] }
 0x1be   :  { %v1586_v33 = vsel %vm3222_vm8, %v3087_v31, %v1582_v46  ;;  %vm1598_vm9 = vweird.f32 %v3080_v26  ;;  %v1602_v32 = vand.u32 2147483647, %v3080_v26  ;;  %v1604_v30 = vand.u32 2147483648, %v3080_v26 }
 0x1bf   :  { %v1685_v31 = vsel %vm1669_vm3, %v1576_v37, %v1677_v49  ;;  %v3247_v46 = vadd.f32 1.0, %v2505_v6  ;;  %v775_v4 = vrot.slane %v3252_v59, 6  ;;  %2506 = vpow2.f32 %v1534_v2 }
 0x1c0   :  { %v1591_v52 = vsel %vm3180_vm5, %v1590_v34, %v1586_v33  ;;  %v2210_v38 = vadd.f32 %v791_v63, %v741_v41  ;;  %v1597_v60 = vadd.f32 %v3141_v42, %v1596_v55  ;;  %vm1599_vm11 = vweird.f32 %v3141_v42 }
 0x1c1   :  { %v3261_v49 = vsel %vm786_vm7, -inf, %v774_v45  ;;  %v767_v6 = vsel %vm761_vm2, %v2813_v0, 0.0  ;;  %v3268_v19 = vsel %vm736_vm0, -inf, %v2767_v17  ;;  %v3271_v41 = vmul.f32 %v3066_v20, %v1685_v31  ;;  %vm3277_vm12 = vmor %vm1598_vm9, %vm1599_vm11 }
 0x1c2   :  { %3853 = vst [vmem:[#allocation18_spill] sm:$0xff] %v3261_v49  ;;  %v1678_v2 = vsub.f32 1.0, %v1591_v52  ;;  %2508 = vrcp.f32 %v3247_v46  ;;  %v792_v45 = vsel %vm786_vm7, 0.0, %v775_v4  ;;  %v2218_v55 = vadd.f32 %v3195_v23, %v2210_v38 }
 0x1c3   :  { %v1601_v20 = vsel %vm3277_vm12, %v3141_v42, %v1597_v60  ;;  %v2195_v26 = vmax.f32 %v3268_v19, %v3252_v59  ;;  %vm1671_vm13 = vcmp.ge.f32.partialorder %v2964_v51, 0.0  ;;  %v841_v38 = vsel %vm786_vm7, -inf, %v775_v4 }
 0x1c4   :  { %v1686_v63 = vsel %vm1670_vm10, %v1591_v52, %v1678_v2  ;;  %vm1603_vm14 = vcmp.eq.f32.partialorder %v1602_v32, 8.507059e+37  ;;  %v3299_v44 = vadd.f32 %v2218_v55, %v3210_v11  ;;  %v1619_v29 = vand.u32 2147483648, %v3247_v46 }
 0x1c5   :  { %v1617_v55 = vand.u32 2147483647, %v3247_v46  ;;  %v3358_v51 = vsel %vm761_vm2, %v2810_v58, -inf  ;;  %vm1613_vm15 = vweird.f32 %v3247_v46  ;;  %vm811_vm3 = vcmask 1045504  }
 0x1c6   :  { %3863 = vst [vmem:[#allocation26_spill] sm:$0xff] %v3358_v51  ;;  %vm1672_vm12 = vcmp.ge.f32.partialorder %v3059_v12, 0.0 }
 0x1c7   :  { %vm3400_vm4 = vcmp.eq.f32.partialorder %v1617_v55, 8.507059e+37 }
 0x1eb   :  { %v1746_v25 = vpop.f32.mrf.mxu1 }
 0x1ed   :  { %v1723_v16 = vpop.f32.mrf.mxu0 }
 0x1ee   :  { %v1747_v53 = vadd.f32 %v1746_v25, %v1723_v16  ;;  %v3237_v16 = vpop.f32.mrf.mxu3  ;;  %v1514_v25 = vand.u32 2147483647, %v3153_v39  ;;  %v2178_v39 = vadd.f32 %v2170_v61, %v3210_v11  ;;  %v3316_v11 = vld [vmem:[%s3809_s0 + $0x30] sm:$0xff] }
 0x1ef   :  { %3852 = vst [vmem:[#allocation17_spill] sm:$0xff] %v3237_v16 }
 0x1f0   :  { %v1522_v34 = vsub.f32 0.0, %v1514_v25  ;;  %v2186_v33 = vmul.f32 0.33333334, %v2178_v39  ;;  %v1605_v25 = vor.u32 1.1754944e-38, %v1604_v30  ;;  %v833_v39 = vsel %vm761_vm2, %v2813_v0, -inf }
 0x1f1   :  { %v2203_v32 = vmax.f32 %v2195_v26, %v833_v39  ;;  %v3329_v26 = vor.u32 1.1754944e-38, %v1619_v29  ;;  %v3343_v30 = vsel %vm736_vm0, -inf, %v2745_v5 }
 0x1f2   :  { %3859 = vst [vmem:[#allocation22_spill] sm:$0xff] %v3343_v30 }
 0x1f3   :  { %v1769_v15 = vpop.f32.mrf.mxu2 }
 0x1f4   :  { %v3229_v43 = vadd.f32 %v1769_v15, %v1747_v53  ;;  %v742_v53 = vsel %vm736_vm0, 0.0, %v2767_v17  ;;  %v2202_v17 = vmax.f32 %v2194_v56, %v3214_v10  ;;  %v1749_v31 = vpop.f32.mrf.mxu1 }
 0x1f5   :  { %v2171_v37 = vadd.f32 %v3252_v59, %v742_v53  ;;  %v2211_v56 = vadd.f32 %v792_v45, %v742_v53  ;;  %v3310_v45 = vmul.f32 %v3164_v62, %v1686_v63 }
 0x1f6   :  { %v1982_v15 = vand.u32 2147483647, %v3229_v43  ;;  %v1792_v36 = vpop.f32.mrf.mxu3  ;;  %v3301_v0 = vadd.f32 %v2202_v17, %v2186_v33  ;;  %v776_v33 = vrot.slane %v3316_v11, 6 }
 0x1f7   :  { %v1726_v60 = vpop.f32.mrf.mxu0 }
 0x1f8   :  { %v1990_v40 = vsub.f32 0.0, %v1982_v15  ;;  %v2179_v15 = vadd.f32 %v2171_v37, %v767_v6  ;;  %v1606_v37 = vsel %vm1603_vm14, %v1605_v25, %v1601_v20  ;;  %3856 = vst [vmem:[#allocation19_spill] sm:$0xff] %v3301_v0  ;;  %v2219_v20 = vadd.f32 %v3252_v59, %v2211_v56 }
 0x1f9   :  { %v1679_v17 = vsub.f32 1.0, %v1606_v37  ;;  %v743_v25 = vsel %vm736_vm0, 0.0, %v2745_v5  ;;  %v1750_v56 = vadd.f32 %v1749_v31, %v1726_v60  ;;  %v793_v42 = vsel %vm786_vm7, 0.0, %v776_v33 }
 0x1fa   :  { %v1998_v61 = vmul.f32 1.442695, %v1990_v40  ;;  %v2507_v40 = vpop.eup %2506  ;;  %v2187_v52 = vmul.f32 0.33333334, %v2179_v15  ;;  %v1515_v15 = vand.u32 2147483647, %v3237_v16  ;;  %v3334_v63 = vadd.f32 %v2219_v20, %v767_v6 }
 0x1fb   :  { %v3303_v4 = vadd.f32 1.0, %v2507_v40  ;;  %v3305_v53 = vpop.eup %2508  ;;  %v2259_v40 = vmax.f32 %v3252_v59, %v833_v39  ;;  %v1687_v29 = vsel %vm1671_vm13, %v1606_v37, %v1679_v17  ;;  %v3349_v31 = vsel %vm786_vm7, -inf, %v776_v33 }
 0x1fc   :  { %2510 = vpow2.f32 %v1998_v61  ;;  %v1536_v61 = vmul.f32 1.442695, %v1522_v34  ;;  %v2251_v34 = vmax.f32 %v841_v38, %v3268_v19  ;;  %v1609_v62 = vmul.f32 %v3305_v53, %v3247_v46  ;;  %3858 = vst [vmem:[#allocation21_spill] sm:$0xff] %v3334_v63 }
 0x1fd   :  { %v3331_v38 = vadd.f32 %v2203_v32, %v2187_v52  ;;  %v1772_v39 = vpop.f32.mrf.mxu2  ;;  %v1634_v52 = vand.u32 2147483648, %v3303_v4  ;;  %3860 = vst [vmem:[#allocation23_spill] sm:$0xff] %v3349_v31  ;;  %v2172_v0 = vadd.f32 %v3316_v11, %v743_v25  ;;  %v2196_v37 = vmax.f32 %v3343_v30, %v3316_v11 }
 0x1fe   :  { %2512 = vpow2.f32 %v1536_v61  ;;  %v1795_v61 = vpop.f32.mrf.mxu3  ;;  %v3351_v6 = vadd.f32 %v1772_v39, %v1750_v56  ;;  %v1838_v60 = vpop.f32.mrf.mxu1  ;;  %v1610_v16 = vsub.f32 1.0, %v1609_v62  ;;  %v3354_v5 = vmax.f32 %v2251_v34, %v2259_v40 }
 0x1ff   :  { %2514 = vrcp.f32 %v3303_v4  ;;  %3857 = vst [vmem:[#allocation20_spill] sm:$0xff] %v3331_v38  ;;  %v1523_v38 = vsub.f32 0.0, %v1515_v15  ;;  %v2212_v33 = vadd.f32 %v793_v42, %v743_v25  ;;  %v3365_v56 = vmul.f32 %v3206_v22, %v1687_v29 }
 0x200   :  { %3861 = vst [vmem:[#allocation24_spill] sm:$0xff] %v3351_v6  ;;  %vm1614_vm1 = vweird.f32 %v3305_v53  ;;  %v1986_v22 = vand.u32 2147483647, %v3351_v6  ;;  %v1611_v25 = vmul.f32 %v3305_v53, %v1610_v16  ;;  %v3406_v16 = vsel %vm761_vm2, %v2816_v1, 0.0 }
 0x201   :  { %v1815_v32 = vpop.f32.mrf.mxu0  ;;  %3862 = vst [vmem:[#allocation25_spill] sm:$0xff] %v3354_v5  ;;  %v1538_v39 = vmul.f32 1.442695, %v1523_v38  ;;  %v795_v38 = vrot.slane %v2972_v54, 2  ;;  %vm3420_vm6 = vmor %vm1613_vm15, %vm1614_vm1  ;;  %vm1628_vm11 = vweird.f32 %v3303_v4  ;;  %v3872_v63 = vmax.f32 %v2972_v54, %v3009_v57 }
 0x202   :  { %v2511_v2 = vpop.eup %2510  ;;  %v1816_v47 = vadd.f32 %v1815_v32, %v1792_v36  ;;  %3864 = vst [vmem:[#allocation27_spill] sm:$0xff] %v3365_v56  ;;  %vm2142_vm15 = vcmp.ge.f32.partialorder %v3229_v43, 0.0 }
 0x203   :  { %v3321_v19 = vadd.f32 1.0, %v2511_v2  ;;  %v3338_v2 = vsel %vm761_vm2, %v2810_v58, 0.0  ;;  %v3374_v58 = vor.u32 1.1754944e-38, %v1634_v52  ;;  %v3388_v52 = vmax.f32 %v2196_v37, %v3358_v51 }
 0x204   :  { %v2513_v20 = vpop.eup %2512  ;;  %v3370_v34 = vadd.f32 %v1838_v60, %v1816_v47  ;;  %v2180_v15 = vadd.f32 %v2172_v0, %v3338_v2  ;;  %v2220_v60 = vadd.f32 %v3316_v11, %v2212_v33  ;;  %v3396_v0 = vsel %vm736_vm0, 0.0, %v2761_v13 }
 0x205   :  { %2516 = vrcp.f32 %v3321_v19  ;;  %v3362_v17 = vpop.eup %2514  ;;  %v3376_v62 = vadd.f32 1.0, %v2513_v20  ;;  %v1994_v37 = vsub.f32 0.0, %v1986_v22  ;;  %v812_v55 = vsel %vm811_vm3, %v795_v38, 0.0 }
 0x206   :  { %v1624_v29 = vmul.f32 %v3362_v17, %v3303_v4  ;;  %v1983_v32 = vand.u32 2147483647, %v3370_v34  ;;  %v2033_v51 = vand.u32 2147483648, %v3321_v19  ;;  %vm2027_vm8 = vweird.f32 %v3321_v19 }
 0x207   :  { %v1861_v20 = vpop.f32.mrf.mxu2  ;;  %2518 = vrcp.f32 %v3376_v62  ;;  %vm1629_vm9 = vweird.f32 %v3362_v17 }
 0x208   :  { %v1884_v42 = vpop.f32.mrf.mxu3  ;;  %v1991_v6 = vsub.f32 0.0, %v1983_v32  ;;  %2520 = vpow2.f32 %v1538_v39  ;;  %v1625_v30 = vsub.f32 1.0, %v1624_v29  ;;  %v1841_v32 = vpop.f32.mrf.mxu1  ;;  %v3447_v29 = vadd.f32 %v2220_v60, %v3338_v2 }
 0x20a   :  { %v2000_v22 = vmul.f32 1.442695, %v1991_v6  ;;  %v2031_v6 = vand.u32 2147483647, %v3321_v19  ;;  %v1626_v60 = vmul.f32 %v3362_v17, %v1625_v30  ;;  %v3874_v30 = vand.u32 2147483647, %v3303_v4 }
 0x20b   :  { %v3372_v40 = vpop.eup %2516  ;;  %v1818_v33 = vpop.f32.mrf.mxu0 }
 0x20c   :  { %v2023_v47 = vmul.f32 %v3372_v40, %v3321_v19  ;;  %v1819_v10 = vadd.f32 %v1818_v33, %v1795_v61  ;;  %vm2028_vm5 = vweird.f32 %v3372_v40  ;;  %2522 = vpow2.f32 %v2000_v22 }
 0x20d   :  { %vm3435_vm10 = vmor %vm2027_vm8, %vm2028_vm5  ;;  %v3440_v39 = vpop.eup %2518  ;;  %v2230_v33 = vadd.f32 %v3030_v28, %v812_v55  ;;  %v1885_v61 = vadd.f32 %v1884_v42, %v1861_v20  ;;  %vm2032_vm13 = vcmp.eq.f32.partialorder %v2031_v6, 8.507059e+37  ;;  %vm3475_vm14 = vcmp.eq.f32.partialorder %v3874_v30, 8.507059e+37 }
 0x20e   :  { %v2024_v36 = vsub.f32 1.0, %v2023_v47  ;;  %v1612_v47 = vadd.f32 %v3305_v53, %v1611_v25  ;;  %v3414_v5 = vadd.f32 %v1841_v32, %v1819_v10  ;;  %v3430_v10 = vld [vmem:[%s3809_s0 + $0x38] sm:$0xff]  ;;  %v2521_v32 = vpop.eup %2520  ;;  %v1639_v54 = vmul.f32 %v3440_v39, %v3376_v62 }
 0x20f   :  { %v777_v46 = vrot.slane %v3430_v10, 6  ;;  %v2238_v55 = vmul.f32 0.2, %v2230_v33  ;;  %v1627_v56 = vadd.f32 %v3362_v17, %v1626_v60  ;;  %v796_v33 = vrot.slane %v2983_v3, 2 }
 0x210   :  { %v2025_v49 = vmul.f32 %v3372_v40, %v2024_v36  ;;  %3867 = vst [vmem:[#allocation28_spill] sm:$0xff] %v3414_v5  ;;  %v2006_v36 = vmul.f32 1.442695, %v1994_v37  ;;  %v1987_v19 = vand.u32 2147483647, %v3414_v5  ;;  %v2034_v5 = vor.u32 1.1754944e-38, %v2033_v51 }
 0x211   :  { %v3453_v22 = vpop.f32.mrf.mxu2  ;;  %v794_v25 = vsel %vm786_vm7, 0.0, %v777_v46  ;;  %vm1644_vm1 = vweird.f32 %v3440_v39 }
 0x212   :  { %v2026_v31 = vadd.f32 %v3372_v40, %v2025_v49  ;;  %v2188_v49 = vmul.f32 0.33333334, %v2180_v15  ;;  %v1616_v15 = vsel %vm3420_vm6, %v3305_v53, %v1612_v47  ;;  %v3873_v53 = vmax.f32 %v3012_v24, %v2994_v9  ;;  %v3464_v28 = vpop.f32.mrf.mxu3  ;;  %v2523_v24 = vpop.eup %2522 }
 0x213   :  { %v1995_v2 = vsub.f32 0.0, %v1987_v19  ;;  %2524 = vpow2.f32 %v2006_v36  ;;  %v3488_v36 = vadd.f32 1.0, %v2523_v24  ;;  %v1930_v3 = vpop.f32.mrf.mxu1  ;;  %v3523_v24 = vsel %vm786_vm7, -inf, %v777_v46 }
 0x214   :  { %v2030_v37 = vsel %vm3435_vm10, %v3372_v40, %v2026_v31  ;;  %v2262_v47 = vmax.f32 %v3873_v53, %v3872_v63  ;;  %v844_v31 = vsel %vm811_vm3, %v795_v38, -inf  ;;  %v1907_v51 = vpop.f32.mrf.mxu0  ;;  %v1621_v63 = vsel %vm3400_vm4, %v3329_v26, %v1616_v15 }
 0x215   :  { %v2035_v57 = vsel %vm2032_vm13, %v2034_v5, %v2030_v37  ;;  %v2008_v40 = vmul.f32 1.442695, %v1995_v2  ;;  %v3468_v9 = vadd.f32 %v1907_v51, %v1885_v61  ;;  %v3480_v20 = vadd.f32 %v3388_v52, %v2188_v49 }
 0x216   :  { %v3484_v5 = vsel %vm736_vm0, -inf, %v2761_v13  ;;  %v3486_v38 = vadd.f32 1.0, %v2521_v32  ;;  %v2270_v6 = vmax.f32 %v2262_v47, %v844_v31  ;;  %v2150_v19 = vsub.f32 1.0, %v2035_v57  ;;  %vm3504_vm0 = vmor %vm1628_vm11, %vm1629_vm9 }
 0x217   :  { %v1984_v26 = vand.u32 2147483647, %v3468_v9  ;;  %2526 = vpow2.f32 %v2008_v40  ;;  %v1680_v52 = vsub.f32 1.0, %v1621_v63  ;;  %v1640_v49 = vsub.f32 1.0, %v1639_v54 }
 0x218   :  { %v2173_v13 = vadd.f32 %v3430_v10, %v3396_v0  ;;  %2528 = vrcp.f32 %v3488_v36  ;;  %v2197_v37 = vmax.f32 %v3484_v5, %v3430_v10  ;;  %v3510_v61 = vsel %vm761_vm2, %v2816_v1, -inf }
 0x219   :  { %v2525_v15 = vpop.eup %2524  ;;  %2530 = vrcp.f32 %v3486_v38  ;;  %v1992_v32 = vsub.f32 0.0, %v1984_v26  ;;  %v2213_v2 = vadd.f32 %v794_v25, %v3396_v0  ;;  %v2294_v60 = vadd.f32 %v2270_v6, %v2238_v55 }
 0x21a   :  { %v1631_v31 = vsel %vm3504_vm0, %v3362_v17, %v1627_v56  ;;  %v2158_v51 = vsel %vm2142_vm15, %v2035_v57, %v2150_v19  ;;  %v3519_v40 = vsel %vm1672_vm12, %v1621_v63, %v1680_v52  ;;  %v1641_v1 = vmul.f32 %v3440_v39, %v1640_v49 }
 0x21b   :  { %v1953_v53 = vpop.f32.mrf.mxu2  ;;  %v2002_v4 = vmul.f32 1.442695, %v1992_v32  ;;  %v3525_v0 = vadd.f32 1.0, %v2525_v15  ;;  %v3528_v30 = vadd.f32 %v2173_v13, %v3406_v16  ;;  %v3531_v17 = vmax.f32 %v2197_v37, %v3510_v61  ;;  %v1976_v12 = vpop.f32.mrf.mxu3 }
 0x21c   :  { %v1954_v54 = vadd.f32 %v1953_v53, %v1930_v3  ;;  %v813_v57 = vsel %vm811_vm3, %v796_v33, 0.0  ;;  %v3537_v55 = vsel %vm3475_vm14, %v3374_v58, %v1631_v31  ;;  %v2221_v46 = vadd.f32 %v3430_v10, %v2213_v2 }
 0x21d   :  { %v2527_v43 = vpop.eup %2526  ;;  %2532 = vpow2.f32 %v2002_v4  ;;  %v2302_v6 = vmul.f32 %v2294_v60, %v2158_v51  ;;  %vm1643_vm2 = vweird.f32 %v3376_v62  ;;  %v1647_v25 = vand.u32 2147483647, %v3376_v62 }
 0x21e   :  { %v2529_v63 = vpop.eup %2528  ;;  %v3540_v26 = vadd.f32 %v1976_v12, %v1954_v54  ;;  %v1649_v19 = vand.u32 2147483648, %v3376_v62  ;;  %v1642_v49 = vadd.f32 %v3440_v39, %v1641_v1  ;;  %2534 = vrcp.f32 %v3525_v0  ;;  %vm3564_vm5 = vmor %vm1643_vm2, %vm1644_vm1 }
 0x21f   :  { %v3542_v56 = vpop.eup %2530  ;;  %v2038_v52 = vmul.f32 %v2529_v63, %v3488_v36  ;;  %v2231_v58 = vadd.f32 %v3064_v18, %v813_v57  ;;  %v1681_v42 = vsub.f32 1.0, %v3537_v55  ;;  %v845_v13 = vsel %vm811_vm3, %v796_v33, -inf }
 0x220   :  { %v3554_v37 = vadd.f32 1.0, %v2527_v43  ;;  %v1654_v32 = vmul.f32 %v3542_v56, %v3486_v38  ;;  %v2310_v53 = vadd.f32 %v2302_v6, %v3218_v50  ;;  %v2048_v47 = vand.u32 2147483648, %v3488_v36 }
 0x221   :  { %v2039_v15 = vsub.f32 1.0, %v2038_v52  ;;  %v1985_v2 = vand.u32 2147483647, %v3540_v26  ;;  %vm1673_vm4 = vcmp.ge.f32.partialorder %v3061_v14, 0.0  ;;  %vm3568_vm6 = vcmp.eq.f32.partialorder %v1647_v25, 8.507059e+37  ;;  %v1910_v52 = vpop.f32.mrf.mxu0 }
 0x222   :  { %vm2043_vm8 = vweird.f32 %v2529_v63  ;;  %v2046_v50 = vand.u32 2147483647, %v3488_v36  ;;  %v1646_v31 = vsel %vm3564_vm5, %v3440_v39, %v1642_v49  ;;  %v2239_v51 = vmul.f32 0.2, %v2231_v58 }
 0x223   :  { %v2533_v60 = vpop.eup %2532  ;;  %v2040_v3 = vmul.f32 %v2529_v63, %v2039_v15  ;;  %v2271_v4 = vmax.f32 %v3053_v7, %v845_v13  ;;  %v1650_v54 = vor.u32 1.1754944e-38, %v1649_v19  ;;  %vm2042_vm9 = vweird.f32 %v3488_v36 }
 0x224   :  { %v3577_v62 = vadd.f32 1.0, %v2533_v60  ;;  %2536 = vrcp.f32 %v3554_v37  ;;  %v3581_v43 = vpop.eup %2534  ;;  %v1655_v57 = vsub.f32 1.0, %v1654_v32  ;;  %v2318_v12 = vrot.slane %v2310_v53, 4  ;;  %vm2044_vm10 = vmor %vm2042_vm9, %vm2043_vm8 }
 0x225   :  { %v2041_v1 = vadd.f32 %v2529_v63, %v2040_v3  ;;  %v2049_v6 = vor.u32 1.1754944e-38, %v2048_v47  ;;  %v1993_v25 = vsub.f32 0.0, %v1985_v2  ;;  %v3585_v39 = vsel %vm3568_vm6, %v1650_v54, %v1646_v31 }
 0x226   :  { %vm2047_vm11 = vcmp.eq.f32.partialorder %v2046_v50, 8.507059e+37  ;;  %v1888_v19 = vadd.f32 %v3464_v28, %v3453_v22  ;;  %v799_v36 = vrot.slane %v3195_v23, 2  ;;  %v2295_v58 = vadd.f32 %v2271_v4, %v2239_v51 }
 0x227   :  { %v2045_v7 = vsel %vm2044_vm10, %v2529_v63, %v2041_v1  ;;  %2538 = vrcp.f32 %v3577_v62  ;;  %v2083_v13 = vmul.f32 %v3581_v43, %v3525_v0  ;;  %v797_v32 = vrot.slane %v3037_v48, 2 }
 0x228   :  { %v2050_v49 = vsel %vm2047_vm11, %v2049_v6, %v2045_v7  ;;  %v3594_v47 = vadd.f32 %v1910_v52, %v1888_v19  ;;  %v1656_v63 = vmul.f32 %v3542_v56, %v1655_v57  ;;  %v2319_v2 = vmax.f32 %v2310_v53, %v2318_v12 }
 0x229   :  { %v2151_v15 = vsub.f32 1.0, %v2050_v49  ;;  %vm2143_vm12 = vcmp.ge.f32.partialorder %v3370_v34, 0.0  ;;  %v2004_v22 = vmul.f32 1.442695, %v1993_v25  ;;  %v3601_v60 = vadd.f32 %v2221_v46, %v3406_v16 }
 0x22a   :  { %v3598_v28 = vpop.eup %2536  ;;  %v2253_v18 = vmax.f32 %v3523_v24, %v3484_v5  ;;  %v2261_v33 = vmax.f32 %v3430_v10, %v3510_v61  ;;  %v3610_v50 = vsel %vm1673_vm4, %v3537_v55, %v1681_v42  ;;  %v1682_v34 = vsub.f32 1.0, %v3585_v39 }
 0x22b   :  { %v2159_v3 = vsel %vm2143_vm12, %v2050_v49, %v2151_v15  ;;  %v816_v53 = vsel %vm811_vm3, %v799_v36, 0.0  ;;  %v2084_v51 = vsub.f32 1.0, %v2083_v13  ;;  %v814_v16 = vsel %vm811_vm3, %v797_v32, 0.0 }
 0x22c   :  { %v2303_v31 = vmul.f32 %v2295_v58, %v2159_v3  ;;  %2540 = vpow2.f32 %v2004_v22  ;;  %v1988_v46 = vand.u32 2147483647, %v3594_v47  ;;  %v3617_v54 = vadd.f32 %v3542_v56, %v1656_v63 }
 0x22d   :  { %v2539_v4 = vpop.eup %2538  ;;  %v2320_v1 = vrot.slane %v2319_v2, 2  ;;  %v2098_v55 = vmul.f32 %v3598_v28, %v3554_v37  ;;  %v3623_v42 = vsel %vm811_vm3, %v799_v36, -inf  ;;  %v2091_v57 = vand.u32 2147483647, %v3525_v0 }
 0x22e   :  { %v2311_v14 = vadd.f32 %v2303_v31, %v3271_v41  ;;  %v3627_v12 = vadd.f32 %v3299_v44, %v816_v53  ;;  %v2053_v6 = vmul.f32 %v2539_v4, %v3577_v62  ;;  %v2093_v25 = vand.u32 2147483648, %v3525_v0  ;;  %v1956_v53 = vpop.f32.mrf.mxu2 }
 0x22f   :  { %v2232_v7 = vadd.f32 %v3162_v35, %v814_v16  ;;  %v3883_v41 = vmax.f32 %v3037_v48, %v3070_v21  ;;  %v3884_v19 = vmax.f32 %v3083_v27, %v3057_v8  ;;  %v2085_v49 = vmul.f32 %v3581_v43, %v2084_v51  ;;  %v1933_v51 = vpop.f32.mrf.mxu1 }
 0x230   :  { %v2324_v52 = vrot.slane %v2311_v14, 4  ;;  %v846_v58 = vsel %vm811_vm3, %v797_v32, -inf  ;;  %v2054_v44 = vsub.f32 1.0, %v2053_v6  ;;  %v1996_v13 = vsub.f32 0.0, %v1988_v46 }
 0x231   :  { %v2264_v36 = vmax.f32 %v3884_v19, %v3883_v41  ;;  %v2321_v15 = vmax.f32 %v2319_v2, %v2320_v1  ;;  %v2099_v22 = vsub.f32 1.0, %v2098_v55  ;;  %v2063_v3 = vand.u32 2147483648, %v3577_v62 }
 0x232   :  { %v2325_v63 = vmax.f32 %v2311_v14, %v2324_v52  ;;  %v2541_v35 = vpop.eup %2540  ;;  %v2055_v31 = vmul.f32 %v2539_v4, %v2054_v44  ;;  %vm2058_vm13 = vweird.f32 %v2539_v4  ;;  %v2061_v48 = vand.u32 2147483647, %v3577_v62  ;;  %v3885_v52 = vld [vmem:[#allocation9_spill] sm:$0xff]  ;;  %v1979_v44 = vpop.f32.mrf.mxu3 }
 0x233   :  { %v2010_v21 = vmul.f32 1.442695, %v1996_v13  ;;  %v2240_v27 = vmul.f32 0.2, %v2232_v7  ;;  %v2272_v16 = vmax.f32 %v2264_v36, %v846_v58  ;;  %v3642_v41 = vadd.f32 1.0, %v2541_v35 }
 0x234   :  { %v2326_v8 = vrot.slane %v2325_v63, 2  ;;  %v2056_v32 = vadd.f32 %v2539_v4, %v2055_v31  ;;  %vm2057_vm14 = vweird.f32 %v3577_v62  ;;  %v1957_v2 = vadd.f32 %v1956_v53, %v1933_v51 }
 0x235   :  { %2542 = vpow2.f32 %v2010_v21  ;;  %vm2087_vm0 = vweird.f32 %v3525_v0  ;;  %v800_v1 = vrot.slane %v3252_v59, 2  ;;  %vm2059_vm15 = vmor %vm2057_vm14, %vm2058_vm13  ;;  %v2064_v14 = vor.u32 1.1754944e-38, %v2063_v3 }
 0x236   :  { %v2327_v46 = vmax.f32 %v2325_v63, %v2326_v8  ;;  %2544 = vrcp.f32 %v3642_v41  ;;  %v3649_v55 = vor.u32 1.1754944e-38, %v2093_v25  ;;  %v2060_v6 = vsel %vm2059_vm15, %v2539_v4, %v2056_v32 }
 0x237   :  { %vm2062_vm2 = vcmp.eq.f32.partialorder %v2061_v48, 8.507059e+37  ;;  %v798_v7 = vrot.slane %v3885_v52, 2  ;;  %v2322_v19 = vrot.slane %v2321_v15, 1  ;;  %v2296_v58 = vadd.f32 %v2272_v16, %v2240_v27 }
 0x238   :  { %v2328_v62 = vrot.slane %v2327_v46, 1  ;;  %v2065_v36 = vsel %vm2062_vm2, %v2064_v14, %v2060_v6  ;;  %v2100_v13 = vmul.f32 %v3598_v28, %v2099_v22  ;;  %vm2144_vm1 = vcmp.ge.f32.partialorder %v3468_v9, 0.0  ;;  %v3889_v6 = vld [vmem:[#allocation12_spill] sm:$0xff] }
 0x239   :  { %v2152_v59 = vsub.f32 1.0, %v2065_v36  ;;  %v3654_v63 = vadd.f32 %v1979_v44, %v1957_v2  ;;  %v3657_v3 = vadd.f32 %v3581_v43, %v2085_v49  ;;  %vm2088_vm4 = vweird.f32 %v3581_v43 }
 0x23a   :  { %v2329_v4 = vmax.f32 %v2327_v46, %v2328_v62  ;;  %v817_v25 = vsel %vm811_vm3, %v800_v1, 0.0  ;;  %v3662_v35 = vsel %vm811_vm3, %v800_v1, -inf  ;;  %vm2102_vm5 = vweird.f32 %v3554_v37  ;;  %v3886_v46 = vld [vmem:[#allocation14_spill] sm:$0xff]  ;;  %vm3687_vm8 = vmor %vm2087_vm0, %vm2088_vm4 }
 0x23b   :  { %v2543_v53 = vpop.eup %2542  ;;  %v2160_v22 = vsel %vm2144_vm1, %v2065_v36, %v2152_v59  ;;  %v815_v9 = vsel %vm811_vm3, %v798_v7, 0.0  ;;  %v2323_v48 = vmax.f32 %v2321_v15, %v2322_v19  ;;  %vm2103_vm6 = vweird.f32 %v3598_v28  ;;  %v3887_v15 = vld [vmem:[#allocation11_spill] sm:$0xff]  ;;  %v3890_v19 = vld [vmem:[#allocation10_spill] sm:$0xff] }
 0x23c   :  { %v2545_v31 = vpop.eup %2544  ;;  %v2374_v21 = vrot.slane %v2329_v4, 6  ;;  %v2304_v49 = vmul.f32 %v2296_v58, %v2160_v22  ;;  %v2101_v8 = vadd.f32 %v3598_v28, %v2100_v13  ;;  %v3669_v16 = vadd.f32 1.0, %v2543_v53  ;;  %vm3705_vm9 = vmor %vm2102_vm5, %vm2103_vm6 }
 0x23d   :  { %v2068_v27 = vmul.f32 %v2545_v31, %v3642_v41  ;;  %v1989_v51 = vand.u32 2147483647, %v3654_v63  ;;  %v2233_v1 = vadd.f32 %v3886_v46, %v815_v9  ;;  %v3888_v14 = vmax.f32 %v3885_v52, %v3887_v15  ;;  %v3898_v46 = vld [vmem:[#allocation21_spill] sm:$0xff] }
 0x23e   :  { %v3673_v32 = vsel %vm786_vm7, %v2323_v48, %v2374_v21  ;;  %v2312_v2 = vadd.f32 %v2304_v49, %v3310_v45  ;;  %v3891_v62 = vmax.f32 %v3889_v6, %v3890_v19  ;;  %v2108_v44 = vand.u32 2147483648, %v3554_v37 }
 0x23f   :  { %v847_v45 = vsel %vm811_vm3, %v798_v7, -inf  ;;  %v2069_v13 = vsub.f32 1.0, %v2068_v27  ;;  %2546 = vrcp.f32 %v3669_v16  ;;  %v2090_v52 = vsel %vm3687_vm8, %v3581_v43, %v3657_v3 }
 0x240   :  { %v2265_v36 = vmax.f32 %v3891_v62, %v3888_v14  ;;  %v2106_v59 = vand.u32 2147483647, %v3554_v37  ;;  %v2078_v4 = vand.u32 2147483648, %v3642_v41  ;;  %v801_v53 = vrot.slane %v3316_v11, 2  ;;  %v3899_v62 = vld [vmem:[#allocation25_spill] sm:$0xff] }
 0x241   :  { %v2070_v22 = vmul.f32 %v2545_v31, %v2069_v13  ;;  %vm2073_vm10 = vweird.f32 %v2545_v31  ;;  %v2076_v9 = vand.u32 2147483647, %v3642_v41  ;;  %v1997_v48 = vsub.f32 0.0, %v1989_v51 }
 0x242   :  { %vm3712_vm11 = vcmp.eq.f32.partialorder %v2091_v57, 8.507059e+37  ;;  %v2105_v3 = vsel %vm3705_vm9, %v3598_v28, %v2101_v8  ;;  %v2330_v37 = vrot.slane %v2312_v2, 4  ;;  %v2241_v21 = vmul.f32 0.2, %v2233_v1 }
 0x243   :  { %v2273_v49 = vmax.f32 %v2265_v36, %v847_v45  ;;  %v2109_v27 = vor.u32 1.1754944e-38, %v2108_v44  ;;  %v2235_v15 = vadd.f32 %v3898_v46, %v817_v25  ;;  %v2071_v14 = vadd.f32 %v2545_v31, %v2070_v22 }
 0x244   :  { %vm2072_vm12 = vweird.f32 %v3642_v41  ;;  %vm2107_vm13 = vcmp.eq.f32.partialorder %v2106_v59, 8.507059e+37  ;;  %v2079_v0 = vor.u32 1.1754944e-38, %v2078_v4  ;;  %v818_v57 = vsel %vm811_vm3, %v801_v53, 0.0  ;;  %v3902_v4 = vld [vmem:[#allocation23_spill] sm:$0xff] }
 0x245   :  { %vm2074_vm14 = vmor %vm2072_vm12, %vm2073_vm10  ;;  %v2012_v51 = vmul.f32 1.442695, %v1997_v48  ;;  %v2547_v6 = vpop.eup %2546  ;;  %v2110_v19 = vsel %vm2107_vm13, %v2109_v27, %v2105_v3  ;;  %v2275_v28 = vmax.f32 %v3899_v62, %v3662_v35  ;;  %vm2077_vm0 = vcmp.eq.f32.partialorder %v2076_v9, 8.507059e+37  ;;  %v3900_v35 = vld [vmem:[#allocation26_spill] sm:$0xff]  ;;  %v3906_v27 = vld [vmem:[#allocation16_spill] sm:$0xff] }
 0x246   :  { %v2075_v8 = vsel %vm2074_vm14, %v2545_v31, %v2071_v14  ;;  %v2331_v1 = vmax.f32 %v2312_v2, %v2330_v37  ;;  %v2297_v58 = vadd.f32 %v2273_v49, %v2241_v21  ;;  %v2113_v25 = vmul.f32 %v2547_v6, %v3669_v16  ;;  %v3903_v2 = vld [vmem:[#allocation22_spill] sm:$0xff]  ;;  %v3905_v37 = vld [vmem:[#allocation13_spill] sm:$0xff]  ;;  %v3912_v62 = vld [vmem:[#allocation27_spill] sm:$0xff] }
 0x247   :  { %v2080_v36 = vsel %vm2077_vm0, %v2079_v0, %v2075_v8  ;;  %v2243_v44 = vmul.f32 0.2, %v2235_v15  ;;  %v2236_v45 = vadd.f32 %v3447_v29, %v818_v57  ;;  %2548 = vpow2.f32 %v2012_v51  ;;  %v3909_v15 = vld [vmem:[#allocation15_spill] sm:$0xff]  ;;  %v3911_v57 = vld [vmem:[#allocation28_spill] sm:$0xff] }
 0x248   :  { %v2153_v41 = vsub.f32 1.0, %v2080_v36  ;;  %vm1659_vm15 = vweird.f32 %v3542_v56  ;;  %v2155_v13 = vsub.f32 1.0, %v2110_v19  ;;  %vm2145_vm2 = vcmp.ge.f32.partialorder %v3540_v26, 0.0 }
 0x249   :  { %v2114_v59 = vsub.f32 1.0, %v2113_v25  ;;  %v3901_v31 = vmax.f32 %v3316_v11, %v3900_v35  ;;  %v3904_v7 = vmax.f32 %v3902_v4, %v3903_v2  ;;  %v850_v48 = vsel %vm811_vm3, %v801_v53, -inf  ;;  %v3908_v53 = vld [vmem:[#allocation18_spill] sm:$0xff] }
 0x24a   :  { %v2161_v9 = vsel %vm2145_vm2, %v2080_v36, %v2153_v41  ;;  %v2121_v3 = vand.u32 2147483647, %v3669_v16  ;;  %v2123_v29 = vand.u32 2147483648, %v3669_v16  ;;  %vm1674_vm1 = vcmp.ge.f32.partialorder %v3905_v37, 0.0 }
 0x24b   :  { %v2268_v22 = vmax.f32 %v3904_v7, %v3901_v31  ;;  %vm1658_vm4 = vweird.f32 %v3486_v38  ;;  %v2332_v26 = vrot.slane %v2331_v1, 2  ;;  %v2305_v21 = vmul.f32 %v2297_v58, %v2161_v9 }
 0x24c   :  { %v2115_v49 = vmul.f32 %v2547_v6, %v2114_v59  ;;  %vm2118_vm5 = vweird.f32 %v2547_v6  ;;  %v2095_v11 = vsel %vm3712_vm11, %v3649_v55, %v2090_v52  ;;  %v3907_v46 = vmax.f32 %v3195_v23, %v3906_v27  ;;  %vm3771_vm12 = vmor %vm1658_vm4, %vm1659_vm15 }
 0x24d   :  { %v3910_v14 = vmax.f32 %v3908_v53, %v3909_v15  ;;  %vm2147_vm6 = vcmp.ge.f32.partialorder %v3911_v57, 0.0  ;;  %v2244_v51 = vmul.f32 0.2, %v2236_v45  ;;  %v2313_v8 = vadd.f32 %v2305_v21, %v3912_v62  ;;  %v2549_v25 = vpop.eup %2548 }
 0x24e   :  { %v2116_v36 = vadd.f32 %v2547_v6, %v2115_v49  ;;  %vm2117_vm8 = vweird.f32 %v3669_v16  ;;  %v2276_v58 = vmax.f32 %v2268_v22, %v850_v48  ;;  %v2163_v41 = vsel %vm2147_vm6, %v2110_v19, %v2155_v13 }
 0x24f   :  { %v2266_v0 = vmax.f32 %v3910_v14, %v3907_v46  ;;  %v2299_v43 = vadd.f32 %v2275_v28, %v2243_v44  ;;  %vm2119_vm9 = vmor %vm2117_vm8, %vm2118_vm5  ;;  %vm2122_vm10 = vcmp.eq.f32.partialorder %v2121_v3, 8.507059e+37  ;;  %v2124_v55 = vor.u32 1.1754944e-38, %v2123_v29  ;;  %v3916_v3 = vld [vmem:[#allocation24_spill] sm:$0xff] }
 0x250   :  { %v2333_v23 = vmax.f32 %v2331_v1, %v2332_v26  ;;  %v2336_v52 = vrot.slane %v2313_v8, 4  ;;  %v2120_v59 = vsel %vm2119_vm9, %v2547_v6, %v2116_v36  ;;  %v3751_v35 = vadd.f32 1.0, %v2549_v25 }
 0x251   :  { %v2154_v31 = vsub.f32 1.0, %v2095_v11  ;;  %v2242_v45 = vmul.f32 0.2, %v3627_v12  ;;  %v2274_v4 = vmax.f32 %v2266_v0, %v3623_v42  ;;  %v2125_v2 = vsel %vm2122_vm10, %v2124_v55, %v2120_v59  ;;  %v3913_v42 = vld [vmem:[#allocation20_spill] sm:$0xff]  ;;  %v3918_v59 = vld [vmem:[#allocation17_spill] sm:$0xff] }
 0x252   :  { %v2337_v7 = vmax.f32 %v2313_v8, %v2336_v52  ;;  %v2156_v16 = vsub.f32 1.0, %v2125_v2  ;;  %v2300_v22 = vadd.f32 %v2276_v58, %v2244_v51  ;;  %2550 = vrcp.f32 %v3751_v35 }
 0x253   :  { %v1664_v19 = vand.u32 2147483648, %v3486_v38  ;;  %v2307_v28 = vmul.f32 %v2299_v43, %v2163_v41  ;;  %vm2148_vm11 = vcmp.ge.f32.partialorder %v3594_v47, 0.0  ;;  %v802_v6 = vrot.slane %v3430_v10, 2 }
 0x254   :  { %v1662_v1 = vand.u32 2147483647, %v3486_v38  ;;  %v2334_v44 = vrot.slane %v2333_v23, 1  ;;  %v2338_v13 = vrot.slane %v2337_v7, 2  ;;  %v2164_v12 = vsel %vm2148_vm11, %v2125_v2, %v2156_v16 }
 0x255   :  { %v2291_v9 = vmul.f32 %v3913_v42, %v3610_v50  ;;  %v1690_v48 = vsel %vm1674_vm1, %v3585_v39, %v1682_v34  ;;  %vm2146_vm13 = vcmp.ge.f32.partialorder %v3916_v3, 0.0  ;;  %v2298_v29 = vadd.f32 %v2274_v4, %v2242_v45  ;;  %v3917_v39 = vld [vmem:[#allocation19_spill] sm:$0xff] }
 0x256   :  { %v1661_v50 = vsel %vm3771_vm12, %v3542_v56, %v3617_v54  ;;  %v2162_v26 = vsel %vm2146_vm13, %v2095_v11, %v2154_v31  ;;  %v2339_v21 = vmax.f32 %v2337_v7, %v2338_v13  ;;  %v2308_v37 = vmul.f32 %v2300_v22, %v2164_v12 }
 0x257   :  { %v2290_v34 = vmul.f32 %v3917_v39, %v3519_v40  ;;  %v1665_v49 = vor.u32 1.1754944e-38, %v1664_v19  ;;  %v2315_v38 = vadd.f32 %v2307_v28, %v2291_v9  ;;  %v819_v27 = vsel %vm811_vm3, %v802_v6, 0.0 }
 0x258   :  { %v2551_v46 = vpop.eup %2550  ;;  %v2292_v53 = vmul.f32 %v3480_v20, %v1690_v48  ;;  %vm1663_vm14 = vcmp.eq.f32.partialorder %v1662_v1, 8.507059e+37  ;;  %v2335_v15 = vmax.f32 %v2333_v23, %v2334_v44  ;;  %v2340_v14 = vrot.slane %v2339_v21, 1 }
 0x259   :  { %v1666_v0 = vsel %vm1663_vm14, %v1665_v49, %v1661_v50  ;;  %v2189_v57 = vmul.f32 0.33333334, %v3528_v30  ;;  %v2306_v56 = vmul.f32 %v2298_v29, %v2162_v26  ;;  %v2128_v54 = vmul.f32 %v2551_v46, %v3751_v35 }
 0x25a   :  { %v2341_v11 = vmax.f32 %v2339_v21, %v2340_v14  ;;  %v2316_v51 = vadd.f32 %v2308_v37, %v2292_v53  ;;  %v2237_v40 = vadd.f32 %v3601_v60, %v819_v27  ;;  %v2269_v20 = vmax.f32 %v2253_v18, %v2261_v33 }
 0x25b   :  { %v2348_v62 = vrot.slane %v2315_v38, 4  ;;  %vm2381_vm0 = vcmask 1045508   ;;  %v851_v8 = vsel %vm811_vm3, %v802_v6, -inf  ;;  %v2129_v36 = vsub.f32 1.0, %v2128_v54 }
 0x25c   :  { %v2375_v30 = vrot.slane %v2335_v15, 4  ;;  %v2376_v58 = vrot.slane %v2341_v11, 2  ;;  %vm2383_vm15 = vcmask 1043456   ;;  %v2138_v25 = vand.u32 2147483648, %v3751_v35 }
 0x25d   :  { %v2314_v41 = vadd.f32 %v2306_v56, %v2290_v34  ;;  %v2130_v43 = vmul.f32 %v2551_v46, %v2129_v36  ;;  %vm2133_vm2 = vweird.f32 %v2551_v46  ;;  %v2136_v60 = vand.u32 2147483647, %v3751_v35 }
 0x25e   :  { %v2382_v10 = vsel %vm2381_vm0, %v2375_v30, %v2376_v58  ;;  %v2354_v61 = vrot.slane %v2316_v51, 4  ;;  %v2245_v5 = vmul.f32 0.2, %v2237_v40  ;;  %v2277_v24 = vmax.f32 %v2269_v20, %v851_v8 }
 0x25f   :  { %v1683_v18 = vsub.f32 1.0, %v1666_v0  ;;  %v2384_v33 = vsel %vm2383_vm15, %v3673_v32, %v2382_v10  ;;  %v2131_v55 = vadd.f32 %v2551_v46, %v2130_v43  ;;  %vm2132_vm3 = vweird.f32 %v3751_v35 }
 0x260   :  { %v2349_v23 = vmax.f32 %v2315_v38, %v2348_v62  ;;  %vm2134_vm1 = vmor %vm2132_vm3, %vm2133_vm2  ;;  %v2139_v52 = vor.u32 1.1754944e-38, %v2138_v25  ;;  %vm1675_vm4 = vcmp.ge.f32.partialorder %v3918_v59, 0.0  ;;  %v2285_v31 = vadd.f32 %v3531_v17, %v2189_v57 }
 0x261   :  { %v2135_v45 = vsel %vm2134_vm1, %v2551_v46, %v2131_v55  ;;  %vm2137_vm5 = vcmp.eq.f32.partialorder %v2136_v60, 8.507059e+37  ;;  %v2342_v4 = vrot.slane %v2314_v41, 4  ;;  %v2355_v2 = vmax.f32 %v2316_v51, %v2354_v61 }
 0x262   :  { %v2140_v7 = vsel %vm2137_vm5, %v2139_v52, %v2135_v45  ;;  %v2301_v16 = vadd.f32 %v2277_v24, %v2245_v5  ;;  %v1691_v22 = vsel %vm1675_vm4, %v1666_v0, %v1683_v18  ;;  %v2350_v28 = vrot.slane %v2349_v23, 2 }
 0x263   :  { %v2157_v19 = vsub.f32 1.0, %v2140_v7  ;;  %vm2149_vm6 = vcmp.ge.f32.partialorder %v3654_v63, 0.0  ;;  %v2293_v35 = vmul.f32 %v2285_v31, %v1691_v22  ;;  %v2343_v6 = vmax.f32 %v2314_v41, %v2342_v4 }
 0x264   :  { %v2356_v1 = vrot.slane %v2355_v2, 2  ;;  %v2351_v13 = vmax.f32 %v2349_v23, %v2350_v28  ;;  %vm2393_vm8 = vcmask 1041409   ;;  %vm2395_vm9 = vcmask 1043459  }
 0x265   :  { %v2165_v32 = vsel %vm2149_vm6, %v2140_v7, %v2157_v19  ;;  %v2344_v42 = vrot.slane %v2343_v6, 2  ;;  %vm2397_vm10 = vcmask 1045509   ;;  %vm2399_vm11 = vcmask 1047559  }
 0x266   :  { %v2309_v44 = vmul.f32 %v2301_v16, %v2165_v32  ;;  %v2357_v17 = vmax.f32 %v2355_v2, %v2356_v1  ;;  %v2352_v48 = vrot.slane %v2351_v13, 1 }
 0x267   :  { %v2345_v3 = vmax.f32 %v2343_v6, %v2344_v42 }
 0x268   :  { %v2317_v12 = vadd.f32 %v2309_v44, %v2293_v35  ;;  %v2358_v29 = vrot.slane %v2357_v17, 1  ;;  %v2353_v26 = vmax.f32 %v2351_v13, %v2352_v48 }
 0x269   :  { %v2346_v37 = vrot.slane %v2345_v3, 1 }
 0x26a   :  { %v2360_v9 = vrot.slane %v2317_v12, 4  ;;  %v2359_v39 = vmax.f32 %v2357_v17, %v2358_v29  ;;  %v2377_v34 = vrot.slane %v2353_v26, 6 }
 0x26b   :  { %v2347_v38 = vmax.f32 %v2345_v3, %v2346_v37 }
 0x26c   :  { %v2361_v47 = vmax.f32 %v2317_v12, %v2360_v9  ;;  %v2378_v27 = vrot.slane %v2359_v39, 4 }
 0x26d   :  { %v2385_v53 = vsel %vm786_vm7, %v2347_v38, %v2377_v34 }
 0x26e   :  { %v2362_v50 = vrot.slane %v2361_v47, 2 }
 0x270   :  { %v2363_v21 = vmax.f32 %v2361_v47, %v2362_v50 }
 0x272   :  { %v2364_v63 = vrot.slane %v2363_v21, 1 }
 0x274   :  { %v2365_v49 = vmax.f32 %v2363_v21, %v2364_v63 }
 0x276   :  { %v2379_v46 = vrot.slane %v2365_v49, 2 }
 0x278   :  { %v2386_v15 = vsel %vm2381_vm0, %v2378_v27, %v2379_v46 }
 0x279   :  { %v2387_v14 = vsel %vm2383_vm15, %v2385_v53, %v2386_v15 }
 0x27a   :  { %v2392_v0 = vrot.slane %v2387_v14, 7 }
 0x27c   :  { %v2394_v57 = vsel %vm2393_vm8, %v2392_v0, %v2384_v33 }
 0x27d   :  { %v2396_v56 = vsel %vm2395_vm9, %v2392_v0, %v2394_v57 }
 0x27e   :  { %v2398_v54 = vsel %vm2397_vm10, %v2392_v0, %v2396_v56 }
 0x27f   :  { %v2400_v11 = vsel %vm2399_vm11, %v2392_v0, %v2398_v54 }
 0x280   :  { %2402 = vst [vmem:[%s3813_s4] sm:$0xff] %v2400_v11 }
 0x281   :  { %2407 = vsyncpa [#allocation3], 1 }
 0x282   :  { %2408 = vsyncpa [#allocation5], 1 }

</bundles_post_ra>
